<compile_context>
chip_gen: v5e
topology: v5e:2x2
jax: 0.10.0
libtpu: 0.0.40
codegen_flags: <defaults>
</compile_context>

<pallas_src>
import functools

import jax
import jax.numpy as jnp
from jax import lax
from jax.experimental import pallas as pl
from jax.experimental.pallas import tpu as pltpu

INV_LN2 = 1.4426950408889634  # 1 / ln(2)
LANE = 128
SUBLANE = 8
# Matmul-operand dtype (MXU); gating/elementwise math stays float32.
MATMUL_DTYPE = jnp.bfloat16
# Explicit scoped-VMEM cap: above v5e's 16 MiB default, below v7x's 64 MiB physical.
VMEM_LIMIT_BYTES = 48 * 1024 * 1024


def _round_up(n, m):
    return ((n + m - 1) // m) * m


def _pick_tile(n, target, align=8):
    """Largest divisor of n that is <= target and a multiple of `align`; else n (full dim)."""
    if n <= target:
        return n
    t = (target // align) * align
    while t >= align:
        if n % t == 0:
            return t
        t -= align
    return n


def _time_tile(T, bp, target):
    """Largest divisor t of T with t <= target and (t*bp) % 16 == 0 (keeps bf16 blocks
    sublane-aligned); falls back to the full dimension, which is always a legal block."""
    target = max(1, min(int(target), T))
    for t in range(target, 0, -1):
        if T % t == 0 and (t * bp) % 16 == 0:
            return t
    return T


def _recurrence_t_block(T, bp, din, hp, budget_bytes=20 << 20, cap=128):
    """Derive the recurrence time-block from a VMEM budget (v7x has only 64 MiB VMEM)."""
    itm = jnp.dtype(MATMUL_DTYPE).itemsize
    per_t = bp * (2 * din * itm        # x block, double-buffered
                  + 2 * 2 * hp * itm   # out block, double-buffered
                  + 6 * hp * 4)        # px scratch (f32)
    fixed = (din * 6 * hp * itm        # fused wx
             + 6 * hp * hp * itm       # fused wh (zr1, g1, zr2, g2)
             + 6 * hp * 4              # bias
             + 2 * bp * 2 * hp * 4     # h0 block (double-buffered)
             + 2 * bp * hp * 4)        # h scratch
    avail = max(budget_bytes - fixed, per_t)
    return _time_tile(T, bp, min(cap, avail // per_t))


# ----------------------------------------------------------------------------
# RevGRU layer: grid over time blocks.  Per block: one fused input-projection matmul
# (all 6 gates) into VMEM scratch, then a serial unrolled loop over timesteps with only
# the 4 fused hidden-state matmuls + gating on the critical path.  Hidden halves are
# carried in f32 VMEM scratch; the hidden-sequence output is a single lane-dense
# (T*Bp, 2*Hp) array (halves in aligned column slices).
# ----------------------------------------------------------------------------
def _revgru_layer_kernel(h0_ref, x_ref, wx_ref, b_ref,
                         whzr1_ref, whg1_ref, whzr2_ref, whg2_ref,
                         out_ref,
                         px_s, h1_s, h2_s,
                         *, t_block, bp, hp, max_forget, unroll):
    mf = jnp.float32(max_forget)

    @pl.when(pl.program_id(0) == 0)
    def _():
        h1_s[...] = h0_ref[:, :hp]
        h2_s[...] = h0_ref[:, hp:]

    # Hoisted input projection for the whole time block: one fused MXU matmul producing
    # the pre-activations of all six gates [z1 | r1 | g1 | z2 | r2 | g2].
    px_s[...] = (jnp.dot(x_ref[...], wx_ref[...],
                         preferred_element_type=jnp.float32) + b_ref[...])

    def step(t, carry):
        h1, h2 = carry
        row = pl.multiple_of(t * bp, bp)
        p = px_s[pl.ds(row, bp), :]
        # --- update first half (uses h2); fused z/r matmul ---
        zr1 = p[:, 0:2 * hp] + jnp.dot(h2.astype(MATMUL_DTYPE), whzr1_ref[...],
                                       preferred_element_type=jnp.float32)
        z1 = mf * jax.nn.sigmoid(zr1[:, :hp]) + (1.0 - mf)
        r1 = jax.nn.sigmoid(zr1[:, hp:])
        g1 = jnp.tanh(p[:, 2 * hp:3 * hp] +
                      jnp.dot((r1 * h2).astype(MATMUL_DTYPE), whg1_ref[...],
                              preferred_element_type=jnp.float32))
        h1n = z1 * h1 + (1.0 - z1) * g1
        # --- update second half (uses new h1); fused z/r matmul ---
        zr2 = p[:, 3 * hp:5 * hp] + jnp.dot(h1n.astype(MATMUL_DTYPE), whzr2_ref[...],
                                            preferred_element_type=jnp.float32)
        z2 = mf * jax.nn.sigmoid(zr2[:, :hp]) + (1.0 - mf)
        r2 = jax.nn.sigmoid(zr2[:, hp:])
        g2 = jnp.tanh(p[:, 5 * hp:6 * hp] +
                      jnp.dot((r2 * h1n).astype(MATMUL_DTYPE), whg2_ref[...],
                              preferred_element_type=jnp.float32))
        h2n = z2 * h2 + (1.0 - z2) * g2

        out_ref[pl.ds(row, bp), 0:hp] = h1n.astype(out_ref.dtype)
        out_ref[pl.ds(row, bp), hp:2 * hp] = h2n.astype(out_ref.dtype)
        return h1n, h2n

    h1, h2 = lax.fori_loop(0, t_block, step, (h1_s[...], h2_s[...]), unroll=unroll)
    h1_s[...] = h1
    h2_s[...] = h2


def revgru_layer(x2d, h0_pad, p, max_forget):
    """x2d: (T*Bp, Din) time-major padded inputs (MATMUL_DTYPE).
    h0_pad: (Bp, 2*Hp) f32.  Returns padded hidden sequence (T*Bp, 2*Hp) MATMUL_DTYPE."""
    N, Din = x2d.shape
    Bp = h0_pad.shape[0]
    Hp = p['hp']
    T = N // Bp
    t_block = _recurrence_t_block(T, Bp, Din, Hp)
    assert T % t_block == 0
    nt = T // t_block
    rows = t_block * Bp
    unroll = max(u for u in (8, 4, 2, 1) if t_block % u == 0)

    kernel = functools.partial(_revgru_layer_kernel, t_block=t_block, bp=Bp, hp=Hp,
                               max_forget=float(max_forget), unroll=unroll)
    return pl.pallas_call(
        kernel,
        grid=(nt,),
        in_specs=[
            pl.BlockSpec((Bp, 2 * Hp), lambda t: (0, 0)),      # h0 (resident)
            pl.BlockSpec((rows, Din), lambda t: (t, 0)),       # x block
            pl.BlockSpec((Din, 6 * Hp), lambda t: (0, 0)),     # fused input->gate weights
            pl.BlockSpec((1, 6 * Hp), lambda t: (0, 0)),       # fused biases
            pl.BlockSpec((Hp, 2 * Hp), lambda t: (0, 0)),      # whzr1
            pl.BlockSpec((Hp, Hp), lambda t: (0, 0)),          # whg1
            pl.BlockSpec((Hp, 2 * Hp), lambda t: (0, 0)),      # whzr2
            pl.BlockSpec((Hp, Hp), lambda t: (0, 0)),          # whg2
        ],
        out_specs=pl.BlockSpec((rows, 2 * Hp), lambda t: (t, 0)),
        out_shape=jax.ShapeDtypeStruct((N, 2 * Hp), MATMUL_DTYPE),
        scratch_shapes=[pltpu.VMEM((rows, 6 * Hp), jnp.float32),   # px for the block
                        pltpu.VMEM((Bp, Hp), jnp.float32),          # h1 carry
                        pltpu.VMEM((Bp, Hp), jnp.float32)],         # h2 carry
        compiler_params=pltpu.CompilerParams(
            dimension_semantics=("arbitrary",),
            vmem_limit_bytes=VMEM_LIMIT_BYTES),
    )(h0_pad, x2d, p['wx'], p['b'], p['whzr1'], p['whg1'], p['whzr2'], p['whg2'])


# ----------------------------------------------------------------------------
# optimal_bits post-pass (off the serial critical path): recompute the two z gates from
# the stored hidden sequence (h2 shifted by one step) + inputs, fully vectorised per
# time block, mask away padded rows/lanes and accumulate -log2(z).
# ----------------------------------------------------------------------------
def _revgru_bits_kernel(x_ref, h2p_ref, hseq_ref,
                        wxz1_ref, whz1_ref, bz1_ref,
                        wxz2_ref, whz2_ref, bz2_ref,
                        bits_ref, acc_s,
                        *, bp, hp, hh, b_real, max_forget):
    mf = jnp.float32(max_forget)

    @pl.when(pl.program_id(0) == 0)
    def _():
        acc_s[...] = jnp.zeros_like(acc_s)

    x = x_ref[...]
    h2p = h2p_ref[...]
    h1 = hseq_ref[:, :hp]
    pre1 = (jnp.dot(x, wxz1_ref[...], preferred_element_type=jnp.float32)
            + jnp.dot(h2p, whz1_ref[...], preferred_element_type=jnp.float32)
            + bz1_ref[...])
    pre2 = (jnp.dot(x, wxz2_ref[...], preferred_element_type=jnp.float32)
            + jnp.dot(h1, whz2_ref[...], preferred_element_type=jnp.float32)
            + bz2_ref[...])
    z1 = mf * jax.nn.sigmoid(pre1) + (1.0 - mf)
    z2 = mf * jax.nn.sigmoid(pre2) + (1.0 - mf)

    nrows = x.shape[0]
    rows = lax.broadcasted_iota(jnp.int32, (nrows, hp), 0)
    cols = lax.broadcasted_iota(jnp.int32, (nrows, hp), 1)
    mask = ((rows % bp < b_real) & (cols < hh)).astype(jnp.float32)
    acc_s[...] = acc_s[...] - jnp.sum((jnp.log(z1) + jnp.log(z2)) * mask)

    @pl.when(pl.program_id(0) == pl.num_programs(0) - 1)
    def _():
        bits_ref[...] = acc_s[...] * INV_LN2


def revgru_bits(x2d, hseq, h0_pad, p, max_forget, b_real):
    N, Din = x2d.shape
    Bp = h0_pad.shape[0]
    Hp, Hh = p['hp'], p['hh']
    T = N // Bp
    # h2 at step t-1 for every t (h0's second half for t=0).
    h2prev = jnp.concatenate(
        [h0_pad[:, Hp:].astype(hseq.dtype), hseq[:-Bp, Hp:]], axis=0)

    tb = _time_tile(T, Bp, 32)
    nt = T // tb
    rows = tb * Bp
    kernel = functools.partial(_revgru_bits_kernel, bp=Bp, hp=Hp, hh=Hh,
                               b_real=int(b_real), max_forget=float(max_forget))
    bits = pl.pallas_call(
        kernel,
        grid=(nt,),
        in_specs=[
            pl.BlockSpec((rows, Din), lambda t: (t, 0)),
            pl.BlockSpec((rows, Hp), lambda t: (t, 0)),
            pl.BlockSpec((rows, 2 * Hp), lambda t: (t, 0)),
            pl.BlockSpec((Din, Hp), lambda t: (0, 0)),
            pl.BlockSpec((Hp, Hp), lambda t: (0, 0)),
            pl.BlockSpec((1, Hp), lambda t: (0, 0)),
            pl.BlockSpec((Din, Hp), lambda t: (0, 0)),
            pl.BlockSpec((Hp, Hp), lambda t: (0, 0)),
            pl.BlockSpec((1, Hp), lambda t: (0, 0)),
        ],
        out_specs=pl.BlockSpec((1, 1), lambda t: (0, 0)),
        out_shape=jax.ShapeDtypeStruct((1, 1), jnp.float32),
        scratch_shapes=[pltpu.VMEM((1, 1), jnp.float32)],
        compiler_params=pltpu.CompilerParams(
            dimension_semantics=("arbitrary",),
            vmem_limit_bytes=VMEM_LIMIT_BYTES),
    )(x2d, h2prev, hseq, p['wxz1'], p['whz1'], p['bz1'],
      p['wxz2'], p['whz2'], p['bz2'])
    return bits[0, 0]


# ----------------------------------------------------------------------------
# Tied decoder: weight pre-transposed once in HBM to (Dp, Vp); vocab axis is the outer
# grid dim so the resident weight tile is reused across the inner N sweep.
# ----------------------------------------------------------------------------
def _decoder_kernel(x_ref, w_ref, b_ref, o_ref):
    o_ref[...] = (jnp.dot(x_ref[...], w_ref[...],
                          preferred_element_type=jnp.float32) + b_ref[...])


def decoder(x2d, w_t, bias):
    N, Dp = x2d.shape
    Vp = w_t.shape[1]
    tn = _pick_tile(N, 512, align=16)
    tv = _pick_tile(Vp, 512, align=128)
    assert N % tn == 0 and Vp % tv == 0
    return pl.pallas_call(
        _decoder_kernel,
        grid=(Vp // tv, N // tn),   # vocab outer -> weight tile resident across N sweep
        in_specs=[pl.BlockSpec((tn, Dp), lambda j, i: (i, 0)),
                  pl.BlockSpec((Dp, tv), lambda j, i: (0, j)),
                  pl.BlockSpec((1, tv), lambda j, i: (0, j))],
        out_specs=pl.BlockSpec((tn, tv), lambda j, i: (i, j)),
        out_shape=jax.ShapeDtypeStruct((N, Vp), jnp.float32),
        compiler_params=pltpu.CompilerParams(
            dimension_semantics=("parallel", "parallel"),
            vmem_limit_bytes=VMEM_LIMIT_BYTES),
    )(x2d, w_t, bias)


# ----------------------------------------------------------------------------
# Parameter construction (deterministic; mirrors nn.Linear / init_weights shapes), plus
# preparation of padded / fused / bf16 kernel operands.
# ----------------------------------------------------------------------------
def make_linear(key, fan_in, fan_out):
    kw, kb = jax.random.split(key)
    bound = 1.0 / (fan_in ** 0.5)
    w = jax.random.uniform(kw, (fan_out, fan_in), jnp.float32, -bound, bound)  # torch layout
    b = jax.random.uniform(kb, (fan_out,), jnp.float32, -bound, bound)
    return w, b


def make_revgru_raw(key, in_sz, h_sz):
    """Raw torch-layout Linear weights for [ih2_to_zr1, irh2_to_g1, ih1_to_zr2, irh1_to_g2]."""
    Hh = h_sz // 2
    k = jax.random.split(key, 4)
    return {'w_zr1': make_linear(k[0], in_sz + Hh, h_sz),
            'w_g1': make_linear(k[1], in_sz + Hh, Hh),
            'w_zr2': make_linear(k[2], in_sz + Hh, h_sz),
            'w_g2': make_linear(k[3], in_sz + Hh, Hh)}


def prepare_revgru_layer(raw, in_sz, h_sz, in_map, din_pad):
    """Build padded, gate-fused, MXU-ready operands for one RevGRU layer.

    in_map: list of (src_col_start, dst_row_start, length) mapping the raw x-feature
    columns of the torch Linear into the padded input-row layout (Din_pad)."""
    Hh = h_sz // 2
    Hp = _round_up(Hh, LANE)

    def split_xh(w):  # torch (out, in_sz + Hh) -> wx (in_sz, out), wh (Hh, out)
        return w[:, :in_sz].T, w[:, in_sz:].T

    def place_x(wx_raw):  # (in_sz, Hh) -> (din_pad, Hp), padded rows/cols are zero
        m = jnp.zeros((din_pad, Hp), jnp.float32)
        for src, dst, ln in in_map:
            m = m.at[dst:dst + ln, :Hh].set(wx_raw[src:src + ln, :])
        return m

    def place_h(wh_raw):  # (Hh, Hh) -> (Hp, Hp)
        return jnp.zeros((Hp, Hp), jnp.float32).at[:Hh, :Hh].set(wh_raw)

    def place_b(b_raw):   # (Hh,) -> (1, Hp)
        return jnp.zeros((1, Hp), jnp.float32).at[0, :Hh].set(b_raw)

    w_zr1, b_zr1 = raw['w_zr1']
    w_g1, b_g1 = raw['w_g1']
    w_zr2, b_zr2 = raw['w_zr2']
    w_g2, b_g2 = raw['w_g2']

    wx_zr1, wh_zr1 = split_xh(w_zr1)   # cols [:Hh]=z, [Hh:]=r (torch chunk(2, dim=1))
    wx_g1, wh_g1 = split_xh(w_g1)
    wx_zr2, wh_zr2 = split_xh(w_zr2)
    wx_g2, wh_g2 = split_xh(w_g2)

    # Fused column order: [z1 | r1 | g1 | z2 | r2 | g2], each Hp wide (lane aligned).
    wx_cols = [wx_zr1[:, :Hh], wx_zr1[:, Hh:], wx_g1,
               wx_zr2[:, :Hh], wx_zr2[:, Hh:], wx_g2]
    b_cols = [b_zr1[:Hh], b_zr1[Hh:], b_g1, b_zr2[:Hh], b_zr2[Hh:], b_g2]
    wx_fused = jnp.concatenate([place_x(c) for c in wx_cols], axis=1).astype(MATMUL_DTYPE)
    b_fused = jnp.concatenate([place_b(c) for c in b_cols], axis=1)  # f32

    whzr1 = jnp.concatenate([place_h(wh_zr1[:, :Hh]),
                             place_h(wh_zr1[:, Hh:])], axis=1).astype(MATMUL_DTYPE)
    whzr2 = jnp.concatenate([place_h(wh_zr2[:, :Hh]),
                             place_h(wh_zr2[:, Hh:])], axis=1).astype(MATMUL_DTYPE)
    whg1 = place_h(wh_g1).astype(MATMUL_DTYPE)
    whg2 = place_h(wh_g2).astype(MATMUL_DTYPE)

    return {'hh': Hh, 'hp': Hp, 'din': din_pad,
            'wx': wx_fused, 'b': b_fused,
            'whzr1': whzr1, 'whg1': whg1, 'whzr2': whzr2, 'whg2': whg2,
            # z-gate pieces for the off-critical-path optimal_bits post-pass
            'wxz1': wx_fused[:, :Hp], 'wxz2': wx_fused[:, 3 * Hp:4 * Hp],
            'whz1': whzr1[:, :Hp], 'whz2': whzr2[:, :Hp],
            'bz1': b_fused[:, :Hp], 'bz2': b_fused[:, 3 * Hp:4 * Hp]}


# ----------------------------------------------------------------------------
# Full model forward (eval mode)
# ----------------------------------------------------------------------------
def rnn_model_forward(input_seq, hiddens, embed_w, out_bias, layer_params,
                      in_size, h_size, nlayers, max_forget, ntoken):
    T, B = input_seq.shape
    Bp = _round_up(B, SUBLANE)
    in_pad = _round_up(in_size, LANE)

    # Embedding lookup (glue; eval-mode embedded_dropout / LockedDropout are identity).
    # TODO(synk): could be fused into the first projection via a scalar-prefetched
    #             row-gather BlockSpec to save an HBM round trip.
    emb = jnp.take(embed_w, input_seq, axis=0)                      # (T, B, in_size) f32
    x = jnp.pad(emb, ((0, 0), (0, Bp - B), (0, in_pad - in_size)))
    x = x.reshape(T * Bp, in_pad).astype(MATMUL_DTYPE)              # time-major 2-D

    last_hiddens = []
    optimal_bits = jnp.zeros((), jnp.float32)
    for l in range(nlayers):
        p = layer_params[l]
        Hh, Hp = p['hh'], p['hp']

        h0 = hiddens[l].astype(jnp.float32)                         # (B, 2*Hh)
        h0_pad = jnp.zeros((Bp, 2 * Hp), jnp.float32)
        h0_pad = h0_pad.at[:B, :Hh].set(h0[:, :Hh]).at[:B, Hp:Hp + Hh].set(h0[:, Hh:])

        hseq = revgru_layer(x, h0_pad, p, max_forget)               # (T*Bp, 2*Hp)
        optimal_bits = optimal_bits + revgru_bits(x, hseq, h0_pad, p, max_forget, B)

        last_rows = hseq[(T - 1) * Bp:(T - 1) * Bp + B]
        last_hiddens.append(jnp.concatenate(
            [last_rows[:, :Hh], last_rows[:, Hp:Hp + Hh]], axis=1).astype(jnp.float32))
        x = hseq                                                    # thread padded halves

    # Tied decoder: out.weight = embed.weight.  Build the (Dp, Vp) padded transpose once
    # (cols beyond ntoken / rows on padded lanes are zero; padded x lanes are exactly 0).
    Hh_last, Hp_last = layer_params[-1]['hh'], layer_params[-1]['hp']
    Dp, Vp = 2 * Hp_last, _round_up(ntoken, LANE)
    wdec = jnp.zeros((Dp, Vp), jnp.float32)
    wdec = wdec.at[:Hh_last, :ntoken].set(embed_w[:, :Hh_last].T)
    wdec = wdec.at[Hp_last:Hp_last + Hh_last, :ntoken].set(embed_w[:, Hh_last:].T)
    wdec = wdec.astype(MATMUL_DTYPE)
    bdec = jnp.zeros((1, Vp), jnp.float32).at[0, :ntoken].set(out_bias)

    dec = decoder(x, wdec, bdec)                                    # (T*Bp, Vp) f32
    decoded = dec.reshape(T, Bp, Vp)[:, :B, :ntoken]

    normal_bits = sum(32 * T * B * (h_size if l != nlayers - 1 else in_size)
                      for l in range(nlayers))
    return {'decoded': decoded, 'last_h': last_hiddens,
            'optimal_bits': optimal_bits, 'normal_bits': normal_bits}


if __name__ == "__main__":
    # Small config consistent with RNNModel('revgru', ...)
    ntoken, in_size, h_size, nlayers = 64, 32, 48, 2
    max_forget = 0.875
    T, B = 8, 2
    assert in_size % 2 == 0 and h_size % 2 == 0

    key = jax.random.PRNGKey(0)
    k_embed, k_seq, *k_layers = jax.random.split(key, 2 + nlayers)

    # init_weights(): embed uniform(-0.1, 0.1); out.weight tied; out.bias = 0
    embed_w = jax.random.uniform(k_embed, (ntoken, in_size), jnp.float32, -0.1, 0.1)
    out_bias = jnp.zeros((ntoken,), jnp.float32)

    layer_params = []
    for l in range(nlayers):
        layer_in = in_size if l == 0 else h_size
        layer_h = h_size if l != nlayers - 1 else in_size
        raw = make_revgru_raw(k_layers[l], layer_in, layer_h)
        if l == 0:
            din_pad = _round_up(in_size, LANE)
            in_map = [(0, 0, in_size)]
        else:
            hh_prev = h_size // 2
            hp_prev = _round_up(hh_prev, LANE)
            din_pad = 2 * hp_prev
            in_map = [(0, 0, hh_prev), (hh_prev, hp_prev, hh_prev)]
        layer_params.append(prepare_revgru_layer(raw, layer_in, layer_h, in_map, din_pad))

    input_seq = jax.random.randint(k_seq, (T, B), 0, ntoken, dtype=jnp.int32)
    # init_hiddens(): zeros per layer (float here; fixed-point int32 in the original)
    hiddens = [jnp.zeros((B, h_size if l != nlayers - 1 else in_size), jnp.float32)
               for l in range(nlayers)]

    out = rnn_model_forward(input_seq, hiddens, embed_w, out_bias, layer_params,
                            in_size, h_size, nlayers, max_forget, ntoken)
    jax.block_until_ready(out['decoded'])
    for h in out['last_h']:
        jax.block_until_ready(h)
    jax.block_until_ready(out['optimal_bits'])

    assert out['decoded'].shape == (T, B, ntoken)
    assert out['last_h'][0].shape == (B, h_size)
    assert out['last_h'][-1].shape == (B, in_size)
    print("KERNEL_OK")
</pallas_src>

<mosaic_0001>
module attributes {stable_mosaic.version = 11 : i64} {
  func.func @_revgru_layer_kernel(%arg0: i32, %arg1: memref<8x256xf32, #tpu.memory_space<vmem>>, %arg2: memref<64x128xbf16, #tpu.memory_space<vmem>>, %arg3: memref<128x768xbf16, #tpu.memory_space<vmem>>, %arg4: memref<1x768xf32, #tpu.memory_space<vmem>>, %arg5: memref<128x256xbf16, #tpu.memory_space<vmem>>, %arg6: memref<128x128xbf16, #tpu.memory_space<vmem>>, %arg7: memref<128x256xbf16, #tpu.memory_space<vmem>>, %arg8: memref<128x128xbf16, #tpu.memory_space<vmem>>, %arg9: memref<64x256xbf16, #tpu.memory_space<vmem>>, %arg10: memref<64x768xf32, #tpu.memory_space<vmem>>, %arg11: memref<8x128xf32, #tpu.memory_space<vmem>>, %arg12: memref<8x128xf32, #tpu.memory_space<vmem>>) attributes {dimension_semantics = [#tpu.dimension_semantics<arbitrary>], iteration_bounds = array<i64: 1>, scalar_prefetch = 0 : i64, scratch_operands = 3 : i64, tpu.core_type = #tpu.core_type<tc>, window_params = [{pipeline_mode = #tpu.pipeline_mode<synchronous>, transform_indices = @transform_0, window_bounds = array<i64: 8, 256>}, {transform_indices = @transform_1, window_bounds = array<i64: 64, 128>}, {pipeline_mode = #tpu.pipeline_mode<synchronous>, transform_indices = @transform_2, window_bounds = array<i64: 128, 768>}, {pipeline_mode = #tpu.pipeline_mode<synchronous>, transform_indices = @transform_3, window_bounds = array<i64: 1, 768>}, {pipeline_mode = #tpu.pipeline_mode<synchronous>, transform_indices = @transform_4, window_bounds = array<i64: 128, 256>}, {pipeline_mode = #tpu.pipeline_mode<synchronous>, transform_indices = @transform_5, window_bounds = array<i64: 128, 128>}, {pipeline_mode = #tpu.pipeline_mode<synchronous>, transform_indices = @transform_6, window_bounds = array<i64: 128, 256>}, {pipeline_mode = #tpu.pipeline_mode<synchronous>, transform_indices = @transform_7, window_bounds = array<i64: 128, 128>}, {transform_indices = @transform_8, window_bounds = array<i64: 64, 256>}]} {
    %c0_i32 = arith.constant 0 : i32
    %0 = arith.cmpi eq, %arg0, %c0_i32 : i32
    %1 = arith.extui %0 : i1 to i32
    %c0_i32_0 = arith.constant 0 : i32
    %2 = arith.cmpi ne, %1, %c0_i32_0 : i32
    scf.if %2 {
      %c0_209 = arith.constant 0 : index
      %c0_210 = arith.constant 0 : index
      %638 = vector.load %arg1[%c0_209, %c0_210] : memref<8x256xf32, #tpu.memory_space<vmem>>, vector<8x128xf32>
      %c0_211 = arith.constant 0 : index
      %c0_212 = arith.constant 0 : index
      %639 = vector.load %arg11[%c0_211, %c0_212] : memref<8x128xf32, #tpu.memory_space<vmem>>, vector<8x128xf32>
      tpu.vector_store %arg11[%c0_211, %c0_212], %638 {strides = array<i32>} : memref<8x128xf32, #tpu.memory_space<vmem>>, vector<8x128xf32>,
      %c0_213 = arith.constant 0 : index
      %c128_214 = arith.constant 128 : index
      %640 = vector.load %arg1[%c0_213, %c128_214] : memref<8x256xf32, #tpu.memory_space<vmem>>, vector<8x128xf32>
      %c0_215 = arith.constant 0 : index
      %c0_216 = arith.constant 0 : index
      %641 = vector.load %arg12[%c0_215, %c0_216] : memref<8x128xf32, #tpu.memory_space<vmem>>, vector<8x128xf32>
      tpu.vector_store %arg12[%c0_215, %c0_216], %640 {strides = array<i32>} : memref<8x128xf32, #tpu.memory_space<vmem>>, vector<8x128xf32>,
    } else {
    }
    %c0 = arith.constant 0 : index
    %c0_1 = arith.constant 0 : index
    %3 = vector.load %arg2[%c0, %c0_1] : memref<64x128xbf16, #tpu.memory_space<vmem>>, vector<64x128xbf16>
    %c0_2 = arith.constant 0 : index
    %c0_3 = arith.constant 0 : index
    %4 = vector.load %arg3[%c0_2, %c0_3] : memref<128x768xbf16, #tpu.memory_space<vmem>>, vector<128x768xbf16>
    %cst = arith.constant dense<0.000000e+00> : vector<64x768xf32>
    %5 = tpu.matmul %3, %4, %cst {dimension_numbers = #tpu.dot_dimension_numbers<[1], [0], [0], [1], [0, 0, 1, 1], [], []>} : vector<64x128xbf16>, vector<128x768xbf16>, vector<64x768xf32> -> vector<64x768xf32>
    %c0_4 = arith.constant 0 : index
    %c0_5 = arith.constant 0 : index
    %6 = vector.load %arg4[%c0_4, %c0_5] : memref<1x768xf32, #tpu.memory_space<vmem>>, vector<1x768xf32>
    %7 = vector.broadcast %6 : vector<1x768xf32> to vector<64x768xf32>
    %8 = arith.addf %5, %7 : vector<64x768xf32>
    %c0_6 = arith.constant 0 : index
    %c0_7 = arith.constant 0 : index
    %9 = vector.load %arg10[%c0_6, %c0_7] : memref<64x768xf32, #tpu.memory_space<vmem>>, vector<64x768xf32>
    tpu.vector_store %arg10[%c0_6, %c0_7], %8 {strides = array<i32>} : memref<64x768xf32, #tpu.memory_space<vmem>>, vector<64x768xf32>,
    %c0_8 = arith.constant 0 : index
    %c0_9 = arith.constant 0 : index
    %10 = vector.load %arg11[%c0_8, %c0_9] : memref<8x128xf32, #tpu.memory_space<vmem>>, vector<8x128xf32>
    %c0_10 = arith.constant 0 : index
    %c0_11 = arith.constant 0 : index
    %11 = vector.load %arg12[%c0_10, %c0_11] : memref<8x128xf32, #tpu.memory_space<vmem>>, vector<8x128xf32>
    %cst_12 = arith.constant 8.750000e-01 : f32
    %c0_i32_13 = arith.constant 0 : i32
    %c8_i32 = arith.constant 8 : i32
    %12 = arith.muli %c0_i32_13, %c8_i32 : i32
    %13 = tpu.assume_multiple %12, 8 : i32
    %14 = arith.index_cast %13 : i32 to index
    %c0_14 = arith.constant 0 : index
    %15 = vector.load %arg10[%14, %c0_14] : memref<64x768xf32, #tpu.memory_space<vmem>>, vector<8x768xf32>
    %16 = vector.extract_strided_slice %15 {offsets = [0, 0], sizes = [8, 256], strides = [1, 1]} : vector<8x768xf32> to vector<8x256xf32>
    %17 = arith.truncf %11 : vector<8x128xf32> to vector<8x128xbf16>
    %c0_15 = arith.constant 0 : index
    %c0_16 = arith.constant 0 : index
    %18 = vector.load %arg5[%c0_15, %c0_16] : memref<128x256xbf16, #tpu.memory_space<vmem>>, vector<128x256xbf16>
    %cst_17 = arith.constant dense<0.000000e+00> : vector<8x256xf32>
    %19 = tpu.matmul %17, %18, %cst_17 {dimension_numbers = #tpu.dot_dimension_numbers<[1], [0], [0], [1], [0, 0, 1, 1], [], []>} : vector<8x128xbf16>, vector<128x256xbf16>, vector<8x256xf32> -> vector<8x256xf32>
    %20 = arith.addf %16, %19 : vector<8x256xf32>
    %21 = vector.extract_strided_slice %20 {offsets = [0, 0], sizes = [8, 128], strides = [1, 1]} : vector<8x256xf32> to vector<8x128xf32>
    %22 = arith.negf %21 : vector<8x128xf32>
    %23 = math.exp %22 : vector<8x128xf32>
    %cst_18 = arith.constant 1.000000e+00 : f32
    %24 = vector.broadcast %cst_18 : f32 to vector<8x128xf32>
    %25 = arith.addf %24, %23 : vector<8x128xf32>
    %26 = arith.divf %24, %25 : vector<8x128xf32>
    %27 = vector.broadcast %cst_12 : f32 to vector<8x128xf32>
    %28 = arith.mulf %27, %26 : vector<8x128xf32>
    %cst_19 = arith.constant 1.000000e+00 : f32
    %29 = arith.subf %cst_19, %cst_12 : f32
    %30 = vector.broadcast %29 : f32 to vector<8x128xf32>
    %31 = arith.addf %28, %30 : vector<8x128xf32>
    %32 = vector.extract_strided_slice %20 {offsets = [0, 128], sizes = [8, 128], strides = [1, 1]} : vector<8x256xf32> to vector<8x128xf32>
    %33 = arith.negf %32 : vector<8x128xf32>
    %34 = math.exp %33 : vector<8x128xf32>
    %cst_20 = arith.constant 1.000000e+00 : f32
    %35 = vector.broadcast %cst_20 : f32 to vector<8x128xf32>
    %36 = arith.addf %35, %34 : vector<8x128xf32>
    %37 = arith.divf %35, %36 : vector<8x128xf32>
    %38 = vector.extract_strided_slice %15 {offsets = [0, 256], sizes = [8, 128], strides = [1, 1]} : vector<8x768xf32> to vector<8x128xf32>
    %39 = arith.mulf %37, %11 : vector<8x128xf32>
    %40 = arith.truncf %39 : vector<8x128xf32> to vector<8x128xbf16>
    %c0_21 = arith.constant 0 : index
    %c0_22 = arith.constant 0 : index
    %41 = vector.load %arg6[%c0_21, %c0_22] : memref<128x128xbf16, #tpu.memory_space<vmem>>, vector<128x128xbf16>
    %cst_23 = arith.constant dense<0.000000e+00> : vector<8x128xf32>
    %42 = tpu.matmul %40, %41, %cst_23 {dimension_numbers = #tpu.dot_dimension_numbers<[1], [0], [0], [1], [0, 0, 1, 1], [], []>} : vector<8x128xbf16>, vector<128x128xbf16>, vector<8x128xf32> -> vector<8x128xf32>
    %43 = arith.addf %38, %42 : vector<8x128xf32>
    %44 = math.tanh %43 : vector<8x128xf32>
    %45 = arith.mulf %31, %10 : vector<8x128xf32>
    %cst_24 = arith.constant 1.000000e+00 : f32
    %46 = vector.broadcast %cst_24 : f32 to vector<8x128xf32>
    %47 = arith.subf %46, %31 : vector<8x128xf32>
    %48 = arith.mulf %47, %44 : vector<8x128xf32>
    %49 = arith.addf %45, %48 : vector<8x128xf32>
    %50 = vector.extract_strided_slice %15 {offsets = [0, 384], sizes = [8, 256], strides = [1, 1]} : vector<8x768xf32> to vector<8x256xf32>
    %51 = arith.truncf %49 : vector<8x128xf32> to vector<8x128xbf16>
    %c0_25 = arith.constant 0 : index
    %c0_26 = arith.constant 0 : index
    %52 = vector.load %arg7[%c0_25, %c0_26] : memref<128x256xbf16, #tpu.memory_space<vmem>>, vector<128x256xbf16>
    %cst_27 = arith.constant dense<0.000000e+00> : vector<8x256xf32>
    %53 = tpu.matmul %51, %52, %cst_27 {dimension_numbers = #tpu.dot_dimension_numbers<[1], [0], [0], [1], [0, 0, 1, 1], [], []>} : vector<8x128xbf16>, vector<128x256xbf16>, vector<8x256xf32> -> vector<8x256xf32>
    %54 = arith.addf %50, %53 : vector<8x256xf32>
    %55 = vector.extract_strided_slice %54 {offsets = [0, 0], sizes = [8, 128], strides = [1, 1]} : vector<8x256xf32> to vector<8x128xf32>
    %56 = arith.negf %55 : vector<8x128xf32>
    %57 = math.exp %56 : vector<8x128xf32>
    %cst_28 = arith.constant 1.000000e+00 : f32
    %58 = vector.broadcast %cst_28 : f32 to vector<8x128xf32>
    %59 = arith.addf %58, %57 : vector<8x128xf32>
    %60 = arith.divf %58, %59 : vector<8x128xf32>
    %61 = vector.broadcast %cst_12 : f32 to vector<8x128xf32>
    %62 = arith.mulf %61, %60 : vector<8x128xf32>
    %cst_29 = arith.constant 1.000000e+00 : f32
    %63 = arith.subf %cst_29, %cst_12 : f32
    %64 = vector.broadcast %63 : f32 to vector<8x128xf32>
    %65 = arith.addf %62, %64 : vector<8x128xf32>
    %66 = vector.extract_strided_slice %54 {offsets = [0, 128], sizes = [8, 128], strides = [1, 1]} : vector<8x256xf32> to vector<8x128xf32>
    %67 = arith.negf %66 : vector<8x128xf32>
    %68 = math.exp %67 : vector<8x128xf32>
    %cst_30 = arith.constant 1.000000e+00 : f32
    %69 = vector.broadcast %cst_30 : f32 to vector<8x128xf32>
    %70 = arith.addf %69, %68 : vector<8x128xf32>
    %71 = arith.divf %69, %70 : vector<8x128xf32>
    %72 = vector.extract_strided_slice %15 {offsets = [0, 640], sizes = [8, 128], strides = [1, 1]} : vector<8x768xf32> to vector<8x128xf32>
    %73 = arith.mulf %71, %49 : vector<8x128xf32>
    %74 = arith.truncf %73 : vector<8x128xf32> to vector<8x128xbf16>
    %c0_31 = arith.constant 0 : index
    %c0_32 = arith.constant 0 : index
    %75 = vector.load %arg8[%c0_31, %c0_32] : memref<128x128xbf16, #tpu.memory_space<vmem>>, vector<128x128xbf16>
    %cst_33 = arith.constant dense<0.000000e+00> : vector<8x128xf32>
    %76 = tpu.matmul %74, %75, %cst_33 {dimension_numbers = #tpu.dot_dimension_numbers<[1], [0], [0], [1], [0, 0, 1, 1], [], []>} : vector<8x128xbf16>, vector<128x128xbf16>, vector<8x128xf32> -> vector<8x128xf32>
    %77 = arith.addf %72, %76 : vector<8x128xf32>
    %78 = math.tanh %77 : vector<8x128xf32>
    %79 = arith.mulf %65, %11 : vector<8x128xf32>
    %cst_34 = arith.constant 1.000000e+00 : f32
    %80 = vector.broadcast %cst_34 : f32 to vector<8x128xf32>
    %81 = arith.subf %80, %65 : vector<8x128xf32>
    %82 = arith.mulf %81, %78 : vector<8x128xf32>
    %83 = arith.addf %79, %82 : vector<8x128xf32>
    %84 = arith.truncf %49 : vector<8x128xf32> to vector<8x128xbf16>
    %85 = arith.index_cast %13 : i32 to index
    %c0_35 = arith.constant 0 : index
    %86 = vector.load %arg9[%85, %c0_35] : memref<64x256xbf16, #tpu.memory_space<vmem>>, vector<8x128xbf16>
    tpu.vector_store %arg9[%85, %c0_35], %84 {strides = array<i32>} : memref<64x256xbf16, #tpu.memory_space<vmem>>, vector<8x128xbf16>,
    %87 = arith.truncf %83 : vector<8x128xf32> to vector<8x128xbf16>
    %88 = arith.index_cast %13 : i32 to index
    %c128 = arith.constant 128 : index
    %89 = vector.load %arg9[%88, %c128] : memref<64x256xbf16, #tpu.memory_space<vmem>>, vector<8x128xbf16>
    tpu.vector_store %arg9[%88, %c128], %87 {strides = array<i32>} : memref<64x256xbf16, #tpu.memory_space<vmem>>, vector<8x128xbf16>,
    %c1_i32 = arith.constant 1 : i32
    %c8_i32_36 = arith.constant 8 : i32
    %90 = arith.muli %c1_i32, %c8_i32_36 : i32
    %91 = tpu.assume_multiple %90, 8 : i32
    %92 = arith.index_cast %91 : i32 to index
    %c0_37 = arith.constant 0 : index
    %93 = vector.load %arg10[%92, %c0_37] : memref<64x768xf32, #tpu.memory_space<vmem>>, vector<8x768xf32>
    %94 = vector.extract_strided_slice %93 {offsets = [0, 0], sizes = [8, 256], strides = [1, 1]} : vector<8x768xf32> to vector<8x256xf32>
    %95 = arith.truncf %83 : vector<8x128xf32> to vector<8x128xbf16>
    %c0_38 = arith.constant 0 : index
    %c0_39 = arith.constant 0 : index
    %96 = vector.load %arg5[%c0_38, %c0_39] : memref<128x256xbf16, #tpu.memory_space<vmem>>, vector<128x256xbf16>
    %cst_40 = arith.constant dense<0.000000e+00> : vector<8x256xf32>
    %97 = tpu.matmul %95, %96, %cst_40 {dimension_numbers = #tpu.dot_dimension_numbers<[1], [0], [0], [1], [0, 0, 1, 1], [], []>} : vector<8x128xbf16>, vector<128x256xbf16>, vector<8x256xf32> -> vector<8x256xf32>
    %98 = arith.addf %94, %97 : vector<8x256xf32>
    %99 = vector.extract_strided_slice %98 {offsets = [0, 0], sizes = [8, 128], strides = [1, 1]} : vector<8x256xf32> to vector<8x128xf32>
    %100 = arith.negf %99 : vector<8x128xf32>
    %101 = math.exp %100 : vector<8x128xf32>
    %cst_41 = arith.constant 1.000000e+00 : f32
    %102 = vector.broadcast %cst_41 : f32 to vector<8x128xf32>
    %103 = arith.addf %102, %101 : vector<8x128xf32>
    %104 = arith.divf %102, %103 : vector<8x128xf32>
    %105 = vector.broadcast %cst_12 : f32 to vector<8x128xf32>
    %106 = arith.mulf %105, %104 : vector<8x128xf32>
    %cst_42 = arith.constant 1.000000e+00 : f32
    %107 = arith.subf %cst_42, %cst_12 : f32
    %108 = vector.broadcast %107 : f32 to vector<8x128xf32>
    %109 = arith.addf %106, %108 : vector<8x128xf32>
    %110 = vector.extract_strided_slice %98 {offsets = [0, 128], sizes = [8, 128], strides = [1, 1]} : vector<8x256xf32> to vector<8x128xf32>
    %111 = arith.negf %110 : vector<8x128xf32>
    %112 = math.exp %111 : vector<8x128xf32>
    %cst_43 = arith.constant 1.000000e+00 : f32
    %113 = vector.broadcast %cst_43 : f32 to vector<8x128xf32>
    %114 = arith.addf %113, %112 : vector<8x128xf32>
    %115 = arith.divf %113, %114 : vector<8x128xf32>
    %116 = vector.extract_strided_slice %93 {offsets = [0, 256], sizes = [8, 128], strides = [1, 1]} : vector<8x768xf32> to vector<8x128xf32>
    %117 = arith.mulf %115, %83 : vector<8x128xf32>
    %118 = arith.truncf %117 : vector<8x128xf32> to vector<8x128xbf16>
    %c0_44 = arith.constant 0 : index
    %c0_45 = arith.constant 0 : index
    %119 = vector.load %arg6[%c0_44, %c0_45] : memref<128x128xbf16, #tpu.memory_space<vmem>>, vector<128x128xbf16>
    %cst_46 = arith.constant dense<0.000000e+00> : vector<8x128xf32>
    %120 = tpu.matmul %118, %119, %cst_46 {dimension_numbers = #tpu.dot_dimension_numbers<[1], [0], [0], [1], [0, 0, 1, 1], [], []>} : vector<8x128xbf16>, vector<128x128xbf16>, vector<8x128xf32> -> vector<8x128xf32>
    %121 = arith.addf %116, %120 : vector<8x128xf32>
    %122 = math.tanh %121 : vector<8x128xf32>
    %123 = arith.mulf %109, %49 : vector<8x128xf32>
    %cst_47 = arith.constant 1.000000e+00 : f32
    %124 = vector.broadcast %cst_47 : f32 to vector<8x128xf32>
    %125 = arith.subf %124, %109 : vector<8x128xf32>
    %126 = arith.mulf %125, %122 : vector<8x128xf32>
    %127 = arith.addf %123, %126 : vector<8x128xf32>
    %128 = vector.extract_strided_slice %93 {offsets = [0, 384], sizes = [8, 256], strides = [1, 1]} : vector<8x768xf32> to vector<8x256xf32>
    %129 = arith.truncf %127 : vector<8x128xf32> to vector<8x128xbf16>
    %c0_48 = arith.constant 0 : index
    %c0_49 = arith.constant 0 : index
    %130 = vector.load %arg7[%c0_48, %c0_49] : memref<128x256xbf16, #tpu.memory_space<vmem>>, vector<128x256xbf16>
    %cst_50 = arith.constant dense<0.000000e+00> : vector<8x256xf32>
    %131 = tpu.matmul %129, %130, %cst_50 {dimension_numbers = #tpu.dot_dimension_numbers<[1], [0], [0], [1], [0, 0, 1, 1], [], []>} : vector<8x128xbf16>, vector<128x256xbf16>, vector<8x256xf32> -> vector<8x256xf32>
    %132 = arith.addf %128, %131 : vector<8x256xf32>
    %133 = vector.extract_strided_slice %132 {offsets = [0, 0], sizes = [8, 128], strides = [1, 1]} : vector<8x256xf32> to vector<8x128xf32>
    %134 = arith.negf %133 : vector<8x128xf32>
    %135 = math.exp %134 : vector<8x128xf32>
    %cst_51 = arith.constant 1.000000e+00 : f32
    %136 = vector.broadcast %cst_51 : f32 to vector<8x128xf32>
    %137 = arith.addf %136, %135 : vector<8x128xf32>
    %138 = arith.divf %136, %137 : vector<8x128xf32>
    %139 = vector.broadcast %cst_12 : f32 to vector<8x128xf32>
    %140 = arith.mulf %139, %138 : vector<8x128xf32>
    %cst_52 = arith.constant 1.000000e+00 : f32
    %141 = arith.subf %cst_52, %cst_12 : f32
    %142 = vector.broadcast %141 : f32 to vector<8x128xf32>
    %143 = arith.addf %140, %142 : vector<8x128xf32>
    %144 = vector.extract_strided_slice %132 {offsets = [0, 128], sizes = [8, 128], strides = [1, 1]} : vector<8x256xf32> to vector<8x128xf32>
    %145 = arith.negf %144 : vector<8x128xf32>
    %146 = math.exp %145 : vector<8x128xf32>
    %cst_53 = arith.constant 1.000000e+00 : f32
    %147 = vector.broadcast %cst_53 : f32 to vector<8x128xf32>
    %148 = arith.addf %147, %146 : vector<8x128xf32>
    %149 = arith.divf %147, %148 : vector<8x128xf32>
    %150 = vector.extract_strided_slice %93 {offsets = [0, 640], sizes = [8, 128], strides = [1, 1]} : vector<8x768xf32> to vector<8x128xf32>
    %151 = arith.mulf %149, %127 : vector<8x128xf32>
    %152 = arith.truncf %151 : vector<8x128xf32> to vector<8x128xbf16>
    %c0_54 = arith.constant 0 : index
    %c0_55 = arith.constant 0 : index
    %153 = vector.load %arg8[%c0_54, %c0_55] : memref<128x128xbf16, #tpu.memory_space<vmem>>, vector<128x128xbf16>
    %cst_56 = arith.constant dense<0.000000e+00> : vector<8x128xf32>
    %154 = tpu.matmul %152, %153, %cst_56 {dimension_numbers = #tpu.dot_dimension_numbers<[1], [0], [0], [1], [0, 0, 1, 1], [], []>} : vector<8x128xbf16>, vector<128x128xbf16>, vector<8x128xf32> -> vector<8x128xf32>
    %155 = arith.addf %150, %154 : vector<8x128xf32>
    %156 = math.tanh %155 : vector<8x128xf32>
    %157 = arith.mulf %143, %83 : vector<8x128xf32>
    %cst_57 = arith.constant 1.000000e+00 : f32
    %158 = vector.broadcast %cst_57 : f32 to vector<8x128xf32>
    %159 = arith.subf %158, %143 : vector<8x128xf32>
    %160 = arith.mulf %159, %156 : vector<8x128xf32>
    %161 = arith.addf %157, %160 : vector<8x128xf32>
    %162 = arith.truncf %127 : vector<8x128xf32> to vector<8x128xbf16>
    %163 = arith.index_cast %91 : i32 to index
    %c0_58 = arith.constant 0 : index
    %164 = vector.load %arg9[%163, %c0_58] : memref<64x256xbf16, #tpu.memory_space<vmem>>, vector<8x128xbf16>
    tpu.vector_store %arg9[%163, %c0_58], %162 {strides = array<i32>} : memref<64x256xbf16, #tpu.memory_space<vmem>>, vector<8x128xbf16>,
    %165 = arith.truncf %161 : vector<8x128xf32> to vector<8x128xbf16>
    %166 = arith.index_cast %91 : i32 to index
    %c128_59 = arith.constant 128 : index
    %167 = vector.load %arg9[%166, %c128_59] : memref<64x256xbf16, #tpu.memory_space<vmem>>, vector<8x128xbf16>
    tpu.vector_store %arg9[%166, %c128_59], %165 {strides = array<i32>} : memref<64x256xbf16, #tpu.memory_space<vmem>>, vector<8x128xbf16>,
    %c2_i32 = arith.constant 2 : i32
    %c8_i32_60 = arith.constant 8 : i32
    %168 = arith.muli %c2_i32, %c8_i32_60 : i32
    %169 = tpu.assume_multiple %168, 8 : i32
    %170 = arith.index_cast %169 : i32 to index
    %c0_61 = arith.constant 0 : index
    %171 = vector.load %arg10[%170, %c0_61] : memref<64x768xf32, #tpu.memory_space<vmem>>, vector<8x768xf32>
    %172 = vector.extract_strided_slice %171 {offsets = [0, 0], sizes = [8, 256], strides = [1, 1]} : vector<8x768xf32> to vector<8x256xf32>
    %173 = arith.truncf %161 : vector<8x128xf32> to vector<8x128xbf16>
    %c0_62 = arith.constant 0 : index
    %c0_63 = arith.constant 0 : index
    %174 = vector.load %arg5[%c0_62, %c0_63] : memref<128x256xbf16, #tpu.memory_space<vmem>>, vector<128x256xbf16>
    %cst_64 = arith.constant dense<0.000000e+00> : vector<8x256xf32>
    %175 = tpu.matmul %173, %174, %cst_64 {dimension_numbers = #tpu.dot_dimension_numbers<[1], [0], [0], [1], [0, 0, 1, 1], [], []>} : vector<8x128xbf16>, vector<128x256xbf16>, vector<8x256xf32> -> vector<8x256xf32>
    %176 = arith.addf %172, %175 : vector<8x256xf32>
    %177 = vector.extract_strided_slice %176 {offsets = [0, 0], sizes = [8, 128], strides = [1, 1]} : vector<8x256xf32> to vector<8x128xf32>
    %178 = arith.negf %177 : vector<8x128xf32>
    %179 = math.exp %178 : vector<8x128xf32>
    %cst_65 = arith.constant 1.000000e+00 : f32
    %180 = vector.broadcast %cst_65 : f32 to vector<8x128xf32>
    %181 = arith.addf %180, %179 : vector<8x128xf32>
    %182 = arith.divf %180, %181 : vector<8x128xf32>
    %183 = vector.broadcast %cst_12 : f32 to vector<8x128xf32>
    %184 = arith.mulf %183, %182 : vector<8x128xf32>
    %cst_66 = arith.constant 1.000000e+00 : f32
    %185 = arith.subf %cst_66, %cst_12 : f32
    %186 = vector.broadcast %185 : f32 to vector<8x128xf32>
    %187 = arith.addf %184, %186 : vector<8x128xf32>
    %188 = vector.extract_strided_slice %176 {offsets = [0, 128], sizes = [8, 128], strides = [1, 1]} : vector<8x256xf32> to vector<8x128xf32>
    %189 = arith.negf %188 : vector<8x128xf32>
    %190 = math.exp %189 : vector<8x128xf32>
    %cst_67 = arith.constant 1.000000e+00 : f32
    %191 = vector.broadcast %cst_67 : f32 to vector<8x128xf32>
    %192 = arith.addf %191, %190 : vector<8x128xf32>
    %193 = arith.divf %191, %192 : vector<8x128xf32>
    %194 = vector.extract_strided_slice %171 {offsets = [0, 256], sizes = [8, 128], strides = [1, 1]} : vector<8x768xf32> to vector<8x128xf32>
    %195 = arith.mulf %193, %161 : vector<8x128xf32>
    %196 = arith.truncf %195 : vector<8x128xf32> to vector<8x128xbf16>
    %c0_68 = arith.constant 0 : index
    %c0_69 = arith.constant 0 : index
    %197 = vector.load %arg6[%c0_68, %c0_69] : memref<128x128xbf16, #tpu.memory_space<vmem>>, vector<128x128xbf16>
    %cst_70 = arith.constant dense<0.000000e+00> : vector<8x128xf32>
    %198 = tpu.matmul %196, %197, %cst_70 {dimension_numbers = #tpu.dot_dimension_numbers<[1], [0], [0], [1], [0, 0, 1, 1], [], []>} : vector<8x128xbf16>, vector<128x128xbf16>, vector<8x128xf32> -> vector<8x128xf32>
    %199 = arith.addf %194, %198 : vector<8x128xf32>
    %200 = math.tanh %199 : vector<8x128xf32>
    %201 = arith.mulf %187, %127 : vector<8x128xf32>
    %cst_71 = arith.constant 1.000000e+00 : f32
    %202 = vector.broadcast %cst_71 : f32 to vector<8x128xf32>
    %203 = arith.subf %202, %187 : vector<8x128xf32>
    %204 = arith.mulf %203, %200 : vector<8x128xf32>
    %205 = arith.addf %201, %204 : vector<8x128xf32>
    %206 = vector.extract_strided_slice %171 {offsets = [0, 384], sizes = [8, 256], strides = [1, 1]} : vector<8x768xf32> to vector<8x256xf32>
    %207 = arith.truncf %205 : vector<8x128xf32> to vector<8x128xbf16>
    %c0_72 = arith.constant 0 : index
    %c0_73 = arith.constant 0 : index
    %208 = vector.load %arg7[%c0_72, %c0_73] : memref<128x256xbf16, #tpu.memory_space<vmem>>, vector<128x256xbf16>
    %cst_74 = arith.constant dense<0.000000e+00> : vector<8x256xf32>
    %209 = tpu.matmul %207, %208, %cst_74 {dimension_numbers = #tpu.dot_dimension_numbers<[1], [0], [0], [1], [0, 0, 1, 1], [], []>} : vector<8x128xbf16>, vector<128x256xbf16>, vector<8x256xf32> -> vector<8x256xf32>
    %210 = arith.addf %206, %209 : vector<8x256xf32>
    %211 = vector.extract_strided_slice %210 {offsets = [0, 0], sizes = [8, 128], strides = [1, 1]} : vector<8x256xf32> to vector<8x128xf32>
    %212 = arith.negf %211 : vector<8x128xf32>
    %213 = math.exp %212 : vector<8x128xf32>
    %cst_75 = arith.constant 1.000000e+00 : f32
    %214 = vector.broadcast %cst_75 : f32 to vector<8x128xf32>
    %215 = arith.addf %214, %213 : vector<8x128xf32>
    %216 = arith.divf %214, %215 : vector<8x128xf32>
    %217 = vector.broadcast %cst_12 : f32 to vector<8x128xf32>
    %218 = arith.mulf %217, %216 : vector<8x128xf32>
    %cst_76 = arith.constant 1.000000e+00 : f32
    %219 = arith.subf %cst_76, %cst_12 : f32
    %220 = vector.broadcast %219 : f32 to vector<8x128xf32>
    %221 = arith.addf %218, %220 : vector<8x128xf32>
    %222 = vector.extract_strided_slice %210 {offsets = [0, 128], sizes = [8, 128], strides = [1, 1]} : vector<8x256xf32> to vector<8x128xf32>
    %223 = arith.negf %222 : vector<8x128xf32>
    %224 = math.exp %223 : vector<8x128xf32>
    %cst_77 = arith.constant 1.000000e+00 : f32
    %225 = vector.broadcast %cst_77 : f32 to vector<8x128xf32>
    %226 = arith.addf %225, %224 : vector<8x128xf32>
    %227 = arith.divf %225, %226 : vector<8x128xf32>
    %228 = vector.extract_strided_slice %171 {offsets = [0, 640], sizes = [8, 128], strides = [1, 1]} : vector<8x768xf32> to vector<8x128xf32>
    %229 = arith.mulf %227, %205 : vector<8x128xf32>
    %230 = arith.truncf %229 : vector<8x128xf32> to vector<8x128xbf16>
    %c0_78 = arith.constant 0 : index
    %c0_79 = arith.constant 0 : index
    %231 = vector.load %arg8[%c0_78, %c0_79] : memref<128x128xbf16, #tpu.memory_space<vmem>>, vector<128x128xbf16>
    %cst_80 = arith.constant dense<0.000000e+00> : vector<8x128xf32>
    %232 = tpu.matmul %230, %231, %cst_80 {dimension_numbers = #tpu.dot_dimension_numbers<[1], [0], [0], [1], [0, 0, 1, 1], [], []>} : vector<8x128xbf16>, vector<128x128xbf16>, vector<8x128xf32> -> vector<8x128xf32>
    %233 = arith.addf %228, %232 : vector<8x128xf32>
    %234 = math.tanh %233 : vector<8x128xf32>
    %235 = arith.mulf %221, %161 : vector<8x128xf32>
    %cst_81 = arith.constant 1.000000e+00 : f32
    %236 = vector.broadcast %cst_81 : f32 to vector<8x128xf32>
    %237 = arith.subf %236, %221 : vector<8x128xf32>
    %238 = arith.mulf %237, %234 : vector<8x128xf32>
    %239 = arith.addf %235, %238 : vector<8x128xf32>
    %240 = arith.truncf %205 : vector<8x128xf32> to vector<8x128xbf16>
    %241 = arith.index_cast %169 : i32 to index
    %c0_82 = arith.constant 0 : index
    %242 = vector.load %arg9[%241, %c0_82] : memref<64x256xbf16, #tpu.memory_space<vmem>>, vector<8x128xbf16>
    tpu.vector_store %arg9[%241, %c0_82], %240 {strides = array<i32>} : memref<64x256xbf16, #tpu.memory_space<vmem>>, vector<8x128xbf16>,
    %243 = arith.truncf %239 : vector<8x128xf32> to vector<8x128xbf16>
    %244 = arith.index_cast %169 : i32 to index
    %c128_83 = arith.constant 128 : index
    %245 = vector.load %arg9[%244, %c128_83] : memref<64x256xbf16, #tpu.memory_space<vmem>>, vector<8x128xbf16>
    tpu.vector_store %arg9[%244, %c128_83], %243 {strides = array<i32>} : memref<64x256xbf16, #tpu.memory_space<vmem>>, vector<8x128xbf16>,
    %c3_i32 = arith.constant 3 : i32
    %c8_i32_84 = arith.constant 8 : i32
    %246 = arith.muli %c3_i32, %c8_i32_84 : i32
    %247 = tpu.assume_multiple %246, 8 : i32
    %248 = arith.index_cast %247 : i32 to index
    %c0_85 = arith.constant 0 : index
    %249 = vector.load %arg10[%248, %c0_85] : memref<64x768xf32, #tpu.memory_space<vmem>>, vector<8x768xf32>
    %250 = vector.extract_strided_slice %249 {offsets = [0, 0], sizes = [8, 256], strides = [1, 1]} : vector<8x768xf32> to vector<8x256xf32>
    %251 = arith.truncf %239 : vector<8x128xf32> to vector<8x128xbf16>
    %c0_86 = arith.constant 0 : index
    %c0_87 = arith.constant 0 : index
    %252 = vector.load %arg5[%c0_86, %c0_87] : memref<128x256xbf16, #tpu.memory_space<vmem>>, vector<128x256xbf16>
    %cst_88 = arith.constant dense<0.000000e+00> : vector<8x256xf32>
    %253 = tpu.matmul %251, %252, %cst_88 {dimension_numbers = #tpu.dot_dimension_numbers<[1], [0], [0], [1], [0, 0, 1, 1], [], []>} : vector<8x128xbf16>, vector<128x256xbf16>, vector<8x256xf32> -> vector<8x256xf32>
    %254 = arith.addf %250, %253 : vector<8x256xf32>
    %255 = vector.extract_strided_slice %254 {offsets = [0, 0], sizes = [8, 128], strides = [1, 1]} : vector<8x256xf32> to vector<8x128xf32>
    %256 = arith.negf %255 : vector<8x128xf32>
    %257 = math.exp %256 : vector<8x128xf32>
    %cst_89 = arith.constant 1.000000e+00 : f32
    %258 = vector.broadcast %cst_89 : f32 to vector<8x128xf32>
    %259 = arith.addf %258, %257 : vector<8x128xf32>
    %260 = arith.divf %258, %259 : vector<8x128xf32>
    %261 = vector.broadcast %cst_12 : f32 to vector<8x128xf32>
    %262 = arith.mulf %261, %260 : vector<8x128xf32>
    %cst_90 = arith.constant 1.000000e+00 : f32
    %263 = arith.subf %cst_90, %cst_12 : f32
    %264 = vector.broadcast %263 : f32 to vector<8x128xf32>
    %265 = arith.addf %262, %264 : vector<8x128xf32>
    %266 = vector.extract_strided_slice %254 {offsets = [0, 128], sizes = [8, 128], strides = [1, 1]} : vector<8x256xf32> to vector<8x128xf32>
    %267 = arith.negf %266 : vector<8x128xf32>
    %268 = math.exp %267 : vector<8x128xf32>
    %cst_91 = arith.constant 1.000000e+00 : f32
    %269 = vector.broadcast %cst_91 : f32 to vector<8x128xf32>
    %270 = arith.addf %269, %268 : vector<8x128xf32>
    %271 = arith.divf %269, %270 : vector<8x128xf32>
    %272 = vector.extract_strided_slice %249 {offsets = [0, 256], sizes = [8, 128], strides = [1, 1]} : vector<8x768xf32> to vector<8x128xf32>
    %273 = arith.mulf %271, %239 : vector<8x128xf32>
    %274 = arith.truncf %273 : vector<8x128xf32> to vector<8x128xbf16>
    %c0_92 = arith.constant 0 : index
    %c0_93 = arith.constant 0 : index
    %275 = vector.load %arg6[%c0_92, %c0_93] : memref<128x128xbf16, #tpu.memory_space<vmem>>, vector<128x128xbf16>
    %cst_94 = arith.constant dense<0.000000e+00> : vector<8x128xf32>
    %276 = tpu.matmul %274, %275, %cst_94 {dimension_numbers = #tpu.dot_dimension_numbers<[1], [0], [0], [1], [0, 0, 1, 1], [], []>} : vector<8x128xbf16>, vector<128x128xbf16>, vector<8x128xf32> -> vector<8x128xf32>
    %277 = arith.addf %272, %276 : vector<8x128xf32>
    %278 = math.tanh %277 : vector<8x128xf32>
    %279 = arith.mulf %265, %205 : vector<8x128xf32>
    %cst_95 = arith.constant 1.000000e+00 : f32
    %280 = vector.broadcast %cst_95 : f32 to vector<8x128xf32>
    %281 = arith.subf %280, %265 : vector<8x128xf32>
    %282 = arith.mulf %281, %278 : vector<8x128xf32>
    %283 = arith.addf %279, %282 : vector<8x128xf32>
    %284 = vector.extract_strided_slice %249 {offsets = [0, 384], sizes = [8, 256], strides = [1, 1]} : vector<8x768xf32> to vector<8x256xf32>
    %285 = arith.truncf %283 : vector<8x128xf32> to vector<8x128xbf16>
    %c0_96 = arith.constant 0 : index
    %c0_97 = arith.constant 0 : index
    %286 = vector.load %arg7[%c0_96, %c0_97] : memref<128x256xbf16, #tpu.memory_space<vmem>>, vector<128x256xbf16>
    %cst_98 = arith.constant dense<0.000000e+00> : vector<8x256xf32>
    %287 = tpu.matmul %285, %286, %cst_98 {dimension_numbers = #tpu.dot_dimension_numbers<[1], [0], [0], [1], [0, 0, 1, 1], [], []>} : vector<8x128xbf16>, vector<128x256xbf16>, vector<8x256xf32> -> vector<8x256xf32>
    %288 = arith.addf %284, %287 : vector<8x256xf32>
    %289 = vector.extract_strided_slice %288 {offsets = [0, 0], sizes = [8, 128], strides = [1, 1]} : vector<8x256xf32> to vector<8x128xf32>
    %290 = arith.negf %289 : vector<8x128xf32>
    %291 = math.exp %290 : vector<8x128xf32>
    %cst_99 = arith.constant 1.000000e+00 : f32
    %292 = vector.broadcast %cst_99 : f32 to vector<8x128xf32>
    %293 = arith.addf %292, %291 : vector<8x128xf32>
    %294 = arith.divf %292, %293 : vector<8x128xf32>
    %295 = vector.broadcast %cst_12 : f32 to vector<8x128xf32>
    %296 = arith.mulf %295, %294 : vector<8x128xf32>
    %cst_100 = arith.constant 1.000000e+00 : f32
    %297 = arith.subf %cst_100, %cst_12 : f32
    %298 = vector.broadcast %297 : f32 to vector<8x128xf32>
    %299 = arith.addf %296, %298 : vector<8x128xf32>
    %300 = vector.extract_strided_slice %288 {offsets = [0, 128], sizes = [8, 128], strides = [1, 1]} : vector<8x256xf32> to vector<8x128xf32>
    %301 = arith.negf %300 : vector<8x128xf32>
    %302 = math.exp %301 : vector<8x128xf32>
    %cst_101 = arith.constant 1.000000e+00 : f32
    %303 = vector.broadcast %cst_101 : f32 to vector<8x128xf32>
    %304 = arith.addf %303, %302 : vector<8x128xf32>
    %305 = arith.divf %303, %304 : vector<8x128xf32>
    %306 = vector.extract_strided_slice %249 {offsets = [0, 640], sizes = [8, 128], strides = [1, 1]} : vector<8x768xf32> to vector<8x128xf32>
    %307 = arith.mulf %305, %283 : vector<8x128xf32>
    %308 = arith.truncf %307 : vector<8x128xf32> to vector<8x128xbf16>
    %c0_102 = arith.constant 0 : index
    %c0_103 = arith.constant 0 : index
    %309 = vector.load %arg8[%c0_102, %c0_103] : memref<128x128xbf16, #tpu.memory_space<vmem>>, vector<128x128xbf16>
    %cst_104 = arith.constant dense<0.000000e+00> : vector<8x128xf32>
    %310 = tpu.matmul %308, %309, %cst_104 {dimension_numbers = #tpu.dot_dimension_numbers<[1], [0], [0], [1], [0, 0, 1, 1], [], []>} : vector<8x128xbf16>, vector<128x128xbf16>, vector<8x128xf32> -> vector<8x128xf32>
    %311 = arith.addf %306, %310 : vector<8x128xf32>
    %312 = math.tanh %311 : vector<8x128xf32>
    %313 = arith.mulf %299, %239 : vector<8x128xf32>
    %cst_105 = arith.constant 1.000000e+00 : f32
    %314 = vector.broadcast %cst_105 : f32 to vector<8x128xf32>
    %315 = arith.subf %314, %299 : vector<8x128xf32>
    %316 = arith.mulf %315, %312 : vector<8x128xf32>
    %317 = arith.addf %313, %316 : vector<8x128xf32>
    %318 = arith.truncf %283 : vector<8x128xf32> to vector<8x128xbf16>
    %319 = arith.index_cast %247 : i32 to index
    %c0_106 = arith.constant 0 : index
    %320 = vector.load %arg9[%319, %c0_106] : memref<64x256xbf16, #tpu.memory_space<vmem>>, vector<8x128xbf16>
    tpu.vector_store %arg9[%319, %c0_106], %318 {strides = array<i32>} : memref<64x256xbf16, #tpu.memory_space<vmem>>, vector<8x128xbf16>,
    %321 = arith.truncf %317 : vector<8x128xf32> to vector<8x128xbf16>
    %322 = arith.index_cast %247 : i32 to index
    %c128_107 = arith.constant 128 : index
    %323 = vector.load %arg9[%322, %c128_107] : memref<64x256xbf16, #tpu.memory_space<vmem>>, vector<8x128xbf16>
    tpu.vector_store %arg9[%322, %c128_107], %321 {strides = array<i32>} : memref<64x256xbf16, #tpu.memory_space<vmem>>, vector<8x128xbf16>,
    %c4_i32 = arith.constant 4 : i32
    %c8_i32_108 = arith.constant 8 : i32
    %324 = arith.muli %c4_i32, %c8_i32_108 : i32
    %325 = tpu.assume_multiple %324, 8 : i32
    %326 = arith.index_cast %325 : i32 to index
    %c0_109 = arith.constant 0 : index
    %327 = vector.load %arg10[%326, %c0_109] : memref<64x768xf32, #tpu.memory_space<vmem>>, vector<8x768xf32>
    %328 = vector.extract_strided_slice %327 {offsets = [0, 0], sizes = [8, 256], strides = [1, 1]} : vector<8x768xf32> to vector<8x256xf32>
    %329 = arith.truncf %317 : vector<8x128xf32> to vector<8x128xbf16>
    %c0_110 = arith.constant 0 : index
    %c0_111 = arith.constant 0 : index
    %330 = vector.load %arg5[%c0_110, %c0_111] : memref<128x256xbf16, #tpu.memory_space<vmem>>, vector<128x256xbf16>
    %cst_112 = arith.constant dense<0.000000e+00> : vector<8x256xf32>
    %331 = tpu.matmul %329, %330, %cst_112 {dimension_numbers = #tpu.dot_dimension_numbers<[1], [0], [0], [1], [0, 0, 1, 1], [], []>} : vector<8x128xbf16>, vector<128x256xbf16>, vector<8x256xf32> -> vector<8x256xf32>
    %332 = arith.addf %328, %331 : vector<8x256xf32>
    %333 = vector.extract_strided_slice %332 {offsets = [0, 0], sizes = [8, 128], strides = [1, 1]} : vector<8x256xf32> to vector<8x128xf32>
    %334 = arith.negf %333 : vector<8x128xf32>
    %335 = math.exp %334 : vector<8x128xf32>
    %cst_113 = arith.constant 1.000000e+00 : f32
    %336 = vector.broadcast %cst_113 : f32 to vector<8x128xf32>
    %337 = arith.addf %336, %335 : vector<8x128xf32>
    %338 = arith.divf %336, %337 : vector<8x128xf32>
    %339 = vector.broadcast %cst_12 : f32 to vector<8x128xf32>
    %340 = arith.mulf %339, %338 : vector<8x128xf32>
    %cst_114 = arith.constant 1.000000e+00 : f32
    %341 = arith.subf %cst_114, %cst_12 : f32
    %342 = vector.broadcast %341 : f32 to vector<8x128xf32>
    %343 = arith.addf %340, %342 : vector<8x128xf32>
    %344 = vector.extract_strided_slice %332 {offsets = [0, 128], sizes = [8, 128], strides = [1, 1]} : vector<8x256xf32> to vector<8x128xf32>
    %345 = arith.negf %344 : vector<8x128xf32>
    %346 = math.exp %345 : vector<8x128xf32>
    %cst_115 = arith.constant 1.000000e+00 : f32
    %347 = vector.broadcast %cst_115 : f32 to vector<8x128xf32>
    %348 = arith.addf %347, %346 : vector<8x128xf32>
    %349 = arith.divf %347, %348 : vector<8x128xf32>
    %350 = vector.extract_strided_slice %327 {offsets = [0, 256], sizes = [8, 128], strides = [1, 1]} : vector<8x768xf32> to vector<8x128xf32>
    %351 = arith.mulf %349, %317 : vector<8x128xf32>
    %352 = arith.truncf %351 : vector<8x128xf32> to vector<8x128xbf16>
    %c0_116 = arith.constant 0 : index
    %c0_117 = arith.constant 0 : index
    %353 = vector.load %arg6[%c0_116, %c0_117] : memref<128x128xbf16, #tpu.memory_space<vmem>>, vector<128x128xbf16>
    %cst_118 = arith.constant dense<0.000000e+00> : vector<8x128xf32>
    %354 = tpu.matmul %352, %353, %cst_118 {dimension_numbers = #tpu.dot_dimension_numbers<[1], [0], [0], [1], [0, 0, 1, 1], [], []>} : vector<8x128xbf16>, vector<128x128xbf16>, vector<8x128xf32> -> vector<8x128xf32>
    %355 = arith.addf %350, %354 : vector<8x128xf32>
    %356 = math.tanh %355 : vector<8x128xf32>
    %357 = arith.mulf %343, %283 : vector<8x128xf32>
    %cst_119 = arith.constant 1.000000e+00 : f32
    %358 = vector.broadcast %cst_119 : f32 to vector<8x128xf32>
    %359 = arith.subf %358, %343 : vector<8x128xf32>
    %360 = arith.mulf %359, %356 : vector<8x128xf32>
    %361 = arith.addf %357, %360 : vector<8x128xf32>
    %362 = vector.extract_strided_slice %327 {offsets = [0, 384], sizes = [8, 256], strides = [1, 1]} : vector<8x768xf32> to vector<8x256xf32>
    %363 = arith.truncf %361 : vector<8x128xf32> to vector<8x128xbf16>
    %c0_120 = arith.constant 0 : index
    %c0_121 = arith.constant 0 : index
    %364 = vector.load %arg7[%c0_120, %c0_121] : memref<128x256xbf16, #tpu.memory_space<vmem>>, vector<128x256xbf16>
    %cst_122 = arith.constant dense<0.000000e+00> : vector<8x256xf32>
    %365 = tpu.matmul %363, %364, %cst_122 {dimension_numbers = #tpu.dot_dimension_numbers<[1], [0], [0], [1], [0, 0, 1, 1], [], []>} : vector<8x128xbf16>, vector<128x256xbf16>, vector<8x256xf32> -> vector<8x256xf32>
    %366 = arith.addf %362, %365 : vector<8x256xf32>
    %367 = vector.extract_strided_slice %366 {offsets = [0, 0], sizes = [8, 128], strides = [1, 1]} : vector<8x256xf32> to vector<8x128xf32>
    %368 = arith.negf %367 : vector<8x128xf32>
    %369 = math.exp %368 : vector<8x128xf32>
    %cst_123 = arith.constant 1.000000e+00 : f32
    %370 = vector.broadcast %cst_123 : f32 to vector<8x128xf32>
    %371 = arith.addf %370, %369 : vector<8x128xf32>
    %372 = arith.divf %370, %371 : vector<8x128xf32>
    %373 = vector.broadcast %cst_12 : f32 to vector<8x128xf32>
    %374 = arith.mulf %373, %372 : vector<8x128xf32>
    %cst_124 = arith.constant 1.000000e+00 : f32
    %375 = arith.subf %cst_124, %cst_12 : f32
    %376 = vector.broadcast %375 : f32 to vector<8x128xf32>
    %377 = arith.addf %374, %376 : vector<8x128xf32>
    %378 = vector.extract_strided_slice %366 {offsets = [0, 128], sizes = [8, 128], strides = [1, 1]} : vector<8x256xf32> to vector<8x128xf32>
    %379 = arith.negf %378 : vector<8x128xf32>
    %380 = math.exp %379 : vector<8x128xf32>
    %cst_125 = arith.constant 1.000000e+00 : f32
    %381 = vector.broadcast %cst_125 : f32 to vector<8x128xf32>
    %382 = arith.addf %381, %380 : vector<8x128xf32>
    %383 = arith.divf %381, %382 : vector<8x128xf32>
    %384 = vector.extract_strided_slice %327 {offsets = [0, 640], sizes = [8, 128], strides = [1, 1]} : vector<8x768xf32> to vector<8x128xf32>
    %385 = arith.mulf %383, %361 : vector<8x128xf32>
    %386 = arith.truncf %385 : vector<8x128xf32> to vector<8x128xbf16>
    %c0_126 = arith.constant 0 : index
    %c0_127 = arith.constant 0 : index
    %387 = vector.load %arg8[%c0_126, %c0_127] : memref<128x128xbf16, #tpu.memory_space<vmem>>, vector<128x128xbf16>
    %cst_128 = arith.constant dense<0.000000e+00> : vector<8x128xf32>
    %388 = tpu.matmul %386, %387, %cst_128 {dimension_numbers = #tpu.dot_dimension_numbers<[1], [0], [0], [1], [0, 0, 1, 1], [], []>} : vector<8x128xbf16>, vector<128x128xbf16>, vector<8x128xf32> -> vector<8x128xf32>
    %389 = arith.addf %384, %388 : vector<8x128xf32>
    %390 = math.tanh %389 : vector<8x128xf32>
    %391 = arith.mulf %377, %317 : vector<8x128xf32>
    %cst_129 = arith.constant 1.000000e+00 : f32
    %392 = vector.broadcast %cst_129 : f32 to vector<8x128xf32>
    %393 = arith.subf %392, %377 : vector<8x128xf32>
    %394 = arith.mulf %393, %390 : vector<8x128xf32>
    %395 = arith.addf %391, %394 : vector<8x128xf32>
    %396 = arith.truncf %361 : vector<8x128xf32> to vector<8x128xbf16>
    %397 = arith.index_cast %325 : i32 to index
    %c0_130 = arith.constant 0 : index
    %398 = vector.load %arg9[%397, %c0_130] : memref<64x256xbf16, #tpu.memory_space<vmem>>, vector<8x128xbf16>
    tpu.vector_store %arg9[%397, %c0_130], %396 {strides = array<i32>} : memref<64x256xbf16, #tpu.memory_space<vmem>>, vector<8x128xbf16>,
    %399 = arith.truncf %395 : vector<8x128xf32> to vector<8x128xbf16>
    %400 = arith.index_cast %325 : i32 to index
    %c128_131 = arith.constant 128 : index
    %401 = vector.load %arg9[%400, %c128_131] : memref<64x256xbf16, #tpu.memory_space<vmem>>, vector<8x128xbf16>
    tpu.vector_store %arg9[%400, %c128_131], %399 {strides = array<i32>} : memref<64x256xbf16, #tpu.memory_space<vmem>>, vector<8x128xbf16>,
    %c5_i32 = arith.constant 5 : i32
    %c8_i32_132 = arith.constant 8 : i32
    %402 = arith.muli %c5_i32, %c8_i32_132 : i32
    %403 = tpu.assume_multiple %402, 8 : i32
    %404 = arith.index_cast %403 : i32 to index
    %c0_133 = arith.constant 0 : index
    %405 = vector.load %arg10[%404, %c0_133] : memref<64x768xf32, #tpu.memory_space<vmem>>, vector<8x768xf32>
    %406 = vector.extract_strided_slice %405 {offsets = [0, 0], sizes = [8, 256], strides = [1, 1]} : vector<8x768xf32> to vector<8x256xf32>
    %407 = arith.truncf %395 : vector<8x128xf32> to vector<8x128xbf16>
    %c0_134 = arith.constant 0 : index
    %c0_135 = arith.constant 0 : index
    %408 = vector.load %arg5[%c0_134, %c0_135] : memref<128x256xbf16, #tpu.memory_space<vmem>>, vector<128x256xbf16>
    %cst_136 = arith.constant dense<0.000000e+00> : vector<8x256xf32>
    %409 = tpu.matmul %407, %408, %cst_136 {dimension_numbers = #tpu.dot_dimension_numbers<[1], [0], [0], [1], [0, 0, 1, 1], [], []>} : vector<8x128xbf16>, vector<128x256xbf16>, vector<8x256xf32> -> vector<8x256xf32>
    %410 = arith.addf %406, %409 : vector<8x256xf32>
    %411 = vector.extract_strided_slice %410 {offsets = [0, 0], sizes = [8, 128], strides = [1, 1]} : vector<8x256xf32> to vector<8x128xf32>
    %412 = arith.negf %411 : vector<8x128xf32>
    %413 = math.exp %412 : vector<8x128xf32>
    %cst_137 = arith.constant 1.000000e+00 : f32
    %414 = vector.broadcast %cst_137 : f32 to vector<8x128xf32>
    %415 = arith.addf %414, %413 : vector<8x128xf32>
    %416 = arith.divf %414, %415 : vector<8x128xf32>
    %417 = vector.broadcast %cst_12 : f32 to vector<8x128xf32>
    %418 = arith.mulf %417, %416 : vector<8x128xf32>
    %cst_138 = arith.constant 1.000000e+00 : f32
    %419 = arith.subf %cst_138, %cst_12 : f32
    %420 = vector.broadcast %419 : f32 to vector<8x128xf32>
    %421 = arith.addf %418, %420 : vector<8x128xf32>
    %422 = vector.extract_strided_slice %410 {offsets = [0, 128], sizes = [8, 128], strides = [1, 1]} : vector<8x256xf32> to vector<8x128xf32>
    %423 = arith.negf %422 : vector<8x128xf32>
    %424 = math.exp %423 : vector<8x128xf32>
    %cst_139 = arith.constant 1.000000e+00 : f32
    %425 = vector.broadcast %cst_139 : f32 to vector<8x128xf32>
    %426 = arith.addf %425, %424 : vector<8x128xf32>
    %427 = arith.divf %425, %426 : vector<8x128xf32>
    %428 = vector.extract_strided_slice %405 {offsets = [0, 256], sizes = [8, 128], strides = [1, 1]} : vector<8x768xf32> to vector<8x128xf32>
    %429 = arith.mulf %427, %395 : vector<8x128xf32>
    %430 = arith.truncf %429 : vector<8x128xf32> to vector<8x128xbf16>
    %c0_140 = arith.constant 0 : index
    %c0_141 = arith.constant 0 : index
    %431 = vector.load %arg6[%c0_140, %c0_141] : memref<128x128xbf16, #tpu.memory_space<vmem>>, vector<128x128xbf16>
    %cst_142 = arith.constant dense<0.000000e+00> : vector<8x128xf32>
    %432 = tpu.matmul %430, %431, %cst_142 {dimension_numbers = #tpu.dot_dimension_numbers<[1], [0], [0], [1], [0, 0, 1, 1], [], []>} : vector<8x128xbf16>, vector<128x128xbf16>, vector<8x128xf32> -> vector<8x128xf32>
    %433 = arith.addf %428, %432 : vector<8x128xf32>
    %434 = math.tanh %433 : vector<8x128xf32>
    %435 = arith.mulf %421, %361 : vector<8x128xf32>
    %cst_143 = arith.constant 1.000000e+00 : f32
    %436 = vector.broadcast %cst_143 : f32 to vector<8x128xf32>
    %437 = arith.subf %436, %421 : vector<8x128xf32>
    %438 = arith.mulf %437, %434 : vector<8x128xf32>
    %439 = arith.addf %435, %438 : vector<8x128xf32>
    %440 = vector.extract_strided_slice %405 {offsets = [0, 384], sizes = [8, 256], strides = [1, 1]} : vector<8x768xf32> to vector<8x256xf32>
    %441 = arith.truncf %439 : vector<8x128xf32> to vector<8x128xbf16>
    %c0_144 = arith.constant 0 : index
    %c0_145 = arith.constant 0 : index
    %442 = vector.load %arg7[%c0_144, %c0_145] : memref<128x256xbf16, #tpu.memory_space<vmem>>, vector<128x256xbf16>
    %cst_146 = arith.constant dense<0.000000e+00> : vector<8x256xf32>
    %443 = tpu.matmul %441, %442, %cst_146 {dimension_numbers = #tpu.dot_dimension_numbers<[1], [0], [0], [1], [0, 0, 1, 1], [], []>} : vector<8x128xbf16>, vector<128x256xbf16>, vector<8x256xf32> -> vector<8x256xf32>
    %444 = arith.addf %440, %443 : vector<8x256xf32>
    %445 = vector.extract_strided_slice %444 {offsets = [0, 0], sizes = [8, 128], strides = [1, 1]} : vector<8x256xf32> to vector<8x128xf32>
    %446 = arith.negf %445 : vector<8x128xf32>
    %447 = math.exp %446 : vector<8x128xf32>
    %cst_147 = arith.constant 1.000000e+00 : f32
    %448 = vector.broadcast %cst_147 : f32 to vector<8x128xf32>
    %449 = arith.addf %448, %447 : vector<8x128xf32>
    %450 = arith.divf %448, %449 : vector<8x128xf32>
    %451 = vector.broadcast %cst_12 : f32 to vector<8x128xf32>
    %452 = arith.mulf %451, %450 : vector<8x128xf32>
    %cst_148 = arith.constant 1.000000e+00 : f32
    %453 = arith.subf %cst_148, %cst_12 : f32
    %454 = vector.broadcast %453 : f32 to vector<8x128xf32>
    %455 = arith.addf %452, %454 : vector<8x128xf32>
    %456 = vector.extract_strided_slice %444 {offsets = [0, 128], sizes = [8, 128], strides = [1, 1]} : vector<8x256xf32> to vector<8x128xf32>
    %457 = arith.negf %456 : vector<8x128xf32>
    %458 = math.exp %457 : vector<8x128xf32>
    %cst_149 = arith.constant 1.000000e+00 : f32
    %459 = vector.broadcast %cst_149 : f32 to vector<8x128xf32>
    %460 = arith.addf %459, %458 : vector<8x128xf32>
    %461 = arith.divf %459, %460 : vector<8x128xf32>
    %462 = vector.extract_strided_slice %405 {offsets = [0, 640], sizes = [8, 128], strides = [1, 1]} : vector<8x768xf32> to vector<8x128xf32>
    %463 = arith.mulf %461, %439 : vector<8x128xf32>
    %464 = arith.truncf %463 : vector<8x128xf32> to vector<8x128xbf16>
    %c0_150 = arith.constant 0 : index
    %c0_151 = arith.constant 0 : index
    %465 = vector.load %arg8[%c0_150, %c0_151] : memref<128x128xbf16, #tpu.memory_space<vmem>>, vector<128x128xbf16>
    %cst_152 = arith.constant dense<0.000000e+00> : vector<8x128xf32>
    %466 = tpu.matmul %464, %465, %cst_152 {dimension_numbers = #tpu.dot_dimension_numbers<[1], [0], [0], [1], [0, 0, 1, 1], [], []>} : vector<8x128xbf16>, vector<128x128xbf16>, vector<8x128xf32> -> vector<8x128xf32>
    %467 = arith.addf %462, %466 : vector<8x128xf32>
    %468 = math.tanh %467 : vector<8x128xf32>
    %469 = arith.mulf %455, %395 : vector<8x128xf32>
    %cst_153 = arith.constant 1.000000e+00 : f32
    %470 = vector.broadcast %cst_153 : f32 to vector<8x128xf32>
    %471 = arith.subf %470, %455 : vector<8x128xf32>
    %472 = arith.mulf %471, %468 : vector<8x128xf32>
    %473 = arith.addf %469, %472 : vector<8x128xf32>
    %474 = arith.truncf %439 : vector<8x128xf32> to vector<8x128xbf16>
    %475 = arith.index_cast %403 : i32 to index
    %c0_154 = arith.constant 0 : index
    %476 = vector.load %arg9[%475, %c0_154] : memref<64x256xbf16, #tpu.memory_space<vmem>>, vector<8x128xbf16>
    tpu.vector_store %arg9[%475, %c0_154], %474 {strides = array<i32>} : memref<64x256xbf16, #tpu.memory_space<vmem>>, vector<8x128xbf16>,
    %477 = arith.truncf %473 : vector<8x128xf32> to vector<8x128xbf16>
    %478 = arith.index_cast %403 : i32 to index
    %c128_155 = arith.constant 128 : index
    %479 = vector.load %arg9[%478, %c128_155] : memref<64x256xbf16, #tpu.memory_space<vmem>>, vector<8x128xbf16>
    tpu.vector_store %arg9[%478, %c128_155], %477 {strides = array<i32>} : memref<64x256xbf16, #tpu.memory_space<vmem>>, vector<8x128xbf16>,
    %c6_i32 = arith.constant 6 : i32
    %c8_i32_156 = arith.constant 8 : i32
    %480 = arith.muli %c6_i32, %c8_i32_156 : i32
    %481 = tpu.assume_multiple %480, 8 : i32
    %482 = arith.index_cast %481 : i32 to index
    %c0_157 = arith.constant 0 : index
    %483 = vector.load %arg10[%482, %c0_157] : memref<64x768xf32, #tpu.memory_space<vmem>>, vector<8x768xf32>
    %484 = vector.extract_strided_slice %483 {offsets = [0, 0], sizes = [8, 256], strides = [1, 1]} : vector<8x768xf32> to vector<8x256xf32>
    %485 = arith.truncf %473 : vector<8x128xf32> to vector<8x128xbf16>
    %c0_158 = arith.constant 0 : index
    %c0_159 = arith.constant 0 : index
    %486 = vector.load %arg5[%c0_158, %c0_159] : memref<128x256xbf16, #tpu.memory_space<vmem>>, vector<128x256xbf16>
    %cst_160 = arith.constant dense<0.000000e+00> : vector<8x256xf32>
    %487 = tpu.matmul %485, %486, %cst_160 {dimension_numbers = #tpu.dot_dimension_numbers<[1], [0], [0], [1], [0, 0, 1, 1], [], []>} : vector<8x128xbf16>, vector<128x256xbf16>, vector<8x256xf32> -> vector<8x256xf32>
    %488 = arith.addf %484, %487 : vector<8x256xf32>
    %489 = vector.extract_strided_slice %488 {offsets = [0, 0], sizes = [8, 128], strides = [1, 1]} : vector<8x256xf32> to vector<8x128xf32>
    %490 = arith.negf %489 : vector<8x128xf32>
    %491 = math.exp %490 : vector<8x128xf32>
    %cst_161 = arith.constant 1.000000e+00 : f32
    %492 = vector.broadcast %cst_161 : f32 to vector<8x128xf32>
    %493 = arith.addf %492, %491 : vector<8x128xf32>
    %494 = arith.divf %492, %493 : vector<8x128xf32>
    %495 = vector.broadcast %cst_12 : f32 to vector<8x128xf32>
    %496 = arith.mulf %495, %494 : vector<8x128xf32>
    %cst_162 = arith.constant 1.000000e+00 : f32
    %497 = arith.subf %cst_162, %cst_12 : f32
    %498 = vector.broadcast %497 : f32 to vector<8x128xf32>
    %499 = arith.addf %496, %498 : vector<8x128xf32>
    %500 = vector.extract_strided_slice %488 {offsets = [0, 128], sizes = [8, 128], strides = [1, 1]} : vector<8x256xf32> to vector<8x128xf32>
    %501 = arith.negf %500 : vector<8x128xf32>
    %502 = math.exp %501 : vector<8x128xf32>
    %cst_163 = arith.constant 1.000000e+00 : f32
    %503 = vector.broadcast %cst_163 : f32 to vector<8x128xf32>
    %504 = arith.addf %503, %502 : vector<8x128xf32>
    %505 = arith.divf %503, %504 : vector<8x128xf32>
    %506 = vector.extract_strided_slice %483 {offsets = [0, 256], sizes = [8, 128], strides = [1, 1]} : vector<8x768xf32> to vector<8x128xf32>
    %507 = arith.mulf %505, %473 : vector<8x128xf32>
    %508 = arith.truncf %507 : vector<8x128xf32> to vector<8x128xbf16>
    %c0_164 = arith.constant 0 : index
    %c0_165 = arith.constant 0 : index
    %509 = vector.load %arg6[%c0_164, %c0_165] : memref<128x128xbf16, #tpu.memory_space<vmem>>, vector<128x128xbf16>
    %cst_166 = arith.constant dense<0.000000e+00> : vector<8x128xf32>
    %510 = tpu.matmul %508, %509, %cst_166 {dimension_numbers = #tpu.dot_dimension_numbers<[1], [0], [0], [1], [0, 0, 1, 1], [], []>} : vector<8x128xbf16>, vector<128x128xbf16>, vector<8x128xf32> -> vector<8x128xf32>
    %511 = arith.addf %506, %510 : vector<8x128xf32>
    %512 = math.tanh %511 : vector<8x128xf32>
    %513 = arith.mulf %499, %439 : vector<8x128xf32>
    %cst_167 = arith.constant 1.000000e+00 : f32
    %514 = vector.broadcast %cst_167 : f32 to vector<8x128xf32>
    %515 = arith.subf %514, %499 : vector<8x128xf32>
    %516 = arith.mulf %515, %512 : vector<8x128xf32>
    %517 = arith.addf %513, %516 : vector<8x128xf32>
    %518 = vector.extract_strided_slice %483 {offsets = [0, 384], sizes = [8, 256], strides = [1, 1]} : vector<8x768xf32> to vector<8x256xf32>
    %519 = arith.truncf %517 : vector<8x128xf32> to vector<8x128xbf16>
    %c0_168 = arith.constant 0 : index
    %c0_169 = arith.constant 0 : index
    %520 = vector.load %arg7[%c0_168, %c0_169] : memref<128x256xbf16, #tpu.memory_space<vmem>>, vector<128x256xbf16>
    %cst_170 = arith.constant dense<0.000000e+00> : vector<8x256xf32>
    %521 = tpu.matmul %519, %520, %cst_170 {dimension_numbers = #tpu.dot_dimension_numbers<[1], [0], [0], [1], [0, 0, 1, 1], [], []>} : vector<8x128xbf16>, vector<128x256xbf16>, vector<8x256xf32> -> vector<8x256xf32>
    %522 = arith.addf %518, %521 : vector<8x256xf32>
    %523 = vector.extract_strided_slice %522 {offsets = [0, 0], sizes = [8, 128], strides = [1, 1]} : vector<8x256xf32> to vector<8x128xf32>
    %524 = arith.negf %523 : vector<8x128xf32>
    %525 = math.exp %524 : vector<8x128xf32>
    %cst_171 = arith.constant 1.000000e+00 : f32
    %526 = vector.broadcast %cst_171 : f32 to vector<8x128xf32>
    %527 = arith.addf %526, %525 : vector<8x128xf32>
    %528 = arith.divf %526, %527 : vector<8x128xf32>
    %529 = vector.broadcast %cst_12 : f32 to vector<8x128xf32>
    %530 = arith.mulf %529, %528 : vector<8x128xf32>
    %cst_172 = arith.constant 1.000000e+00 : f32
    %531 = arith.subf %cst_172, %cst_12 : f32
    %532 = vector.broadcast %531 : f32 to vector<8x128xf32>
    %533 = arith.addf %530, %532 : vector<8x128xf32>
    %534 = vector.extract_strided_slice %522 {offsets = [0, 128], sizes = [8, 128], strides = [1, 1]} : vector<8x256xf32> to vector<8x128xf32>
    %535 = arith.negf %534 : vector<8x128xf32>
    %536 = math.exp %535 : vector<8x128xf32>
    %cst_173 = arith.constant 1.000000e+00 : f32
    %537 = vector.broadcast %cst_173 : f32 to vector<8x128xf32>
    %538 = arith.addf %537, %536 : vector<8x128xf32>
    %539 = arith.divf %537, %538 : vector<8x128xf32>
    %540 = vector.extract_strided_slice %483 {offsets = [0, 640], sizes = [8, 128], strides = [1, 1]} : vector<8x768xf32> to vector<8x128xf32>
    %541 = arith.mulf %539, %517 : vector<8x128xf32>
    %542 = arith.truncf %541 : vector<8x128xf32> to vector<8x128xbf16>
    %c0_174 = arith.constant 0 : index
    %c0_175 = arith.constant 0 : index
    %543 = vector.load %arg8[%c0_174, %c0_175] : memref<128x128xbf16, #tpu.memory_space<vmem>>, vector<128x128xbf16>
    %cst_176 = arith.constant dense<0.000000e+00> : vector<8x128xf32>
    %544 = tpu.matmul %542, %543, %cst_176 {dimension_numbers = #tpu.dot_dimension_numbers<[1], [0], [0], [1], [0, 0, 1, 1], [], []>} : vector<8x128xbf16>, vector<128x128xbf16>, vector<8x128xf32> -> vector<8x128xf32>
    %545 = arith.addf %540, %544 : vector<8x128xf32>
    %546 = math.tanh %545 : vector<8x128xf32>
    %547 = arith.mulf %533, %473 : vector<8x128xf32>
    %cst_177 = arith.constant 1.000000e+00 : f32
    %548 = vector.broadcast %cst_177 : f32 to vector<8x128xf32>
    %549 = arith.subf %548, %533 : vector<8x128xf32>
    %550 = arith.mulf %549, %546 : vector<8x128xf32>
    %551 = arith.addf %547, %550 : vector<8x128xf32>
    %552 = arith.truncf %517 : vector<8x128xf32> to vector<8x128xbf16>
    %553 = arith.index_cast %481 : i32 to index
    %c0_178 = arith.constant 0 : index
    %554 = vector.load %arg9[%553, %c0_178] : memref<64x256xbf16, #tpu.memory_space<vmem>>, vector<8x128xbf16>
    tpu.vector_store %arg9[%553, %c0_178], %552 {strides = array<i32>} : memref<64x256xbf16, #tpu.memory_space<vmem>>, vector<8x128xbf16>,
    %555 = arith.truncf %551 : vector<8x128xf32> to vector<8x128xbf16>
    %556 = arith.index_cast %481 : i32 to index
    %c128_179 = arith.constant 128 : index
    %557 = vector.load %arg9[%556, %c128_179] : memref<64x256xbf16, #tpu.memory_space<vmem>>, vector<8x128xbf16>
    tpu.vector_store %arg9[%556, %c128_179], %555 {strides = array<i32>} : memref<64x256xbf16, #tpu.memory_space<vmem>>, vector<8x128xbf16>,
    %c7_i32 = arith.constant 7 : i32
    %c8_i32_180 = arith.constant 8 : i32
    %558 = arith.muli %c7_i32, %c8_i32_180 : i32
    %559 = tpu.assume_multiple %558, 8 : i32
    %560 = arith.index_cast %559 : i32 to index
    %c0_181 = arith.constant 0 : index
    %561 = vector.load %arg10[%560, %c0_181] : memref<64x768xf32, #tpu.memory_space<vmem>>, vector<8x768xf32>
    %562 = vector.extract_strided_slice %561 {offsets = [0, 0], sizes = [8, 256], strides = [1, 1]} : vector<8x768xf32> to vector<8x256xf32>
    %563 = arith.truncf %551 : vector<8x128xf32> to vector<8x128xbf16>
    %c0_182 = arith.constant 0 : index
    %c0_183 = arith.constant 0 : index
    %564 = vector.load %arg5[%c0_182, %c0_183] : memref<128x256xbf16, #tpu.memory_space<vmem>>, vector<128x256xbf16>
    %cst_184 = arith.constant dense<0.000000e+00> : vector<8x256xf32>
    %565 = tpu.matmul %563, %564, %cst_184 {dimension_numbers = #tpu.dot_dimension_numbers<[1], [0], [0], [1], [0, 0, 1, 1], [], []>} : vector<8x128xbf16>, vector<128x256xbf16>, vector<8x256xf32> -> vector<8x256xf32>
    %566 = arith.addf %562, %565 : vector<8x256xf32>
    %567 = vector.extract_strided_slice %566 {offsets = [0, 0], sizes = [8, 128], strides = [1, 1]} : vector<8x256xf32> to vector<8x128xf32>
    %568 = arith.negf %567 : vector<8x128xf32>
    %569 = math.exp %568 : vector<8x128xf32>
    %cst_185 = arith.constant 1.000000e+00 : f32
    %570 = vector.broadcast %cst_185 : f32 to vector<8x128xf32>
    %571 = arith.addf %570, %569 : vector<8x128xf32>
    %572 = arith.divf %570, %571 : vector<8x128xf32>
    %573 = vector.broadcast %cst_12 : f32 to vector<8x128xf32>
    %574 = arith.mulf %573, %572 : vector<8x128xf32>
    %cst_186 = arith.constant 1.000000e+00 : f32
    %575 = arith.subf %cst_186, %cst_12 : f32
    %576 = vector.broadcast %575 : f32 to vector<8x128xf32>
    %577 = arith.addf %574, %576 : vector<8x128xf32>
    %578 = vector.extract_strided_slice %566 {offsets = [0, 128], sizes = [8, 128], strides = [1, 1]} : vector<8x256xf32> to vector<8x128xf32>
    %579 = arith.negf %578 : vector<8x128xf32>
    %580 = math.exp %579 : vector<8x128xf32>
    %cst_187 = arith.constant 1.000000e+00 : f32
    %581 = vector.broadcast %cst_187 : f32 to vector<8x128xf32>
    %582 = arith.addf %581, %580 : vector<8x128xf32>
    %583 = arith.divf %581, %582 : vector<8x128xf32>
    %584 = vector.extract_strided_slice %561 {offsets = [0, 256], sizes = [8, 128], strides = [1, 1]} : vector<8x768xf32> to vector<8x128xf32>
    %585 = arith.mulf %583, %551 : vector<8x128xf32>
    %586 = arith.truncf %585 : vector<8x128xf32> to vector<8x128xbf16>
    %c0_188 = arith.constant 0 : index
    %c0_189 = arith.constant 0 : index
    %587 = vector.load %arg6[%c0_188, %c0_189] : memref<128x128xbf16, #tpu.memory_space<vmem>>, vector<128x128xbf16>
    %cst_190 = arith.constant dense<0.000000e+00> : vector<8x128xf32>
    %588 = tpu.matmul %586, %587, %cst_190 {dimension_numbers = #tpu.dot_dimension_numbers<[1], [0], [0], [1], [0, 0, 1, 1], [], []>} : vector<8x128xbf16>, vector<128x128xbf16>, vector<8x128xf32> -> vector<8x128xf32>
    %589 = arith.addf %584, %588 : vector<8x128xf32>
    %590 = math.tanh %589 : vector<8x128xf32>
    %591 = arith.mulf %577, %517 : vector<8x128xf32>
    %cst_191 = arith.constant 1.000000e+00 : f32
    %592 = vector.broadcast %cst_191 : f32 to vector<8x128xf32>
    %593 = arith.subf %592, %577 : vector<8x128xf32>
    %594 = arith.mulf %593, %590 : vector<8x128xf32>
    %595 = arith.addf %591, %594 : vector<8x128xf32>
    %596 = vector.extract_strided_slice %561 {offsets = [0, 384], sizes = [8, 256], strides = [1, 1]} : vector<8x768xf32> to vector<8x256xf32>
    %597 = arith.truncf %595 : vector<8x128xf32> to vector<8x128xbf16>
    %c0_192 = arith.constant 0 : index
    %c0_193 = arith.constant 0 : index
    %598 = vector.load %arg7[%c0_192, %c0_193] : memref<128x256xbf16, #tpu.memory_space<vmem>>, vector<128x256xbf16>
    %cst_194 = arith.constant dense<0.000000e+00> : vector<8x256xf32>
    %599 = tpu.matmul %597, %598, %cst_194 {dimension_numbers = #tpu.dot_dimension_numbers<[1], [0], [0], [1], [0, 0, 1, 1], [], []>} : vector<8x128xbf16>, vector<128x256xbf16>, vector<8x256xf32> -> vector<8x256xf32>
    %600 = arith.addf %596, %599 : vector<8x256xf32>
    %601 = vector.extract_strided_slice %600 {offsets = [0, 0], sizes = [8, 128], strides = [1, 1]} : vector<8x256xf32> to vector<8x128xf32>
    %602 = arith.negf %601 : vector<8x128xf32>
    %603 = math.exp %602 : vector<8x128xf32>
    %cst_195 = arith.constant 1.000000e+00 : f32
    %604 = vector.broadcast %cst_195 : f32 to vector<8x128xf32>
    %605 = arith.addf %604, %603 : vector<8x128xf32>
    %606 = arith.divf %604, %605 : vector<8x128xf32>
    %607 = vector.broadcast %cst_12 : f32 to vector<8x128xf32>
    %608 = arith.mulf %607, %606 : vector<8x128xf32>
    %cst_196 = arith.constant 1.000000e+00 : f32
    %609 = arith.subf %cst_196, %cst_12 : f32
    %610 = vector.broadcast %609 : f32 to vector<8x128xf32>
    %611 = arith.addf %608, %610 : vector<8x128xf32>
    %612 = vector.extract_strided_slice %600 {offsets = [0, 128], sizes = [8, 128], strides = [1, 1]} : vector<8x256xf32> to vector<8x128xf32>
    %613 = arith.negf %612 : vector<8x128xf32>
    %614 = math.exp %613 : vector<8x128xf32>
    %cst_197 = arith.constant 1.000000e+00 : f32
    %615 = vector.broadcast %cst_197 : f32 to vector<8x128xf32>
    %616 = arith.addf %615, %614 : vector<8x128xf32>
    %617 = arith.divf %615, %616 : vector<8x128xf32>
    %618 = vector.extract_strided_slice %561 {offsets = [0, 640], sizes = [8, 128], strides = [1, 1]} : vector<8x768xf32> to vector<8x128xf32>
    %619 = arith.mulf %617, %595 : vector<8x128xf32>
    %620 = arith.truncf %619 : vector<8x128xf32> to vector<8x128xbf16>
    %c0_198 = arith.constant 0 : index
    %c0_199 = arith.constant 0 : index
    %621 = vector.load %arg8[%c0_198, %c0_199] : memref<128x128xbf16, #tpu.memory_space<vmem>>, vector<128x128xbf16>
    %cst_200 = arith.constant dense<0.000000e+00> : vector<8x128xf32>
    %622 = tpu.matmul %620, %621, %cst_200 {dimension_numbers = #tpu.dot_dimension_numbers<[1], [0], [0], [1], [0, 0, 1, 1], [], []>} : vector<8x128xbf16>, vector<128x128xbf16>, vector<8x128xf32> -> vector<8x128xf32>
    %623 = arith.addf %618, %622 : vector<8x128xf32>
    %624 = math.tanh %623 : vector<8x128xf32>
    %625 = arith.mulf %611, %551 : vector<8x128xf32>
    %cst_201 = arith.constant 1.000000e+00 : f32
    %626 = vector.broadcast %cst_201 : f32 to vector<8x128xf32>
    %627 = arith.subf %626, %611 : vector<8x128xf32>
    %628 = arith.mulf %627, %624 : vector<8x128xf32>
    %629 = arith.addf %625, %628 : vector<8x128xf32>
    %630 = arith.truncf %595 : vector<8x128xf32> to vector<8x128xbf16>
    %631 = arith.index_cast %559 : i32 to index
    %c0_202 = arith.constant 0 : index
    %632 = vector.load %arg9[%631, %c0_202] : memref<64x256xbf16, #tpu.memory_space<vmem>>, vector<8x128xbf16>
    tpu.vector_store %arg9[%631, %c0_202], %630 {strides = array<i32>} : memref<64x256xbf16, #tpu.memory_space<vmem>>, vector<8x128xbf16>,
    %633 = arith.truncf %629 : vector<8x128xf32> to vector<8x128xbf16>
    %634 = arith.index_cast %559 : i32 to index
    %c128_203 = arith.constant 128 : index
    %635 = vector.load %arg9[%634, %c128_203] : memref<64x256xbf16, #tpu.memory_space<vmem>>, vector<8x128xbf16>
    tpu.vector_store %arg9[%634, %c128_203], %633 {strides = array<i32>} : memref<64x256xbf16, #tpu.memory_space<vmem>>, vector<8x128xbf16>,
    %c8_i32_204 = arith.constant 8 : i32
    %c0_205 = arith.constant 0 : index
    %c0_206 = arith.constant 0 : index
    %636 = vector.load %arg11[%c0_205, %c0_206] : memref<8x128xf32, #tpu.memory_space<vmem>>, vector<8x128xf32>
    tpu.vector_store %arg11[%c0_205, %c0_206], %595 {strides = array<i32>} : memref<8x128xf32, #tpu.memory_space<vmem>>, vector<8x128xf32>,
    %c0_207 = arith.constant 0 : index
    %c0_208 = arith.constant 0 : index
    %637 = vector.load %arg12[%c0_207, %c0_208] : memref<8x128xf32, #tpu.memory_space<vmem>>, vector<8x128xf32>
    tpu.vector_store %arg12[%c0_207, %c0_208], %629 {strides = array<i32>} : memref<8x128xf32, #tpu.memory_space<vmem>>, vector<8x128xf32>,
    return
  }
  func.func @transform_0(%arg0: i32) -> (i32, i32) {
    %c0_i32 = arith.constant 0 : i32
    %c0_i32_0 = arith.constant 0 : i32
    %c0_i32_1 = arith.constant 0 : i32
    return %c0_i32, %c0_i32_0 : i32, i32
  }
  func.func @transform_1(%arg0: i32) -> (i32, i32) {
    %c0_i32 = arith.constant 0 : i32
    %c0_i32_0 = arith.constant 0 : i32
    return %arg0, %c0_i32 : i32, i32
  }
  func.func @transform_2(%arg0: i32) -> (i32, i32) {
    %c0_i32 = arith.constant 0 : i32
    %c0_i32_0 = arith.constant 0 : i32
    %c0_i32_1 = arith.constant 0 : i32
    return %c0_i32, %c0_i32_0 : i32, i32
  }
  func.func @transform_3(%arg0: i32) -> (i32, i32) {
    %c0_i32 = arith.constant 0 : i32
    %c0_i32_0 = arith.constant 0 : i32
    %c0_i32_1 = arith.constant 0 : i32
    return %c0_i32, %c0_i32_0 : i32, i32
  }
  func.func @transform_4(%arg0: i32) -> (i32, i32) {
    %c0_i32 = arith.constant 0 : i32
    %c0_i32_0 = arith.constant 0 : i32
    %c0_i32_1 = arith.constant 0 : i32
    return %c0_i32, %c0_i32_0 : i32, i32
  }
  func.func @transform_5(%arg0: i32) -> (i32, i32) {
    %c0_i32 = arith.constant 0 : i32
    %c0_i32_0 = arith.constant 0 : i32
    %c0_i32_1 = arith.constant 0 : i32
    return %c0_i32, %c0_i32_0 : i32, i32
  }
  func.func @transform_6(%arg0: i32) -> (i32, i32) {
    %c0_i32 = arith.constant 0 : i32
    %c0_i32_0 = arith.constant 0 : i32
    %c0_i32_1 = arith.constant 0 : i32
    return %c0_i32, %c0_i32_0 : i32, i32
  }
  func.func @transform_7(%arg0: i32) -> (i32, i32) {
    %c0_i32 = arith.constant 0 : i32
    %c0_i32_0 = arith.constant 0 : i32
    %c0_i32_1 = arith.constant 0 : i32
    return %c0_i32, %c0_i32_0 : i32, i32
  }
  func.func @transform_8(%arg0: i32) -> (i32, i32) {
    %c0_i32 = arith.constant 0 : i32
    %c0_i32_0 = arith.constant 0 : i32
    return %arg0, %c0_i32 : i32, i32
  }
}

</mosaic_0001>

<bundles_post_ra>
// kernel: tpu_custom_call.1
= control target key start
LH: loop header
LB: loop body
LE: loop exit
PB: predicated region body
PF: predicated region fallthrough
CT: control target
= control target key end

     0   :  { %13 = vsyncpa [#allocation6], 0  ;;  %s7981_s0 = inlined_call_operand.hbm [shape: f32[8,256], index: 0, kind: input, shape index: {}]   ;;  %s7982_s1 = inlined_call_operand.hbm [shape: bf16[64,128], index: 1, kind: input, shape index: {}]   ;;  %s7983_s2 = inlined_call_operand.hbm [shape: bf16[128,768], index: 2, kind: input, shape index: {}]   ;;  %s7984_s3 = inlined_call_operand.hbm [shape: f32[1,768], index: 3, kind: input, shape index: {}]   ;;  %s7985_s4 = inlined_call_operand.hbm [shape: bf16[128,256], index: 4, kind: input, shape index: {}]   ;;  %s7986_s5 = inlined_call_operand.hbm [shape: bf16[128,128], index: 5, kind: input, shape index: {}]   ;;  %s7987_s6 = inlined_call_operand.hbm [shape: bf16[128,256], index: 6, kind: input, shape index: {}]   ;;  %s7988_s7 = inlined_call_operand.hbm [shape: bf16[128,128], index: 7, kind: input, shape index: {}]   ;;  %s7989_s8 = inlined_call_operand.hbm [shape: bf16[64,256], index: 8, kind: output, shape index: {}]  }
   0x1   :  { %14 = vsyncpa [#allocation9], 0 }
   0x2   :  { %15 = vsyncpa [#allocation12], 0 }
   0x3   :  { %16 = vsyncpa [#allocation15], 0 }
   0x4   :  { %17 = vsyncpa [#allocation18], 0  ;;  %s34_s29 = sshll.u32 %s7982_s1, 4  ;;  %s35_s29 = int_to_ptr.hbm [resolvable:$true] %s34_s29 }
   0x5   :  { %18 = vsyncpa [#allocation7], 0  ;;  %s7524_s30 = smov [#allocation8]   ;;  %s61_s12 = sshll.u32 %s7984_s3, 4  ;;  %s62_s12 = int_to_ptr.hbm [resolvable:$true] %s61_s12 }
   0x6   :  { %s36_s9 = sshll.u32 %s7524_s30, 4  ;;  %s7525_s13 = smov 64   ;;  %s37_s9 = int_to_ptr.vmem [resolvable:$true] %s36_s9 }
   0x7   :  { %s7526_s14 = smov 4   ;;  %s7527_s15 = smov [#allocation11]  }
   0x8   :  { %42 = dma.hbm_to_vmem [thread:$0]  %s35_s29, 512, %s37_s9, [#allocation9], %s7525_s13, %s7525_s13, %s7526_s14  }
   0x9   :  { %s63_s16 = sshll.u32 %s7527_s15, 4  ;;  %s84_s18 = sshll.u32 %s7986_s5, 4  ;;  %s64_s16 = int_to_ptr.vmem [resolvable:$true] %s63_s16  ;;  %s85_s18 = int_to_ptr.hbm [resolvable:$true] %s84_s18 }
   0xa   :  { %66 = dma.hbm_to_vmem [thread:$0]  %s62_s12, 96, %s64_s16, [#allocation12]  }
   0xb   :  { %s24_s3 = sshll.u32 %s7981_s0, 4  ;;  %s7528_s21 = smov [#allocation14]   ;;  %s25_s3 = int_to_ptr.hbm [resolvable:$true] %s24_s3 }
   0xc   :  { %s86_s22 = sshll.u32 %s7528_s21, 4  ;;  %s7529_s23 = smov [#allocation5]   ;;  %s87_s22 = int_to_ptr.vmem [resolvable:$true] %s86_s22 }
   0xd   :  { %92 = dma.hbm_to_vmem [thread:$0]  %s85_s18, 1024, %s87_s22, [#allocation15], %s7525_s13, %s7525_s13, %s7526_s14  }
   0xe   :  { %s26_s24 = sshll.u32 %s7529_s23, 4  ;;  %s47_s5 = sshll.u32 %s7983_s2, 4  ;;  %s27_s24 = int_to_ptr.vmem [resolvable:$true] %s26_s24  ;;  %s48_s5 = int_to_ptr.hbm [resolvable:$true] %s47_s5 }
   0xf   :  { %29 = dma.hbm_to_vmem [thread:$0]  %s25_s3, 256, %s27_s24, [#allocation6]  }
  0x10   :  { %s7530_s27 = smov [#allocation10]   ;;  %s71_s30 = sshll.u32 %s7985_s4, 4  ;;  %s72_s30 = int_to_ptr.hbm [resolvable:$true] %s71_s30 }
  0x11   :  { %s49_s28 = sshll.u32 %s7530_s27, 4  ;;  %s7531_s9 = smov 384   ;;  %s50_s28 = int_to_ptr.vmem [resolvable:$true] %s49_s28 }
  0x12   :  { %s7532_s10 = smov 24   ;;  %s7533_s11 = smov [#allocation13]  }
  0x13   :  { %55 = dma.hbm_to_vmem [thread:$0]  %s48_s5, 6144, %s50_s28, [#allocation9], %s7531_s9, %s7531_s9, %s7532_s10  }
  0x14   :  { %s73_s12 = sshll.u32 %s7533_s11, 4  ;;  %s7534_s15 = smov 128   ;;  %s74_s12 = int_to_ptr.vmem [resolvable:$true] %s73_s12 }
  0x15   :  { %s7535_s16 = smov 8   ;;  %s97_s1 = sshll.u32 %s7987_s6, 4  ;;  %s98_s1 = int_to_ptr.hbm [resolvable:$true] %s97_s1 }
  0x16   :  { %79 = dma.hbm_to_vmem [thread:$0]  %s72_s30, 2048, %s74_s12, [#allocation12], %s7534_s15, %s7534_s15, %s7535_s16  }
  0x17   :  { %s7536_s18 = smov [#allocation16]   ;;  %s110_s3 = sshll.u32 %s7988_s7, 4  ;;  %s111_s3 = int_to_ptr.hbm [resolvable:$true] %s110_s3 }
  0x18   :  { %s99_s4 = sshll.u32 %s7536_s18, 4  ;;  %s7537_s21 = smov [#allocation17]   ;;  %s100_s4 = int_to_ptr.vmem [resolvable:$true] %s99_s4 }
  0x19   :  { %105 = dma.hbm_to_vmem [thread:$0]  %s98_s1, 2048, %s100_s4, [#allocation15], %s7534_s15, %s7534_s15, %s7535_s16  }
  0x1a   :  { %s112_s22 = sshll.u32 %s7537_s21, 4  ;;  %s113_s22 = int_to_ptr.vmem [resolvable:$true] %s112_s22 }
  0x1b   :  { %118 = dma.hbm_to_vmem [thread:$0]  %s111_s3, 1024, %s113_s22, [#allocation18], %s7525_s13, %s7525_s13, %s7526_s14  }
  0x1c   :  { %7512 = dma.done.wait [#allocation6], 256  }
  0x1d   :  { %7513 = vsyncadd [#allocation6], 4294967040 }
  0x1e   :  { %7514 = dma.done.wait [#allocation9], 6656  }
  0x1f   :  { %7515 = vsyncadd [#allocation9], 4294960640 }
  0x20   :  { %7516 = dma.done.wait [#allocation12], 2144  }
  0x21   :  { %7517 = vsyncadd [#allocation12], 4294965152 }
  0x22   :  { %7518 = dma.done.wait [#allocation15], 3072  }
  0x23   :  { %7519 = vsyncadd [#allocation15], 4294964224 }
  0x24   :  { %7520 = dma.done.wait [#allocation18], 1024  }
  0x25   :  { %7521 = vsyncadd [#allocation18], 4294966272  ;;  %v6692_v0 = vld [vmem:[#allocation10 + $0x15c] sm:$0xf]  ;;  %v5065_v1 = vld [vmem:[#allocation10 + $0x170] sm:$0xf0] }
  0x26   :  { %v6686_v2 = vld [vmem:[#allocation10 + $0x12c] sm:$0xf]  ;;  %v5068_v3 = vor.u32 %v6692_v0, %v5065_v1  ;;  %v5041_v4 = vld [vmem:[#allocation10 + $0x140] sm:$0xf0]  ;;  %v6680_v6 = vld [vmem:[#allocation10 + $0xfc] sm:$0xf] }
  0x27   :  { %v5044_v5 = vor.u32 %v6686_v2, %v5041_v4  ;;  %v5017_v7 = vld [vmem:[#allocation10 + $0x110] sm:$0xf0]  ;;  %v6674_v9 = vld [vmem:[#allocation10 + $0xcc] sm:$0xf]  ;;  %v4993_v10 = vld [vmem:[#allocation10 + $0xe0] sm:$0xf0] }
  0x28   :  { %580 = vmatpush.bf16.msra.mxu3 %v5068_v3  ;;  %v5020_v8 = vor.u32 %v6680_v6, %v5017_v7  ;;  %v4996_v11 = vor.u32 %v6674_v9, %v4993_v10  ;;  %v6668_v12 = vld [vmem:[#allocation10 + $0x9c] sm:$0xf]  ;;  %v4969_v13 = vld [vmem:[#allocation10 + $0xb0] sm:$0xf0]  ;;  %v6662_v15 = vld [vmem:[#allocation10 + $0x6c] sm:$0xf] }
  0x29   :  { %v4972_v14 = vor.u32 %v6668_v12, %v4969_v13  ;;  %v4945_v16 = vld [vmem:[#allocation10 + $0x80] sm:$0xf0]  ;;  %v6691_v18 = vld [vmem:[#allocation10 + $0x154] sm:$0xf]  ;;  %v5057_v19 = vld [vmem:[#allocation10 + $0x168] sm:$0xf0] }
  0x2a   :  { %v4948_v17 = vor.u32 %v6662_v15, %v4945_v16  ;;  %v6656_v20 = vld [vmem:[#allocation10 + $0x3c] sm:$0xf]  ;;  %v4921_v21 = vld [vmem:[#allocation10 + $0x50] sm:$0xf0]  ;;  %v5060_v22 = vor.u32 %v6691_v18, %v5057_v19  ;;  %v6650_v24 = vld [vmem:[#allocation10 + $0xc] sm:$0xf] }
  0x2b   :  { %v4924_v23 = vor.u32 %v6656_v20, %v4921_v21  ;;  %v4897_v25 = vld [vmem:[#allocation10 + $0x20] sm:$0xf0]  ;;  %v6711_v26 = vld [vmem:[#allocation13 + $0x74] sm:$0xf]  ;;  %v6709_v30 = vld [vmem:[#allocation13 + $0x64] sm:$0xf] }
  0x2c   :  { %581 = vmatpush.bf16.msra.mxu3 %v5044_v5  ;;  %522 = vmatpush.bf16.msra.mxu1 %v5060_v22  ;;  %v5137_v27 = vld [vmem:[#allocation13 + $0x78] sm:$0xf0]  ;;  %v4900_v28 = vor.u32 %v6650_v24, %v4897_v25  ;;  %v5129_v31 = vld [vmem:[#allocation13 + $0x68] sm:$0xf0]  ;;  %v5033_v35 = vld [vmem:[#allocation10 + $0x138] sm:$0xf0] }
  0x2d   :  { %v5140_v29 = vor.u32 %v6711_v26, %v5137_v27  ;;  %v7623_v32 = vld [vmem:[#allocation8] sm:$0xff]  ;;  %v5132_v33 = vor.u32 %v6709_v30, %v5129_v31  ;;  %v6707_v36 = vld [vmem:[#allocation13 + $0x54] sm:$0xf]  ;;  %v6679_v39 = vld [vmem:[#allocation10 + $0xf4] sm:$0xf]  ;;  %s7538_s6 = smov [#allocation19]  }
  0x2e   :  { %v6685_v34 = vld [vmem:[#allocation10 + $0x124] sm:$0xf]  ;;  %v5009_v40 = vld [vmem:[#allocation10 + $0x108] sm:$0xf0]  ;;  %v4985_v44 = vld [vmem:[#allocation10 + $0xd8] sm:$0xf0] }
  0x2f   :  { %v5121_v37 = vld [vmem:[#allocation13 + $0x58] sm:$0xf0]  ;;  %v5036_v38 = vor.u32 %v6685_v34, %v5033_v35  ;;  %v5012_v42 = vor.u32 %v6679_v39, %v5009_v40  ;;  %v6705_v45 = vld [vmem:[#allocation13 + $0x44] sm:$0xf]  ;;  %v5113_v46 = vld [vmem:[#allocation13 + $0x48] sm:$0xf0] }
  0x30   :  { %582 = vmatpush.bf16.msra.mxu3 %v5020_v8  ;;  %v5124_v41 = vor.u32 %v6707_v36, %v5121_v37  ;;  %v6673_v43 = vld [vmem:[#allocation10 + $0xc4] sm:$0xf]  ;;  %v5116_v48 = vor.u32 %v6705_v45, %v5113_v46  ;;  %v6667_v49 = vld [vmem:[#allocation10 + $0x94] sm:$0xf]  ;;  %v4961_v50 = vld [vmem:[#allocation10 + $0xa8] sm:$0xf0] }
  0x31   :  { %523 = vmatpush.bf16.msra.mxu1 %v5036_v38  ;;  %v4988_v47 = vor.u32 %v6673_v43, %v4985_v44  ;;  %v6703_v51 = vld [vmem:[#allocation13 + $0x34] sm:$0xf]  ;;  %v5105_v52 = vld [vmem:[#allocation13 + $0x38] sm:$0xf0]  ;;  %v4964_v53 = vor.u32 %v6667_v49, %v4961_v50  ;;  %v6701_v55 = vld [vmem:[#allocation13 + $0x24] sm:$0xf] }
  0x32   :  { %v5108_v54 = vor.u32 %v6703_v51, %v5105_v52  ;;  %v5097_v56 = vld [vmem:[#allocation13 + $0x28] sm:$0xf0]  ;;  %v7626_v57 = vld [vmem:[#allocation8 + $0x8] sm:$0xff]  ;;  %v6661_v59 = vld [vmem:[#allocation10 + $0x64] sm:$0xf]  ;;  %s4836_s7 = sshll.u32 %s7538_s6, 4  ;;  %s4837_s7 = int_to_ptr.vmem [resolvable:$true] %s4836_s7 }
  0x33   :  { %v5100_v58 = vor.u32 %v6701_v55, %v5097_v56  ;;  %v4937_v60 = vld [vmem:[#allocation10 + $0x78] sm:$0xf0]  ;;  %v5089_v63 = vld [vmem:[#allocation13 + $0x18] sm:$0xf0]  ;;  %v6655_v0 = vld [vmem:[#allocation10 + $0x34] sm:$0xf] }
  0x34   :  { %583 = vmatpush.bf16.msra.mxu3 %v4996_v11  ;;  %v4940_v61 = vor.u32 %v6661_v59, %v4937_v60  ;;  %v6699_v62 = vld [vmem:[#allocation13 + $0x14] sm:$0xf]  ;;  %v4913_v1 = vld [vmem:[#allocation10 + $0x48] sm:$0xf0]  ;;  %v6649_v4 = vld [vmem:[#allocation10 + $0x4] sm:$0xf] }
  0x35   :  { %524 = vmatpush.bf16.msra.mxu1 %v5012_v42  ;;  %v5092_v2 = vor.u32 %v6699_v62, %v5089_v63  ;;  %v4916_v3 = vor.u32 %v6655_v0, %v4913_v1  ;;  %v4889_v5 = vld [vmem:[#allocation10 + $0x18] sm:$0xf0]  ;;  %v6697_v6 = vld [vmem:[#allocation13 + $0x4] sm:$0xf]  ;;  %v5081_v7 = vld [vmem:[#allocation13 + $0x8] sm:$0xf0] }
  0x36   :  { %v4892_v8 = vor.u32 %v6649_v4, %v4889_v5  ;;  %v5084_v9 = vor.u32 %v6697_v6, %v5081_v7  ;;  %v7629_v10 = vld [vmem:[#allocation8 + $0x10] sm:$0xff]  ;;  %v5063_v11 = vld [vmem:[#allocation10 + $0x158] sm:$0xf]  ;;  %v5039_v13 = vld [vmem:[#allocation10 + $0x128] sm:$0xf]  ;;  %s4838_s23 = sshll.u32 %s7989_s8, 4  ;;  %s4839_s23 = int_to_ptr.hbm [resolvable:$true] %s4838_s23 }
  0x37   :  { %v6695_v12 = vld [vmem:[#allocation10 + $0x16c] sm:$0xf0]  ;;  %v6689_v15 = vld [vmem:[#allocation10 + $0x13c] sm:$0xf0]  ;;  %v4991_v20 = vld [vmem:[#allocation10 + $0xc8] sm:$0xf] }
  0x38   :  { %584 = vmatpush.bf16.msra.mxu3 %v4972_v14  ;;  %v5064_v14 = vor.u32 %v6695_v12, %v5063_v11  ;;  %v5040_v16 = vor.u32 %v6689_v15, %v5039_v13  ;;  %v6683_v18 = vld [vmem:[#allocation10 + $0x10c] sm:$0xf0]  ;;  %v6677_v21 = vld [vmem:[#allocation10 + $0xdc] sm:$0xf0]  ;;  %v4967_v24 = vld [vmem:[#allocation10 + $0x98] sm:$0xf] }
  0x39   :  { %525 = vmatpush.bf16.msra.mxu1 %v4988_v47  ;;  %v4992_v22 = vor.u32 %v6677_v21, %v4991_v20  ;;  %v6671_v25 = vld [vmem:[#allocation10 + $0xac] sm:$0xf0]  ;;  %v4943_v27 = vld [vmem:[#allocation10 + $0x68] sm:$0xf]  ;;  %v4919_v30 = vld [vmem:[#allocation10 + $0x38] sm:$0xf] }
  0x3a   :  { %551 = vmatpush.bf16.msra.mxu2 %v5064_v14  ;;  %v4968_v26 = vor.u32 %v6671_v25, %v4967_v24  ;;  %v6659_v31 = vld [vmem:[#allocation10 + $0x4c] sm:$0xf0]  ;;  %v4895_v34 = vld [vmem:[#allocation10 + $0x8] sm:$0xf]  ;;  %v6653_v35 = vld [vmem:[#allocation10 + $0x1c] sm:$0xf0] }
  0x3b   :  { %v7637_v36 = vld [vmem:[#allocation5 + $0x8] sm:$0xff]  ;;  %v4896_v37 = vor.u32 %v6653_v35, %v4895_v34  ;;  %v5127_v42 = vld [vmem:[#allocation13 + $0x60] sm:$0xf]  ;;  %v6710_v43 = vld [vmem:[#allocation13 + $0x64] sm:$0xf0] }
  0x3c   :  { %585 = vmatpush.bf16.msra.mxu3 %v4948_v17  ;;  %v5015_v17 = vld [vmem:[#allocation10 + $0xf8] sm:$0xf]  ;;  %v7641_v38 = vpack.c.bf16 %v7637_v36, %v7637_v36  ;;  %v6712_v40 = vld [vmem:[#allocation13 + $0x74] sm:$0xf0]  ;;  %v5128_v44 = vor.u32 %v6710_v43, %v5127_v42  ;;  %v5055_v47 = vld [vmem:[#allocation10 + $0x150] sm:$0xf] }
  0x3d   :  { %526 = vmatpush.bf16.msra.mxu1 %v4964_v53  ;;  %v5016_v19 = vor.u32 %v6683_v18, %v5015_v17  ;;  %v5135_v39 = vld [vmem:[#allocation13 + $0x70] sm:$0xf]  ;;  %v6708_v46 = vld [vmem:[#allocation13 + $0x54] sm:$0xf0]  ;;  %v6694_v49 = vld [vmem:[#allocation10 + $0x164] sm:$0xf0] }
  0x3e   :  { %552 = vmatpush.bf16.msra.mxu2 %v5040_v16  ;;  %v5119_v45 = vld [vmem:[#allocation13 + $0x50] sm:$0xf]  ;;  %v5056_v50 = vor.u32 %v6694_v49, %v5055_v47  ;;  %v5111_v52 = vld [vmem:[#allocation13 + $0x40] sm:$0xf]  ;;  %v6706_v53 = vld [vmem:[#allocation13 + $0x44] sm:$0xf0] }
  0x3f   :  { %v5112_v55 = vor.u32 %v6706_v53, %v5111_v52  ;;  %v6688_v56 = vld [vmem:[#allocation10 + $0x134] sm:$0xf0]  ;;  %v6682_v59 = vld [vmem:[#allocation10 + $0x104] sm:$0xf0]  ;;  %v6704_v0 = vld [vmem:[#allocation13 + $0x34] sm:$0xf0] }
  0x40   :  { %586 = vmatpush.bf16.msra.mxu3 %v4924_v23  ;;  %v7633_v23 = vld [vmem:[#allocation8 + $0x18] sm:$0xff]  ;;  %493 = vmatpush.bf16.msra.mxu0 %v5056_v50  ;;  %v4983_v1 = vld [vmem:[#allocation10 + $0xc0] sm:$0xf]  ;;  %v4959_v4 = vld [vmem:[#allocation10 + $0x90] sm:$0xf] }
  0x41   :  { %527 = vmatpush.bf16.msra.mxu1 %v4940_v61  ;;  %v5103_v63 = vld [vmem:[#allocation13 + $0x30] sm:$0xf]  ;;  %v6670_v5 = vld [vmem:[#allocation10 + $0xa4] sm:$0xf0]  ;;  %v7654_v7 = vld [vmem:[#allocation11] sm:$0x3f] }
  0x42   :  { %553 = vmatpush.bf16.msra.mxu2 %v5016_v19  ;;  %v6702_v11 = vld [vmem:[#allocation13 + $0x24] sm:$0xf0]  ;;  %v7657_v13 = vperm.slane %v7654_v7, 3  ;;  %v4935_v16 = vld [vmem:[#allocation10 + $0x60] sm:$0xf]  ;;  %v6717_v42 = vld [vmem:[#allocation14 + $0x20] sm:$0xff] }
  0x43   :  { %v6664_v17 = vld [vmem:[#allocation10 + $0x74] sm:$0xf0]  ;;  %v6700_v20 = vld [vmem:[#allocation13 + $0x14] sm:$0xf0]  ;;  %v4911_v21 = vld [vmem:[#allocation10 + $0x30] sm:$0xf] }
  0x44   :  { %587 = vmatpush.bf16.msra.mxu3 %v4900_v28  ;;  %v6665_v28 = vld [vmem:[#allocation10 + $0x7c] sm:$0xf0]  ;;  %v5087_v18 = vld [vmem:[#allocation13 + $0x10] sm:$0xf]  ;;  %v4936_v19 = vor.u32 %v6664_v17, %v4935_v16  ;;  %v6658_v24 = vld [vmem:[#allocation10 + $0x44] sm:$0xf0] }
  0x45   :  { %528 = vmatpush.bf16.msra.mxu1 %v4916_v3  ;;  %v6676_v3 = vld [vmem:[#allocation10 + $0xd4] sm:$0xf0]  ;;  %v4912_v25 = vor.u32 %v6658_v24, %v4911_v21  ;;  %v6714_v47 = vld [vmem:[#allocation14 + $0x8] sm:$0xff]  ;;  %v6713_v50 = vld [vmem:[#allocation14] sm:$0xff]  ;;  %v7688_v17 = vperm.slane %v7654_v7, 2 }
  0x46   :  { %554 = vmatpush.bf16.msra.mxu2 %v4992_v22  ;;  %v4984_v6 = vor.u32 %v6676_v3, %v4983_v1  ;;  %v5088_v22 = vor.u32 %v6700_v20, %v5087_v18  ;;  %v5023_v1 = vld [vmem:[#allocation10 + $0x100] sm:$0xf]  ;;  %v6672_v16 = vld [vmem:[#allocation10 + $0xb4] sm:$0xf0]  ;;  %v4951_v20 = vld [vmem:[#allocation10 + $0x70] sm:$0xf] }
  0x47   :  { %588 = vmatmul.bf16.vlgmr.msra.gmra.mxu3 %v7623_v32  ;;  %v6666_v21 = vld [vmem:[#allocation10 + $0x84] sm:$0xf0] }
  0x48   :  { %836 = vmatpush.bf16.msrb.mxu3 %v5140_v29  ;;  %v4944_v29 = vor.u32 %v6665_v28, %v4943_v27  ;;  %v6698_v27 = vld [vmem:[#allocation13 + $0x4] sm:$0xf0] }
  0x49   :  { %529 = vmatpush.bf16.msra.mxu1 %v4892_v8  ;;  %v4960_v8 = vor.u32 %v6670_v5, %v4959_v4 }
  0x4a   :  { %555 = vmatpush.bf16.msra.mxu2 %v4968_v26  ;;  %v5079_v26 = vld [vmem:[#allocation13] sm:$0xf] }
  0x4b   :  { %v5080_v28 = vor.u32 %v6698_v27, %v5079_v26  ;;  %v4952_v26 = vor.u32 %v6666_v21, %v4951_v20 }
  0x4c   :  { %837 = vmatpush.bf16.msrb.mxu3 %v5132_v33  ;;  %530 = vmatmul.bf16.vlgmr.msra.gmra.mxu1 %v7623_v32  ;;  %v4920_v33 = vor.u32 %v6659_v31, %v4919_v30  ;;  %v4887_v30 = vld [vmem:[#allocation10] sm:$0xf]  ;;  %v6652_v31 = vld [vmem:[#allocation10 + $0x14] sm:$0xf0] }
  0x4e   :  { %556 = vmatpush.bf16.msra.mxu2 %v4944_v29 }
  0x50   :  { %838 = vmatpush.bf16.msrb.mxu3 %v5124_v41  ;;  %v5136_v41 = vor.u32 %v6712_v40, %v5135_v39  ;;  %v6719_v39 = vld [vmem:[#allocation14 + $0x30] sm:$0xff] }
  0x52   :  { %557 = vmatpush.bf16.msra.mxu2 %v4920_v33  ;;  %v4888_v33 = vor.u32 %v6652_v31, %v4887_v30  ;;  %v6660_v30 = vld [vmem:[#allocation10 + $0x54] sm:$0xf0] }
  0x54   :  { %839 = vmatpush.bf16.msrb.mxu3 %v5116_v48  ;;  %v5120_v48 = vor.u32 %v6708_v46, %v5119_v45  ;;  %v6715_v45 = vld [vmem:[#allocation14 + $0x10] sm:$0xff] }
  0x56   :  { %558 = vmatpush.bf16.msra.mxu2 %v4896_v37  ;;  %v6720_v37 = vld [vmem:[#allocation14 + $0x38] sm:$0xff] }
  0x57   :  { %593 = vmatmul.bf16.gmra.mxu3 %v7626_v57 }
  0x58   :  { %840 = vmatpush.bf16.msrb.mxu3 %v5108_v54  ;;  %v5031_v54 = vld [vmem:[#allocation10 + $0x120] sm:$0xf] }
  0x59   :  { %559 = vmatmul.bf16.vlgmr.msra.gmra.mxu2 %v7623_v32  ;;  %v5032_v60 = vor.u32 %v6688_v56, %v5031_v54  ;;  %v5071_v56 = vld [vmem:[#allocation10 + $0x160] sm:$0xf] }
  0x5a   :  { %823 = vmatpush.bf16.msrb.mxu2 %v5136_v41  ;;  %v6718_v41 = vld [vmem:[#allocation14 + $0x28] sm:$0xff] }
  0x5b   :  { %494 = vmatpush.bf16.msra.mxu0 %v5032_v60 }
  0x5c   :  { %841 = vmatpush.bf16.msrb.mxu3 %v5100_v58  ;;  %535 = vmatmul.bf16.gmra.mxu1 %v7626_v57  ;;  %v5007_v58 = vld [vmem:[#allocation10 + $0xf0] sm:$0xf] }
  0x5d   :  { %v5008_v61 = vor.u32 %v6682_v59, %v5007_v58  ;;  %v6696_v58 = vld [vmem:[#allocation10 + $0x174] sm:$0xf0] }
  0x5e   :  { %824 = vmatpush.bf16.msrb.mxu2 %v5128_v44  ;;  %v6716_v44 = vld [vmem:[#allocation14 + $0x18] sm:$0xff]  ;;  %v5072_v60 = vor.u32 %v6696_v58, %v5071_v56 }
  0x5f   :  { %495 = vmatpush.bf16.msra.mxu0 %v5008_v61  ;;  %v5047_v61 = vld [vmem:[#allocation10 + $0x130] sm:$0xf] }
  0x60   :  { %842 = vmatpush.bf16.msrb.mxu3 %v5092_v2  ;;  %v5104_v2 = vor.u32 %v6704_v0, %v5103_v63  ;;  %v6690_v63 = vld [vmem:[#allocation10 + $0x144] sm:$0xf0] }
  0x61   :  { %v5048_v0 = vor.u32 %v6690_v63, %v5047_v61 }
  0x62   :  { %825 = vmatpush.bf16.msrb.mxu2 %v5120_v48  ;;  %v7678_v48 = vperm.slane %v7654_v7, 1 }
  0x63   :  { %496 = vmatpush.bf16.msra.mxu0 %v4984_v6 }
  0x64   :  { %843 = vmatpush.bf16.msrb.mxu3 %v5084_v9  ;;  %v5095_v9 = vld [vmem:[#allocation13 + $0x20] sm:$0xf] }
  0x65   :  { %v5096_v12 = vor.u32 %v6702_v11, %v5095_v9  ;;  %v6678_v9 = vld [vmem:[#allocation10 + $0xe4] sm:$0xf0] }
  0x66   :  { %826 = vmatpush.bf16.msrb.mxu2 %v5112_v55 }
  0x67   :  { %598 = vmatmul.bf16.gmra.mxu3 %v7629_v10  ;;  %497 = vmatpush.bf16.msra.mxu0 %v4960_v8  ;;  %v4999_v8 = vld [vmem:[#allocation10 + $0xd0] sm:$0xf] }
  0x69   :  { %564 = vmatmul.bf16.gmra.mxu2 %v7626_v57 }
  0x6a   :  { %827 = vmatpush.bf16.msrb.mxu2 %v5104_v2  ;;  %v6684_v2 = vld [vmem:[#allocation10 + $0x114] sm:$0xf0] }
  0x6b   :  { %498 = vmatpush.bf16.msra.mxu0 %v4936_v19  ;;  %v5024_v4 = vor.u32 %v6684_v2, %v5023_v1  ;;  %v6733_v1 = vld [vmem:[#allocation16 + $0x64] sm:$0xf]  ;;  %v5227_v2 = vld [vmem:[#allocation16 + $0x68] sm:$0xf0] }
  0x6c   :  { %540 = vmatmul.bf16.gmra.mxu1 %v7629_v10 }
  0x6e   :  { %828 = vmatpush.bf16.msrb.mxu2 %v5096_v12  ;;  %v5000_v12 = vor.u32 %v6678_v9, %v4999_v8  ;;  %v5233_v8 = vld [vmem:[#allocation16 + $0x70] sm:$0xf] }
  0x6f   :  { %499 = vmatpush.bf16.msra.mxu0 %v4912_v25 }
  0x72   :  { %829 = vmatpush.bf16.msrb.mxu2 %v5088_v22 }
  0x73   :  { %500 = vmatpush.bf16.msra.mxu0 %v4888_v33 }
  0x76   :  { %830 = vmatpush.bf16.msrb.mxu2 %v5080_v28  ;;  %501 = vmatmul.bf16.vlgmr.msra.gmra.mxu0 %v7623_v32  ;;  %v4927_v28 = vld [vmem:[#allocation10 + $0x40] sm:$0xf] }
  0x77   :  { %603 = vmatmul.bf16.gmra.mxu3 %v7633_v23  ;;  %609 = vmatpush.bf16.msrb.mxu0 %v5072_v60 }
  0x79   :  { %569 = vmatmul.bf16.gmra.mxu2 %v7629_v10 }
  0x7a   :  { %957 = vmatpush.bf16.msra.mxu2 %v6720_v37  ;;  %v4928_v37 = vor.u32 %v6660_v30, %v4927_v28  ;;  %v5203_v28 = vld [vmem:[#allocation16 + $0x38] sm:$0xf0] }
  0x7b   :  { %610 = vmatpush.bf16.msrb.mxu0 %v5048_v0 }
  0x7c   :  { %545 = vmatmul.bf16.gmra.mxu1 %v7633_v23 }
  0x7e   :  { %958 = vmatpush.bf16.msra.mxu2 %v6719_v39 }
  0x7f   :  { %611 = vmatpush.bf16.msrb.mxu0 %v5024_v4  ;;  %v5230_v4 = vor.u32 %v6733_v1, %v5227_v2  ;;  %v5193_v1 = vld [vmem:[#allocation16 + $0x20] sm:$0xf]  ;;  %v6726_v2 = vld [vmem:[#allocation16 + $0x24] sm:$0xf0] }
  0x82   :  { %959 = vmatpush.bf16.msra.mxu2 %v6718_v41 }
  0x83   :  { %612 = vmatpush.bf16.msrb.mxu0 %v5000_v12  ;;  %v5225_v12 = vld [vmem:[#allocation16 + $0x60] sm:$0xf] }
  0x86   :  { %960 = vmatpush.bf16.msra.mxu2 %v6717_v42  ;;  %506 = vmatmul.bf16.gmra.mxu0 %v7626_v57  ;;  %v4903_v42 = vld [vmem:[#allocation10 + $0x10] sm:$0xf] }
  0x87   :  { %844 = vmatmul.bf16.vlgmr.msrb.gmra.mxu3 %v7641_v38 }
  0x89   :  { %574 = vmatmul.bf16.gmra.mxu2 %v7633_v23 }
  0x8a   :  { %961 = vmatpush.bf16.msra.mxu2 %v6716_v44 }
  0x8e   :  { %962 = vmatpush.bf16.msra.mxu2 %v6715_v45  ;;  %v6735_v45 = vld [vmem:[#allocation16 + $0x74] sm:$0xf] }
  0x92   :  { %963 = vmatpush.bf16.msra.mxu2 %v6714_v47  ;;  %v5235_v47 = vld [vmem:[#allocation16 + $0x78] sm:$0xf0] }
  0x96   :  { %964 = vmatpush.bf16.msra.mxu2 %v6713_v50  ;;  %511 = vmatmul.bf16.gmra.mxu0 %v7629_v10 }
  0x99   :  { %831 = vmatmul.bf16.vlgmr.msrb.gmra.mxu2 %v7641_v38 }
  0xa6   :  { %516 = vmatmul.bf16.gmra.mxu0 %v7633_v23 }
  0xc9   :  { %v531_v49 = vpop.f32.mrf.mxu1 }
  0xca   :  { %v7650_v51 = vpop.f32.mrf.mxu3  ;;  %v532_v52 = vadd.f32 %v531_v49, %v7678_v48 }
  0xd2   :  { %v7652_v62 = vpop.f32.mrf.mxu3 }
  0xda   :  { %v594_v14 = vpop.f32.mrf.mxu3 }
  0xdb   :  { %v7660_v15 = vadd.f32 %v594_v14, %v7657_v13  ;;  %v4975_v14 = vld [vmem:[#allocation10 + $0xa0] sm:$0xf] }
  0xdc   :  { %v7682_v59 = vpop.f32.mrf.mxu2  ;;  %v4976_v18 = vor.u32 %v6672_v16, %v4975_v14  ;;  %v6734_v14 = vld [vmem:[#allocation16 + $0x64] sm:$0xf0]  ;;  %v6729_v16 = vld [vmem:[#allocation16 + $0x44] sm:$0xf] }
  0xdd   :  { %v5226_v20 = vor.u32 %v6734_v14, %v5225_v12  ;;  %v6724_v12 = vld [vmem:[#allocation16 + $0x14] sm:$0xf0] }
  0xde   :  { %613 = vmatpush.bf16.msrb.mxu0 %v4976_v18  ;;  %v5211_v18 = vld [vmem:[#allocation16 + $0x48] sm:$0xf0] }
  0xe2   :  { %v7662_v29 = vpop.f32.mrf.mxu3  ;;  %614 = vmatpush.bf16.msrb.mxu0 %v4952_v26  ;;  %v6732_v26 = vld [vmem:[#allocation16 + $0x54] sm:$0xf0] }
  0xe4   :  { %v7684_v6 = vpop.f32.mrf.mxu2 }
  0xe6   :  { %615 = vmatpush.bf16.msrb.mxu0 %v4928_v37  ;;  %v6725_v37 = vld [vmem:[#allocation16 + $0x24] sm:$0xf] }
  0xea   :  { %v599_v34 = vpop.f32.mrf.mxu3 }
  0xeb   :  { %v7667_v35 = vadd.f32 %v599_v34, %v7657_v13 }
  0xec   :  { %v565_v19 = vpop.f32.mrf.mxu2 }
  0xed   :  { %v7691_v24 = vadd.f32 %v565_v19, %v7688_v17 }
  0xf2   :  { %v7669_v40 = vpop.f32.mrf.mxu3 }
  0xf4   :  { %v7693_v41 = vpop.f32.mrf.mxu2 }
  0xfa   :  { %v604_v43 = vpop.f32.mrf.mxu3 }
  0xfb   :  { %v7673_v38 = vadd.f32 %v604_v43, %v7657_v13  ;;  %v6654_v43 = vld [vmem:[#allocation10 + $0x24] sm:$0xf0] }
  0xfc   :  { %v570_v56 = vpop.f32.mrf.mxu2 }
  0xfd   :  { %7990 = vst [vmem:[#allocation26_spill] sm:$0xff] %v7673_v38  ;;  %v7697_v58 = vadd.f32 %v570_v56, %v7688_v17  ;;  %v6728_v56 = vld [vmem:[#allocation16 + $0x34] sm:$0xf0]  ;;  %v5407_v38 = vld [vmem:[#allocation16 + $0x48] sm:$0xf0] }
 0x102   :  { %v7675_v46 = vpop.f32.mrf.mxu3 }
 0x103   :  { %7991 = vst [vmem:[#allocation27_spill] sm:$0xff] %v7675_v46 }
 0x104   :  { %v7700_v60 = vpop.f32.mrf.mxu2 }
 0x10a   :  { %v845_v53 = vpop.f32.mrf.mxu3 }
 0x10b   :  { %v850_v54 = vadd.f32 %v845_v53, %v532_v52  ;;  %v4904_v52 = vor.u32 %v6654_v43, %v4903_v42 }
 0x10c   :  { %v575_v61 = vpop.f32.mrf.mxu2 }
 0x10d   :  { %v5142_v55 = vmul.f32 -1.442695, %v850_v54  ;;  %v5238_v54 = vor.u32 %v6735_v45, %v5235_v47  ;;  %616 = vmatpush.bf16.msrb.mxu0 %v4904_v52  ;;  %v7703_v63 = vadd.f32 %v575_v61, %v7688_v17  ;;  %v7711_v45 = vperm.slane %v7654_v7, 0  ;;  %v502_v47 = vpop.f32.mrf.mxu0 }
 0x10f   :  { %7136 = vpow2.f32 %v5142_v55 }
 0x110   :  { %617 = vmatmul.bf16.vlgmr.msrb.gmra.mxu0 %v7623_v32 }
 0x111   :  { %1086 = vmatpush.bf16.msra.mxu0 %v5238_v54 }
 0x112   :  { %v847_v3 = vpop.f32.mrf.mxu3 }
 0x113   :  { %v6731_v3 = vld [vmem:[#allocation16 + $0x54] sm:$0xf] }
 0x114   :  { %v7707_v0 = vpop.f32.mrf.mxu2 }
 0x115   :  { %v7137_v5 = vpop.eup %7136  ;;  %7992 = vst [vmem:[#allocation28_spill] sm:$0xff] %v7707_v0  ;;  %1087 = vmatpush.bf16.msra.mxu0 %v5230_v4  ;;  %v6723_v4 = vld [vmem:[#allocation16 + $0x14] sm:$0xf]  ;;  %v7714_v14 = vpop.f32.mrf.mxu0 }
 0x116   :  { %v875_v11 = vadd.f32 1.0, %v7137_v5  ;;  %v5219_v5 = vld [vmem:[#allocation16 + $0x58] sm:$0xf0] }
 0x117   :  { %v5222_v9 = vor.u32 %v6731_v3, %v5219_v5  ;;  %v5194_v3 = vor.u32 %v6726_v2, %v5193_v1  ;;  %v5187_v5 = vld [vmem:[#allocation16 + $0x18] sm:$0xf0]  ;;  %v561_v1 = vadd.f32 %v7682_v59, %v7688_v17 }
 0x118   :  { %7138 = vrcp.f32 %v875_v11  ;;  %v887_v31 = vand.u32 2147483648, %v875_v11  ;;  %v885_v34 = vand.u32 2147483647, %v875_v11  ;;  %vm881_vm1 = vweird.f32 %v875_v11 }
 0x119   :  { %1088 = vmatpush.bf16.msra.mxu0 %v5222_v9 }
 0x11a   :  { %v888_v44 = vor.u32 1.1754944e-38, %v887_v31  ;;  %vm886_vm3 = vcmp.eq.f32.partialorder %v885_v34, 8.507059e+37  ;;  %v6730_v34 = vld [vmem:[#allocation16 + $0x44] sm:$0xf0] }
 0x11c   :  { %v832_v21 = vpop.f32.mrf.mxu2 }
 0x11e   :  { %v7139_v22 = vpop.eup %7138 }
 0x11f   :  { %v877_v25 = vmul.f32 %v7139_v22, %v875_v11  ;;  %vm882_vm0 = vweird.f32 %v7139_v22  ;;  %v6736_v11 = vld [vmem:[#allocation16 + $0x74] sm:$0xf0] }
 0x120   :  { %vm883_vm2 = vmor %vm881_vm1, %vm882_vm0  ;;  %622 = vmatmul.bf16.gmra.mxu0 %v7626_v57  ;;  %v5234_v19 = vor.u32 %v6736_v11, %v5233_v8  ;;  %v5185_v8 = vld [vmem:[#allocation16 + $0x10] sm:$0xf]  ;;  %v5190_v11 = vor.u32 %v6723_v4, %v5187_v5 }
 0x121   :  { %v878_v27 = vsub.f32 1.0, %v877_v25  ;;  %v5217_v25 = vld [vmem:[#allocation16 + $0x50] sm:$0xf] }
 0x122   :  { %1073 = vmatpush.bf16.msra.mxu3 %v5234_v19  ;;  %v5218_v30 = vor.u32 %v6732_v26, %v5217_v25  ;;  %v6721_v19 = vld [vmem:[#allocation16 + $0x4] sm:$0xf]  ;;  %v6722_v25 = vld [vmem:[#allocation16 + $0x4] sm:$0xf0]  ;;  %v6675_v5 = vld [vmem:[#allocation10 + $0xd4] sm:$0xf] }
 0x123   :  { %v879_v33 = vmul.f32 %v7139_v22, %v878_v27  ;;  %v6727_v27 = vld [vmem:[#allocation16 + $0x34] sm:$0xf] }
 0x124   :  { %v5206_v31 = vor.u32 %v6727_v27, %v5203_v28  ;;  %v834_v43 = vpop.f32.mrf.mxu2  ;;  %v7716_v28 = vpop.f32.mrf.mxu0 }
 0x125   :  { %v880_v39 = vadd.f32 %v7139_v22, %v879_v33  ;;  %v5209_v33 = vld [vmem:[#allocation16 + $0x40] sm:$0xf] }
 0x126   :  { %1074 = vmatpush.bf16.msra.mxu3 %v5226_v20  ;;  %v5210_v42 = vor.u32 %v6730_v34, %v5209_v33  ;;  %v5179_v20 = vld [vmem:[#allocation16 + $0x8] sm:$0xf0] }
 0x127   :  { %v884_v49 = vsel %vm883_vm2, %v7139_v22, %v880_v39  ;;  %v5214_v22 = vor.u32 %v6729_v16, %v5211_v18  ;;  %v5195_v39 = vld [vmem:[#allocation16 + $0x28] sm:$0xf0]  ;;  %v5186_v16 = vor.u32 %v6724_v12, %v5185_v8  ;;  %v5001_v8 = vld [vmem:[#allocation10 + $0xe8] sm:$0xf0] }
 0x128   :  { %v889_v50 = vsel %vm886_vm3, %v888_v44, %v884_v49  ;;  %v5198_v44 = vor.u32 %v6725_v37, %v5195_v39  ;;  %v503_v49 = vadd.f32 %v502_v47, %v7711_v45  ;;  %v6687_v34 = vld [vmem:[#allocation10 + $0x134] sm:$0xf]  ;;  %v5049_v37 = vld [vmem:[#allocation10 + $0x148] sm:$0xf0] }
 0x129   :  { %v891_v53 = vmul.f32 %v889_v50, %v7637_v36  ;;  %1089 = vmatpush.bf16.msra.mxu0 %v5214_v22  ;;  %v5182_v22 = vor.u32 %v6721_v19, %v5179_v20 }
 0x12a   :  { %1075 = vmatpush.bf16.msra.mxu3 %v5218_v30  ;;  %v849_v50 = vadd.f32 %v832_v21, %v503_v49  ;;  %v5177_v21 = vld [vmem:[#allocation16] sm:$0xf] }
 0x12b   :  { %v892_v55 = vpack.c.bf16 %v891_v53, %v891_v53  ;;  %v5178_v26 = vor.u32 %v6722_v25, %v5177_v21  ;;  %v6693_v30 = vld [vmem:[#allocation10 + $0x164] sm:$0xf] }
 0x12c   :  { %v5141_v52 = vmul.f32 -1.442695, %v849_v50  ;;  %v7718_v49 = vpop.f32.mrf.mxu0  ;;  %v6669_v21 = vld [vmem:[#allocation10 + $0xa4] sm:$0xf] }
 0x12d   :  { %965 = vmatmul.bf16.vlgmr.msra.gmra.mxu2 %v892_v55  ;;  %1090 = vmatpush.bf16.msra.mxu0 %v5206_v31  ;;  %v5201_v55 = vld [vmem:[#allocation16 + $0x30] sm:$0xf]  ;;  %v5073_v31 = vld [vmem:[#allocation10 + $0x178] sm:$0xf0] }
 0x12e   :  { %1076 = vmatpush.bf16.msra.mxu3 %v5210_v42  ;;  %7140 = vpow2.f32 %v5141_v52  ;;  %v5202_v61 = vor.u32 %v6728_v56, %v5201_v55  ;;  %v5076_v33 = vor.u32 %v6693_v30, %v5073_v31  ;;  %v5052_v42 = vor.u32 %v6687_v34, %v5049_v37  ;;  %v6681_v52 = vld [vmem:[#allocation10 + $0x104] sm:$0xf]  ;;  %v4953_v34 = vld [vmem:[#allocation10 + $0x88] sm:$0xf0] }
 0x130   :  { %627 = vmatmul.bf16.gmra.mxu0 %v7629_v10  ;;  %638 = vmatpush.bf16.msrb.mxu1 %v5076_v33  ;;  %v6663_v33 = vld [vmem:[#allocation10 + $0x74] sm:$0xf] }
 0x131   :  { %1091 = vmatpush.bf16.msra.mxu0 %v5198_v44  ;;  %v4956_v37 = vor.u32 %v6663_v33, %v4953_v34  ;;  %v590_v34 = vadd.f32 %v7650_v51, %v7657_v13 }
 0x132   :  { %1077 = vmatpush.bf16.msra.mxu3 %v5202_v61 }
 0x134   :  { %v7141_v53 = vpop.eup %7140  ;;  %639 = vmatpush.bf16.msrb.mxu1 %v5052_v42  ;;  %v7722_v4 = vpop.f32.mrf.mxu0  ;;  %v6657_v42 = vld [vmem:[#allocation10 + $0x44] sm:$0xf] }
 0x135   :  { %v854_v54 = vadd.f32 1.0, %v7141_v53  ;;  %1092 = vmatpush.bf16.msra.mxu0 %v5190_v11  ;;  %v5025_v53 = vld [vmem:[#allocation10 + $0x118] sm:$0xf0]  ;;  %v5004_v11 = vor.u32 %v6675_v5, %v5001_v8  ;;  %v6742_v5 = vld [vmem:[#allocation17 + $0x28] sm:$0xff] }
 0x136   :  { %1078 = vmatpush.bf16.msra.mxu3 %v5194_v3  ;;  %v5028_v56 = vor.u32 %v6681_v52, %v5025_v53  ;;  %v4905_v52 = vld [vmem:[#allocation10 + $0x28] sm:$0xf0] }
 0x137   :  { %7142 = vrcp.f32 %v854_v54  ;;  %vm860_vm4 = vweird.f32 %v854_v54  ;;  %v866_v43 = vand.u32 2147483648, %v854_v54  ;;  %v864_v47 = vand.u32 2147483647, %v854_v54 }
 0x138   :  { %640 = vmatpush.bf16.msrb.mxu1 %v5028_v56  ;;  %v6744_v56 = vld [vmem:[#allocation17 + $0x38] sm:$0xff] }
 0x139   :  { %1093 = vmatpush.bf16.msra.mxu0 %v5182_v22  ;;  %v867_v50 = vor.u32 1.1754944e-38, %v866_v43  ;;  %vm865_vm7 = vcmp.eq.f32.partialorder %v864_v47, 8.507059e+37  ;;  %v4977_v22 = vld [vmem:[#allocation10 + $0xb8] sm:$0xf0] }
 0x13a   :  { %1079 = vmatpush.bf16.msra.mxu3 %v5186_v16  ;;  %v155_v16 = vld [vmem:[#allocation5] sm:$0xff]  ;;  %v4929_v43 = vld [vmem:[#allocation10 + $0x58] sm:$0xf0] }
 0x13c   :  { %641 = vmatpush.bf16.msrb.mxu1 %v5004_v11  ;;  %v7724_v19 = vpop.f32.mrf.mxu0 }
 0x13d   :  { %v7143_v9 = vpop.eup %7142 }
 0x13e   :  { %v856_v18 = vmul.f32 %v7143_v9, %v854_v54  ;;  %1080 = vmatpush.bf16.msra.mxu3 %v5178_v26  ;;  %vm861_vm5 = vweird.f32 %v7143_v9  ;;  %v4980_v26 = vor.u32 %v6669_v21, %v4977_v22  ;;  %v6739_v21 = vld [vmem:[#allocation17 + $0x10] sm:$0xff]  ;;  %v6738_v22 = vld [vmem:[#allocation17 + $0x8] sm:$0xff] }
 0x13f   :  { %vm862_vm6 = vmor %vm860_vm4, %vm861_vm5 }
 0x140   :  { %632 = vmatmul.bf16.gmra.mxu0 %v7633_v23  ;;  %v857_v27 = vsub.f32 1.0, %v856_v18  ;;  %642 = vmatpush.bf16.msrb.mxu1 %v4980_v26 }
 0x142   :  { %v858_v39 = vmul.f32 %v7143_v9, %v857_v27 }
 0x144   :  { %v859_v44 = vadd.f32 %v7143_v9, %v858_v39  ;;  %v7730_v31 = vpop.f32.mrf.mxu0  ;;  %643 = vmatpush.bf16.msrb.mxu1 %v4956_v37 }
 0x146   :  { %v863_v55 = vsel %vm862_vm6, %v7143_v9, %v859_v44  ;;  %v4932_v44 = vor.u32 %v6657_v42, %v4929_v43 }
 0x147   :  { %v868_v61 = vsel %vm865_vm7, %v867_v50, %v863_v55  ;;  %v6651_v50 = vld [vmem:[#allocation10 + $0x14] sm:$0xf] }
 0x148   :  { %v870_v2 = vmul.f32 0.875, %v868_v61  ;;  %644 = vmatpush.bf16.msrb.mxu1 %v4932_v44  ;;  %v4908_v53 = vor.u32 %v6651_v50, %v4905_v52  ;;  %v7738_v61 = vperm.slane %v7654_v7, 4 }
 0x14a   :  { %v871_v12 = vadd.f32 0.125, %v870_v2 }
 0x14c   :  { %v973_v9 = vsub.f32 1.0, %v871_v12  ;;  %v972_v59 = vmul.f32 %v871_v12, %v155_v16  ;;  %v7732_v39 = vpop.f32.mrf.mxu0  ;;  %645 = vmatpush.bf16.msrb.mxu1 %v4908_v53 }
 0x14d   :  { %7993 = vst [vmem:[#allocation29_spill] sm:$0xff] %v7732_v39  ;;  %v5309_v39 = vld [vmem:[#allocation13 + $0x48] sm:$0xf0] }
 0x14f   :  { %646 = vmatmul.bf16.vlgmr.msrb.gmra.mxu1 %v7623_v32  ;;  %v6741_v32 = vld [vmem:[#allocation17 + $0x20] sm:$0xff] }
 0x150   :  { %1207 = vmatpush.bf16.msra.mxu1 %v6744_v56 }
 0x15f   :  { %651 = vmatmul.bf16.gmra.mxu1 %v7626_v57 }
 0x16f   :  { %656 = vmatmul.bf16.gmra.mxu1 %v7629_v10  ;;  %v6737_v10 = vld [vmem:[#allocation17] sm:$0xff] }
 0x17f   :  { %661 = vmatmul.bf16.gmra.mxu1 %v7633_v23 }
 0x18d   :  { %v618_v47 = vpop.f32.mrf.mxu0 }
 0x195   :  { %v7735_v55 = vpop.f32.mrf.mxu0 }
 0x1b0   :  { %v966_v3 = vpop.f32.mrf.mxu2 }
 0x1b1   :  { %v970_v54 = vadd.f32 %v966_v3, %v561_v1  ;;  %v623_v1 = vpop.f32.mrf.mxu0  ;;  %v6743_v3 = vld [vmem:[#allocation17 + $0x30] sm:$0xff] }
 0x1b2   :  { %v7741_v2 = vadd.f32 %v623_v1, %v7738_v61  ;;  %1208 = vmatpush.bf16.msra.mxu1 %v6743_v3 }
 0x1b3   :  { %7144 = vtanh.f32 %v970_v54 }
 0x1b6   :  { %1209 = vmatpush.bf16.msra.mxu1 %v6742_v5 }
 0x1b8   :  { %v968_v18 = vpop.f32.mrf.mxu2 }
 0x1b9   :  { %v7145_v20 = vpop.eup %7144  ;;  %v7744_v54 = vpop.f32.mrf.mxu0 }
 0x1ba   :  { %v974_v25 = vmul.f32 %v7145_v20, %v973_v9  ;;  %1210 = vmatpush.bf16.msra.mxu1 %v6741_v32  ;;  %v6740_v20 = vld [vmem:[#allocation17 + $0x18] sm:$0xff] }
 0x1bc   :  { %v7726_v27 = vadd.f32 %v974_v25, %v972_v59  ;;  %v7759_v59 = vpop.f32.mrf.mxu1  ;;  %v619_v25 = vadd.f32 %v618_v47, %v7738_v61 }
 0x1be   :  { %v976_v30 = vpack.c.bf16 %v7726_v27, %v7726_v27  ;;  %1211 = vmatpush.bf16.msra.mxu1 %v6740_v20 }
 0x1c0   :  { %1081 = vmatmul.bf16.vlgmr.msra.gmra.mxu3 %v976_v30  ;;  %1094 = vmatmul.bf16.vlgmr.msra.gmra.mxu0 %v976_v30 }
 0x1c1   :  { %v628_v8 = vpop.f32.mrf.mxu0 }
 0x1c2   :  { %v7747_v11 = vadd.f32 %v628_v8, %v7738_v61  ;;  %1212 = vmatpush.bf16.msra.mxu1 %v6739_v21 }
 0x1c4   :  { %v7762_v23 = vpop.f32.mrf.mxu1 }
 0x1c6   :  { %1213 = vmatpush.bf16.msra.mxu1 %v6738_v22 }
 0x1c9   :  { %v7750_v12 = vpop.f32.mrf.mxu0 }
 0x1ca   :  { %1214 = vmatpush.bf16.msra.mxu1 %v6737_v10 }
 0x1cc   :  { %v7768_v50 = vpop.f32.mrf.mxu1 }
 0x1d1   :  { %v633_v16 = vpop.f32.mrf.mxu0 }
 0x1d2   :  { %v7753_v9 = vadd.f32 %v633_v16, %v7738_v61 }
 0x1d4   :  { %v7770_v53 = vpop.f32.mrf.mxu1 }
 0x1d9   :  { %v635_v57 = vpop.f32.mrf.mxu0 }
 0x1da   :  { %v7757_v18 = vadd.f32 %v635_v57, %v7738_v61 }
 0x1dc   :  { %7994 = vst [vmem:[#allocation30_spill] sm:$0xff] %v7757_v18  ;;  %v7772_v16 = vpop.f32.mrf.mxu1 }
 0x23d   :  { %v1095_v26 = vpop.f32.mrf.mxu0 }
 0x23e   :  { %v1100_v30 = vadd.f32 %v1095_v26, %v619_v25  ;;  %v7775_v25 = vpop.f32.mrf.mxu1 }
 0x240   :  { %v5240_v33 = vmul.f32 -1.442695, %v1100_v30 }
 0x242   :  { %7146 = vpow2.f32 %v5240_v33 }
 0x243   :  { %v1082_v37 = vpop.f32.mrf.mxu3 }
 0x244   :  { %v7766_v42 = vadd.f32 %v1082_v37, %v590_v34  ;;  %v7784_v34 = vperm.slane %v7654_v7, 5 }
 0x245   :  { %v1097_v43 = vpop.f32.mrf.mxu0 }
 0x246   :  { %v7777_v26 = vpop.f32.mrf.mxu1 }
 0x247   :  { %7995 = vst [vmem:[#allocation31_spill] sm:$0xff] %v7777_v26  ;;  %v5285_v26 = vld [vmem:[#allocation13 + $0x18] sm:$0xf0] }
 0x248   :  { %v7147_v44 = vpop.eup %7146 }
 0x249   :  { %v1125_v52 = vadd.f32 1.0, %v7147_v44 }
 0x24b   :  { %7148 = vrcp.f32 %v1125_v52  ;;  %v1084_v47 = vpop.f32.mrf.mxu3  ;;  %v1137_v5 = vand.u32 2147483648, %v1125_v52  ;;  %v1135_v51 = vand.u32 2147483647, %v1125_v52  ;;  %vm1131_vm9 = vweird.f32 %v1125_v52 }
 0x24c   :  { %v6760_v47 = vld [vmem:[#allocation13 + $0x74] sm:$0xf0] }
 0x24d   :  { %v1138_v57 = vor.u32 1.1754944e-38, %v1137_v5  ;;  %vm1136_vm11 = vcmp.eq.f32.partialorder %v1135_v51, 8.507059e+37  ;;  %v5323_v5 = vld [vmem:[#allocation13 + $0x60] sm:$0xf] }
 0x24e   :  { %v7779_v30 = vpop.f32.mrf.mxu1 }
 0x251   :  { %v7149_v56 = vpop.eup %7148 }
 0x252   :  { %v1127_v1 = vmul.f32 %v7149_v56, %v1125_v52  ;;  %vm1132_vm8 = vweird.f32 %v7149_v56  ;;  %v5331_v52 = vld [vmem:[#allocation13 + $0x70] sm:$0xf] }
 0x253   :  { %vm1133_vm10 = vmor %vm1131_vm9, %vm1132_vm8 }
 0x254   :  { %v1128_v3 = vsub.f32 1.0, %v1127_v1  ;;  %v5332_v1 = vor.u32 %v6760_v47, %v5331_v52  ;;  %v5307_v47 = vld [vmem:[#allocation13 + $0x40] sm:$0xf] }
 0x256   :  { %v1129_v32 = vmul.f32 %v7149_v56, %v1128_v3  ;;  %v7781_v33 = vpop.f32.mrf.mxu1  ;;  %v5333_v3 = vld [vmem:[#allocation13 + $0x78] sm:$0xf0]  ;;  %1337 = vmatpush.bf16.msrb.mxu2 %v5332_v1 }
 0x258   :  { %v1130_v8 = vadd.f32 %v7149_v56, %v1129_v32  ;;  %v6758_v32 = vld [vmem:[#allocation13 + $0x64] sm:$0xf0] }
 0x25a   :  { %v1134_v20 = vsel %vm1133_vm10, %v7149_v56, %v1130_v8  ;;  %v6759_v56 = vld [vmem:[#allocation13 + $0x74] sm:$0xf]  ;;  %v6757_v8 = vld [vmem:[#allocation13 + $0x64] sm:$0xf] }
 0x25b   :  { %v1139_v21 = vsel %vm1136_vm11, %v1138_v57, %v1134_v20  ;;  %v5336_v51 = vor.u32 %v6759_v56, %v5333_v3  ;;  %v5325_v57 = vld [vmem:[#allocation13 + $0x68] sm:$0xf0]  ;;  %v5324_v20 = vor.u32 %v6758_v32, %v5323_v5  ;;  %v6754_v56 = vld [vmem:[#allocation13 + $0x44] sm:$0xf0]  ;;  %v6753_v3 = vld [vmem:[#allocation13 + $0x44] sm:$0xf] }
 0x25c   :  { %v1141_v22 = vmul.f32 %v1139_v21, %v7726_v27  ;;  %v5328_v7 = vor.u32 %v6757_v8, %v5325_v57  ;;  %v5315_v21 = vld [vmem:[#allocation13 + $0x50] sm:$0xf]  ;;  %v5308_v1 = vor.u32 %v6754_v56, %v5307_v47  ;;  %v5312_v5 = vor.u32 %v6753_v3, %v5309_v39  ;;  %v6751_v39 = vld [vmem:[#allocation13 + $0x34] sm:$0xf]  ;;  %v5291_v47 = vld [vmem:[#allocation13 + $0x20] sm:$0xf] }
 0x25d   :  { %1350 = vmatpush.bf16.msrb.mxu3 %v5336_v51  ;;  %1338 = vmatpush.bf16.msrb.mxu2 %v5324_v20  ;;  %v5239_v20 = vmul.f32 -1.442695, %v7766_v42  ;;  %v6750_v56 = vld [vmem:[#allocation13 + $0x24] sm:$0xf0]  ;;  %v6749_v3 = vld [vmem:[#allocation13 + $0x24] sm:$0xf] }
 0x25e   :  { %v1142_v10 = vpack.c.bf16 %v1141_v22, %v1141_v22  ;;  %v652_v37 = vpop.f32.mrf.mxu1  ;;  %v6756_v22 = vld [vmem:[#allocation13 + $0x54] sm:$0xf0] }
 0x25f   :  { %v7787_v43 = vadd.f32 %v652_v37, %v7784_v34  ;;  %v5317_v37 = vld [vmem:[#allocation13 + $0x58] sm:$0xf0]  ;;  %v5316_v46 = vor.u32 %v6756_v22, %v5315_v21  ;;  %7150 = vpow2.f32 %v5239_v20  ;;  %v5299_v21 = vld [vmem:[#allocation13 + $0x30] sm:$0xf]  ;;  %v6752_v22 = vld [vmem:[#allocation13 + $0x34] sm:$0xf0] }
 0x260   :  { %1215 = vmatmul.bf16.vlgmr.msra.gmra.mxu1 %v1142_v10  ;;  %v6755_v10 = vld [vmem:[#allocation13 + $0x54] sm:$0xf]  ;;  %v6748_v20 = vld [vmem:[#allocation13 + $0x14] sm:$0xf0] }
 0x261   :  { %1351 = vmatpush.bf16.msrb.mxu3 %v5328_v7  ;;  %v5320_v52 = vor.u32 %v6755_v10, %v5317_v37  ;;  %1339 = vmatpush.bf16.msrb.mxu2 %v5316_v46  ;;  %v5300_v10 = vor.u32 %v6752_v22, %v5299_v21  ;;  %v5301_v37 = vld [vmem:[#allocation13 + $0x38] sm:$0xf0] }
 0x265   :  { %1352 = vmatpush.bf16.msrb.mxu3 %v5320_v52  ;;  %1340 = vmatpush.bf16.msrb.mxu2 %v5308_v1  ;;  %v7151_v7 = vpop.eup %7150  ;;  %v5304_v52 = vor.u32 %v6751_v39, %v5301_v37  ;;  %v5292_v1 = vor.u32 %v6750_v56, %v5291_v47  ;;  %v5275_v39 = vld [vmem:[#allocation13] sm:$0xf]  ;;  %v6745_v37 = vld [vmem:[#allocation13 + $0x4] sm:$0xf] }
 0x266   :  { %v7789_v44 = vpop.f32.mrf.mxu1  ;;  %v1104_v46 = vadd.f32 1.0, %v7151_v7  ;;  %v6747_v7 = vld [vmem:[#allocation13 + $0x14] sm:$0xf] }
 0x267   :  { %v5288_v21 = vor.u32 %v6747_v7, %v5285_v26 }
 0x268   :  { %7152 = vrcp.f32 %v1104_v46  ;;  %vm1110_vm13 = vweird.f32 %v1104_v46 }
 0x269   :  { %1353 = vmatpush.bf16.msrb.mxu3 %v5312_v5  ;;  %1341 = vmatpush.bf16.msrb.mxu2 %v5300_v10  ;;  %v5293_v5 = vld [vmem:[#allocation13 + $0x28] sm:$0xf0]  ;;  %v6746_v10 = vld [vmem:[#allocation13 + $0x4] sm:$0xf0] }
 0x26d   :  { %1354 = vmatpush.bf16.msrb.mxu3 %v5304_v52  ;;  %1342 = vmatpush.bf16.msrb.mxu2 %v5292_v1  ;;  %v5276_v52 = vor.u32 %v6746_v10, %v5275_v39 }
 0x26e   :  { %v657_v18 = vpop.f32.mrf.mxu1  ;;  %v7153_v42 = vpop.eup %7152 }
 0x26f   :  { %v7792_v0 = vadd.f32 %v657_v18, %v7784_v34  ;;  %v1106_v22 = vmul.f32 %v7153_v42, %v1104_v46  ;;  %vm1111_vm12 = vweird.f32 %v7153_v42 }
 0x270   :  { %vm1112_vm14 = vmor %vm1110_vm13, %vm1111_vm12 }
 0x271   :  { %v1107_v56 = vsub.f32 1.0, %v1106_v22 }
 0x276   :  { %v7794_v32 = vpop.f32.mrf.mxu1 }
 0x27e   :  { %v662_v51 = vpop.f32.mrf.mxu1 }
 0x27f   :  { %v7797_v8 = vadd.f32 %v662_v51, %v7784_v34  ;;  %v5296_v51 = vor.u32 %v6749_v3, %v5293_v5  ;;  %v1108_v3 = vmul.f32 %v7153_v42, %v1107_v56  ;;  %v1116_v5 = vand.u32 2147483648, %v1104_v46 }
 0x281   :  { %7996 = vst [vmem:[#allocation32_spill] sm:$0xff] %v7797_v8  ;;  %1355 = vmatpush.bf16.msrb.mxu3 %v5296_v51  ;;  %v5277_v8 = vld [vmem:[#allocation13 + $0x8] sm:$0xf0]  ;;  %v1109_v1 = vadd.f32 %v7153_v42, %v1108_v3  ;;  %v1114_v51 = vand.u32 2147483647, %v1104_v46  ;;  %v6767_v3 = vld [vmem:[#allocation14 + $0x30] sm:$0xff] }
 0x282   :  { %v5280_v47 = vor.u32 %v6745_v37, %v5277_v8 }
 0x283   :  { %v1113_v26 = vsel %vm1112_vm14, %v7153_v42, %v1109_v1  ;;  %vm1115_vm15 = vcmp.eq.f32.partialorder %v1114_v51, 8.507059e+37  ;;  %v6766_v1 = vld [vmem:[#allocation14 + $0x28] sm:$0xff]  ;;  %v6763_v51 = vld [vmem:[#allocation14 + $0x10] sm:$0xff] }
 0x285   :  { %1356 = vmatpush.bf16.msrb.mxu3 %v5288_v21 }
 0x286   :  { %v664_v18 = vpop.f32.mrf.mxu1 }
 0x287   :  { %v7800_v57 = vadd.f32 %v664_v18, %v7784_v34  ;;  %v5283_v18 = vld [vmem:[#allocation13 + $0x10] sm:$0xf] }
 0x289   :  { %7997 = vst [vmem:[#allocation33_spill] sm:$0xff] %v7800_v57  ;;  %v5284_v57 = vor.u32 %v6748_v20, %v5283_v18  ;;  %1357 = vmatpush.bf16.msrb.mxu3 %v5280_v47  ;;  %v1117_v18 = vor.u32 1.1754944e-38, %v1116_v5  ;;  %v648_v20 = vadd.f32 %v7779_v30, %v7784_v34  ;;  %v6768_v30 = vld [vmem:[#allocation14 + $0x38] sm:$0xff]  ;;  %v6765_v5 = vld [vmem:[#allocation14 + $0x20] sm:$0xff] }
 0x28a   :  { %1471 = vmatpush.bf16.msrb.mxu0 %v6768_v30  ;;  %v6781_v30 = vld [vmem:[#allocation16 + $0x64] sm:$0xf] }
 0x28b   :  { %1343 = vmatpush.bf16.msrb.mxu2 %v5284_v57  ;;  %v1118_v57 = vsel %vm1115_vm15, %v1117_v18, %v1113_v26  ;;  %v6762_v26 = vld [vmem:[#allocation14 + $0x8] sm:$0xff]  ;;  %v6761_v18 = vld [vmem:[#allocation14] sm:$0xff] }
 0x28c   :  { %v1120_v7 = vmul.f32 0.875, %v1118_v57  ;;  %v534_v57 = vadd.f32 %v7759_v59, %v7678_v48 }
 0x28e   :  { %v1121_v22 = vadd.f32 0.125, %v1120_v7  ;;  %1472 = vmatpush.bf16.msrb.mxu0 %v6767_v3  ;;  %v5423_v3 = vld [vmem:[#allocation16 + $0x68] sm:$0xf0] }
 0x28f   :  { %1344 = vmatpush.bf16.msrb.mxu2 %v5276_v52 }
 0x290   :  { %v1223_v39 = vsub.f32 1.0, %v1121_v22  ;;  %v1222_v52 = vmul.f32 %v1121_v22, %v7637_v36  ;;  %v6764_v36 = vld [vmem:[#allocation14 + $0x18] sm:$0xff]  ;;  %v5429_v22 = vld [vmem:[#allocation16 + $0x70] sm:$0xf] }
 0x292   :  { %1473 = vmatpush.bf16.msrb.mxu0 %v6766_v1 }
 0x296   :  { %1474 = vmatpush.bf16.msrb.mxu0 %v6765_v5 }
 0x29a   :  { %1475 = vmatpush.bf16.msrb.mxu0 %v6764_v36  ;;  %v5426_v36 = vor.u32 %v6781_v30, %v5423_v3 }
 0x29e   :  { %1476 = vmatpush.bf16.msrb.mxu0 %v6763_v51  ;;  %v5413_v51 = vld [vmem:[#allocation16 + $0x50] sm:$0xf] }
 0x2a2   :  { %1477 = vmatpush.bf16.msrb.mxu0 %v6762_v26  ;;  %v6780_v26 = vld [vmem:[#allocation16 + $0x54] sm:$0xf0] }
 0x2a6   :  { %1478 = vmatpush.bf16.msrb.mxu0 %v6761_v18  ;;  %v6779_v18 = vld [vmem:[#allocation16 + $0x54] sm:$0xf] }
 0x2dd   :  { %v1216_v21 = vpop.f32.mrf.mxu1 }
 0x2de   :  { %v1220_v8 = vadd.f32 %v1216_v21, %v648_v20 }
 0x2e0   :  { %7154 = vtanh.f32 %v1220_v8 }
 0x2e5   :  { %v1218_v10 = vpop.f32.mrf.mxu1 }
 0x2e6   :  { %v7155_v37 = vpop.eup %7154  ;;  %v6783_v10 = vld [vmem:[#allocation16 + $0x74] sm:$0xf] }
 0x2e7   :  { %v1224_v47 = vmul.f32 %v7155_v37, %v1223_v39  ;;  %v6784_v39 = vld [vmem:[#allocation16 + $0x74] sm:$0xf0] }
 0x2e8   :  { %v5430_v37 = vor.u32 %v6784_v39, %v5429_v22  ;;  %v5405_v39 = vld [vmem:[#allocation16 + $0x40] sm:$0xf] }
 0x2e9   :  { %v7806_v46 = vadd.f32 %v1224_v47, %v1222_v52  ;;  %v5431_v52 = vld [vmem:[#allocation16 + $0x78] sm:$0xf0]  ;;  %v5421_v47 = vld [vmem:[#allocation16 + $0x60] sm:$0xf] }
 0x2ea   :  { %1587 = vmatpush.bf16.msrb.mxu1 %v5430_v37 }
 0x2eb   :  { %v7084_v42 = vpack.c.bf16 %v7806_v46, %v7726_v27  ;;  %v1230_v56 = vpack.c.bf16 %v7806_v46, %v7806_v46 }
 0x2ed   :  { %7085 = vst [vmem:[#allocation19] sm:$0xff] %v7084_v42   ;;  %1345 = vmatmul.bf16.vlgmr.msrb.gmra.mxu2 %v1230_v56  ;;  %1358 = vmatmul.bf16.vlgmr.msrb.gmra.mxu3 %v1230_v56  ;;  %v6782_v42 = vld [vmem:[#allocation16 + $0x64] sm:$0xf0]  ;;  %v5434_v56 = vor.u32 %v6783_v10, %v5431_v52  ;;  %v6777_v52 = vld [vmem:[#allocation16 + $0x44] sm:$0xf] }
 0x2ee   :  { %v5422_v1 = vor.u32 %v6782_v42, %v5421_v47  ;;  %v5410_v47 = vor.u32 %v6777_v52, %v5407_v38  ;;  %v505_v38 = vadd.f32 %v7714_v14, %v7711_v45  ;;  %v6776_v52 = vld [vmem:[#allocation16 + $0x34] sm:$0xf0] }
 0x2ef   :  { %1600 = vmatpush.bf16.msra.mxu2 %v5434_v56 }
 0x2f0   :  { %1588 = vmatpush.bf16.msrb.mxu1 %v5422_v1 }
 0x2f3   :  { %1601 = vmatpush.bf16.msra.mxu2 %v5426_v36 }
 0x370   :  { %v1346_v20 = vpop.f32.mrf.mxu2  ;;  %v1359_v7 = vpop.f32.mrf.mxu3 }
 0x371   :  { %v1364_v21 = vadd.f32 %v1359_v7, %v534_v57  ;;  %v5415_v57 = vld [vmem:[#allocation16 + $0x58] sm:$0xf0]  ;;  %v5414_v7 = vor.u32 %v6780_v26, %v5413_v51 }
 0x372   :  { %v5418_v22 = vor.u32 %v6779_v18, %v5415_v57 }
 0x373   :  { %v5338_v8 = vmul.f32 -1.442695, %v1364_v21  ;;  %1589 = vmatpush.bf16.msrb.mxu1 %v5414_v7  ;;  %v1363_v7 = vadd.f32 %v1346_v20, %v505_v38  ;;  %v5381_v20 = vld [vmem:[#allocation16 + $0x10] sm:$0xf] }
 0x374   :  { %1602 = vmatpush.bf16.msra.mxu2 %v5418_v22 }
 0x375   :  { %7156 = vpow2.f32 %v5338_v8  ;;  %v6778_v8 = vld [vmem:[#allocation16 + $0x44] sm:$0xf0] }
 0x376   :  { %v5406_v37 = vor.u32 %v6778_v8, %v5405_v39  ;;  %v5397_v8 = vld [vmem:[#allocation16 + $0x30] sm:$0xf] }
 0x378   :  { %v1348_v5 = vpop.f32.mrf.mxu2  ;;  %v1361_v59 = vpop.f32.mrf.mxu3  ;;  %1590 = vmatpush.bf16.msrb.mxu1 %v5406_v37  ;;  %1603 = vmatpush.bf16.msra.mxu2 %v5410_v47  ;;  %v5398_v37 = vor.u32 %v6776_v52, %v5397_v8  ;;  %v5399_v47 = vld [vmem:[#allocation16 + $0x38] sm:$0xf0]  ;;  %v5375_v52 = vld [vmem:[#allocation16 + $0x8] sm:$0xf0] }
 0x37b   :  { %v7157_v21 = vpop.eup %7156 }
 0x37c   :  { %v1389_v10 = vadd.f32 1.0, %v7157_v21  ;;  %v5337_v21 = vmul.f32 -1.442695, %v1363_v7  ;;  %1591 = vmatpush.bf16.msrb.mxu1 %v5398_v37  ;;  %v5373_v7 = vld [vmem:[#allocation16] sm:$0xf] }
 0x37e   :  { %7158 = vrcp.f32 %v1389_v10  ;;  %v1401_v3 = vand.u32 2147483648, %v1389_v10  ;;  %v1399_v5 = vand.u32 2147483647, %v1389_v10  ;;  %vm1395_vm1 = vweird.f32 %v1389_v10 }
 0x37f   :  { %7160 = vpow2.f32 %v5337_v21  ;;  %v6770_v21 = vld [vmem:[#allocation16 + $0x4] sm:$0xf0] }
 0x380   :  { %v1402_v36 = vor.u32 1.1754944e-38, %v1401_v3  ;;  %vm1400_vm3 = vcmp.eq.f32.partialorder %v1399_v5, 8.507059e+37  ;;  %v6773_v3 = vld [vmem:[#allocation16 + $0x24] sm:$0xf]  ;;  %v5391_v5 = vld [vmem:[#allocation16 + $0x28] sm:$0xf0]  ;;  %v5374_v8 = vor.u32 %v6770_v21, %v5373_v7 }
 0x381   :  { %v5394_v14 = vor.u32 %v6773_v3, %v5391_v5 }
 0x384   :  { %v7159_v42 = vpop.eup %7158 }
 0x385   :  { %v1391_v56 = vmul.f32 %v7159_v42, %v1389_v10  ;;  %vm1396_vm0 = vweird.f32 %v7159_v42  ;;  %v7161_v22 = vpop.eup %7160  ;;  %v6775_v10 = vld [vmem:[#allocation16 + $0x34] sm:$0xf] }
 0x386   :  { %vm1397_vm2 = vmor %vm1395_vm1, %vm1396_vm0  ;;  %v1368_v39 = vadd.f32 1.0, %v7161_v22  ;;  %v6769_v22 = vld [vmem:[#allocation16 + $0x4] sm:$0xf] }
 0x387   :  { %v1392_v30 = vsub.f32 1.0, %v1391_v56  ;;  %v5389_v56 = vld [vmem:[#allocation16 + $0x20] sm:$0xf] }
 0x388   :  { %7162 = vrcp.f32 %v1368_v39  ;;  %vm1374_vm5 = vweird.f32 %v1368_v39 }
 0x389   :  { %v1393_v1 = vmul.f32 %v7159_v42, %v1392_v30  ;;  %v6774_v30 = vld [vmem:[#allocation16 + $0x24] sm:$0xf0] }
 0x38b   :  { %v1394_v59 = vadd.f32 %v7159_v42, %v1393_v1  ;;  %v5390_v1 = vor.u32 %v6774_v30, %v5389_v56  ;;  %v1380_v56 = vand.u32 2147483648, %v1368_v39  ;;  %v1378_v30 = vand.u32 2147483647, %v1368_v39 }
 0x38d   :  { %v1398_v51 = vsel %vm1397_vm2, %v7159_v42, %v1394_v59  ;;  %v5402_v42 = vor.u32 %v6775_v10, %v5399_v47  ;;  %1592 = vmatpush.bf16.msrb.mxu1 %v5390_v1  ;;  %v6772_v59 = vld [vmem:[#allocation16 + $0x14] sm:$0xf0]  ;;  %v5378_v10 = vor.u32 %v6769_v22, %v5375_v52  ;;  %v1381_v1 = vor.u32 1.1754944e-38, %v1380_v56  ;;  %v6789_v52 = vld [vmem:[#allocation17 + $0x20] sm:$0xff] }
 0x38e   :  { %v1403_v26 = vsel %vm1400_vm3, %v1402_v36, %v1398_v51  ;;  %v6771_v36 = vld [vmem:[#allocation16 + $0x14] sm:$0xf]  ;;  %v7163_v51 = vpop.eup %7162  ;;  %vm1379_vm7 = vcmp.eq.f32.partialorder %v1378_v30, 8.507059e+37  ;;  %v6792_v22 = vld [vmem:[#allocation17 + $0x38] sm:$0xff]  ;;  %v6785_v30 = vld [vmem:[#allocation17] sm:$0xff] }
 0x38f   :  { %v1405_v18 = vmul.f32 %v1403_v26, %v7806_v46  ;;  %1604 = vmatpush.bf16.msra.mxu2 %v5402_v42  ;;  %v5382_v26 = vor.u32 %v6772_v59, %v5381_v20  ;;  %v1370_v38 = vmul.f32 %v7163_v51, %v1368_v39  ;;  %vm1375_vm4 = vweird.f32 %v7163_v51  ;;  %1721 = vmatpush.bf16.msra.mxu3 %v6792_v22 }
 0x390   :  { %vm1376_vm6 = vmor %vm1374_vm5, %vm1375_vm4 }
 0x391   :  { %v1406_v57 = vpack.c.bf16 %v1405_v18, %v1405_v18  ;;  %v5383_v18 = vld [vmem:[#allocation16 + $0x18] sm:$0xf0]  ;;  %1593 = vmatpush.bf16.msrb.mxu1 %v5382_v26  ;;  %v1371_v37 = vsub.f32 1.0, %v1370_v38 }
 0x393   :  { %1479 = vmatmul.bf16.vlgmr.msrb.gmra.mxu0 %v1406_v57  ;;  %1605 = vmatpush.bf16.msra.mxu2 %v5394_v14  ;;  %v5386_v57 = vor.u32 %v6771_v36, %v5383_v18  ;;  %v1372_v47 = vmul.f32 %v7163_v51, %v1371_v37  ;;  %v563_v14 = vadd.f32 %v7684_v6, %v7688_v17  ;;  %v6791_v6 = vld [vmem:[#allocation17 + $0x30] sm:$0xff] }
 0x394   :  { %1722 = vmatpush.bf16.msra.mxu3 %v6791_v6  ;;  %v6787_v37 = vld [vmem:[#allocation17 + $0x10] sm:$0xff] }
 0x395   :  { %1594 = vmatpush.bf16.msrb.mxu1 %v5374_v8  ;;  %v1373_v42 = vadd.f32 %v7163_v51, %v1372_v47  ;;  %v6790_v8 = vld [vmem:[#allocation17 + $0x28] sm:$0xff]  ;;  %v592_v47 = vadd.f32 %v7652_v62, %v7657_v13  ;;  %v5511_v6 = vld [vmem:[#allocation13 + $0x50] sm:$0xf] }
 0x397   :  { %1606 = vmatpush.bf16.msra.mxu2 %v5386_v57  ;;  %v1377_v3 = vsel %vm1376_vm6, %v7163_v51, %v1373_v42 }
 0x398   :  { %v1382_v5 = vsel %vm1379_vm7, %v1381_v1, %v1377_v3  ;;  %1723 = vmatpush.bf16.msra.mxu3 %v6790_v8  ;;  %v621_v3 = vadd.f32 %v7735_v55, %v7738_v61  ;;  %v6804_v8 = vld [vmem:[#allocation13 + $0x54] sm:$0xf0] }
 0x399   :  { %v1384_v20 = vmul.f32 0.875, %v1382_v5 }
 0x39b   :  { %1607 = vmatpush.bf16.msra.mxu2 %v5378_v10  ;;  %v1385_v26 = vadd.f32 0.125, %v1384_v20  ;;  %v6788_v10 = vld [vmem:[#allocation17 + $0x18] sm:$0xff] }
 0x39c   :  { %1724 = vmatpush.bf16.msra.mxu3 %v6789_v52 }
 0x39d   :  { %v1487_v18 = vsub.f32 1.0, %v1385_v26  ;;  %v1486_v7 = vmul.f32 %v1385_v26, %v7726_v27  ;;  %v6786_v27 = vld [vmem:[#allocation17 + $0x8] sm:$0xff] }
 0x3a0   :  { %1725 = vmatpush.bf16.msra.mxu3 %v6788_v10  ;;  %v6803_v10 = vld [vmem:[#allocation13 + $0x54] sm:$0xf] }
 0x3a4   :  { %1726 = vmatpush.bf16.msra.mxu3 %v6787_v37  ;;  %v5513_v37 = vld [vmem:[#allocation13 + $0x58] sm:$0xf0] }
 0x3a8   :  { %1727 = vmatpush.bf16.msra.mxu3 %v6786_v27  ;;  %v5512_v27 = vor.u32 %v6804_v8, %v5511_v6 }
 0x3ac   :  { %1728 = vmatpush.bf16.msra.mxu3 %v6785_v30  ;;  %v5503_v30 = vld [vmem:[#allocation13 + $0x40] sm:$0xf] }
 0x410   :  { %v1480_v59 = vpop.f32.mrf.mxu0 }
 0x411   :  { %v1484_v36 = vadd.f32 %v1480_v59, %v563_v14  ;;  %v5527_v59 = vld [vmem:[#allocation13 + $0x70] sm:$0xf] }
 0x413   :  { %7164 = vtanh.f32 %v1484_v36  ;;  %v6808_v36 = vld [vmem:[#allocation13 + $0x74] sm:$0xf0] }
 0x414   :  { %v5528_v26 = vor.u32 %v6808_v36, %v5527_v59 }
 0x416   :  { %1851 = vmatpush.bf16.msra.mxu0 %v5528_v26 }
 0x418   :  { %v1482_v57 = vpop.f32.mrf.mxu0 }
 0x419   :  { %v7165_v38 = vpop.eup %7164  ;;  %v5529_v57 = vld [vmem:[#allocation13 + $0x78] sm:$0xf0] }
 0x41a   :  { %v1488_v21 = vmul.f32 %v7165_v38, %v1487_v18  ;;  %v6807_v18 = vld [vmem:[#allocation13 + $0x74] sm:$0xf]  ;;  %v5519_v38 = vld [vmem:[#allocation13 + $0x60] sm:$0xf] }
 0x41b   :  { %v5532_v62 = vor.u32 %v6807_v18, %v5529_v57 }
 0x41c   :  { %v7820_v39 = vadd.f32 %v1488_v21, %v1486_v7  ;;  %v6806_v7 = vld [vmem:[#allocation13 + $0x64] sm:$0xf0]  ;;  %v6805_v21 = vld [vmem:[#allocation13 + $0x64] sm:$0xf] }
 0x41d   :  { %v5520_v22 = vor.u32 %v6806_v7, %v5519_v38  ;;  %1864 = vmatpush.bf16.msra.mxu1 %v5532_v62 }
 0x41e   :  { %v1490_v51 = vpack.c.bf16 %v7820_v39, %v7820_v39 }
 0x41f   :  { %1852 = vmatpush.bf16.msra.mxu0 %v5520_v22 }
 0x420   :  { %1595 = vmatmul.bf16.vlgmr.msrb.gmra.mxu1 %v1490_v51  ;;  %1608 = vmatmul.bf16.vlgmr.msra.gmra.mxu2 %v1490_v51  ;;  %v5521_v51 = vld [vmem:[#allocation13 + $0x68] sm:$0xf0] }
 0x421   :  { %v5524_v55 = vor.u32 %v6805_v21, %v5521_v51 }
 0x423   :  { %1865 = vmatpush.bf16.msra.mxu1 %v5524_v55  ;;  %1853 = vmatpush.bf16.msra.mxu0 %v5512_v27  ;;  %v6800_v27 = vld [vmem:[#allocation13 + $0x34] sm:$0xf0] }
 0x49d   :  { %v1596_v42 = vpop.f32.mrf.mxu1 }
 0x49e   :  { %v1613_v56 = vadd.f32 %v1596_v42, %v592_v47  ;;  %v5516_v42 = vor.u32 %v6803_v10, %v5513_v37  ;;  %v5495_v37 = vld [vmem:[#allocation13 + $0x30] sm:$0xf] }
 0x4a0   :  { %1866 = vmatpush.bf16.msra.mxu1 %v5516_v42  ;;  %v5435_v8 = vmul.f32 -1.442695, %v1613_v56  ;;  %v5496_v42 = vor.u32 %v6800_v27, %v5495_v37 }
 0x4a3   :  { %v1609_v1 = vpop.f32.mrf.mxu2 }
 0x4a4   :  { %v1614_v5 = vadd.f32 %v1609_v1, %v621_v3  ;;  %v6802_v3 = vld [vmem:[#allocation13 + $0x44] sm:$0xf0] }
 0x4a5   :  { %v1598_v14 = vpop.f32.mrf.mxu1 }
 0x4a6   :  { %v5436_v20 = vmul.f32 -1.442695, %v1614_v5  ;;  %v6801_v5 = vld [vmem:[#allocation13 + $0x44] sm:$0xf]  ;;  %v5505_v14 = vld [vmem:[#allocation13 + $0x48] sm:$0xf0] }
 0x4a7   :  { %v5508_v59 = vor.u32 %v6801_v5, %v5505_v14  ;;  %v6798_v5 = vld [vmem:[#allocation13 + $0x24] sm:$0xf0]  ;;  %v6797_v14 = vld [vmem:[#allocation13 + $0x24] sm:$0xf] }
 0x4a8   :  { %7166 = vpow2.f32 %v5436_v20  ;;  %v5504_v20 = vor.u32 %v6802_v3, %v5503_v30  ;;  %v5497_v30 = vld [vmem:[#allocation13 + $0x38] sm:$0xf0] }
 0x4a9   :  { %1867 = vmatpush.bf16.msra.mxu1 %v5508_v59  ;;  %v5489_v59 = vld [vmem:[#allocation13 + $0x28] sm:$0xf0] }
 0x4aa   :  { %1854 = vmatpush.bf16.msra.mxu0 %v5504_v20 }
 0x4ab   :  { %v1611_v52 = vpop.f32.mrf.mxu2 }
 0x4ae   :  { %v7167_v47 = vpop.eup %7166  ;;  %1855 = vmatpush.bf16.msra.mxu0 %v5496_v42 }
 0x4af   :  { %v1639_v1 = vadd.f32 1.0, %v7167_v47  ;;  %v6799_v47 = vld [vmem:[#allocation13 + $0x34] sm:$0xf] }
 0x4b0   :  { %v5500_v3 = vor.u32 %v6799_v47, %v5497_v30 }
 0x4b1   :  { %7168 = vrcp.f32 %v1639_v1  ;;  %v1651_v57 = vand.u32 2147483648, %v1639_v1  ;;  %v1649_v62 = vand.u32 2147483647, %v1639_v1  ;;  %vm1645_vm9 = vweird.f32 %v1639_v1 }
 0x4b2   :  { %7170 = vpow2.f32 %v5435_v8  ;;  %1868 = vmatpush.bf16.msra.mxu1 %v5500_v3  ;;  %v5473_v8 = vld [vmem:[#allocation13 + $0x8] sm:$0xf0] }
 0x4b3   :  { %v1652_v21 = vor.u32 1.1754944e-38, %v1651_v57  ;;  %vm1650_vm11 = vcmp.eq.f32.partialorder %v1649_v62, 8.507059e+37  ;;  %v6795_v57 = vld [vmem:[#allocation13 + $0x14] sm:$0xf]  ;;  %v5481_v62 = vld [vmem:[#allocation13 + $0x18] sm:$0xf0] }
 0x4b7   :  { %v7169_v36 = vpop.eup %7168 }
 0x4b8   :  { %v1641_v26 = vmul.f32 %v7169_v36, %v1639_v1  ;;  %vm1646_vm8 = vweird.f32 %v7169_v36  ;;  %v7171_v52 = vpop.eup %7170  ;;  %v5487_v1 = vld [vmem:[#allocation13 + $0x20] sm:$0xf] }
 0x4b9   :  { %vm1647_vm10 = vmor %vm1645_vm9, %vm1646_vm8  ;;  %v1618_v10 = vadd.f32 1.0, %v7171_v52  ;;  %v5488_v20 = vor.u32 %v6798_v5, %v5487_v1 }
 0x4ba   :  { %v1642_v18 = vsub.f32 1.0, %v1641_v26  ;;  %v5479_v26 = vld [vmem:[#allocation13 + $0x10] sm:$0xf] }
 0x4bb   :  { %7172 = vrcp.f32 %v1618_v10  ;;  %1856 = vmatpush.bf16.msra.mxu0 %v5488_v20  ;;  %v1630_v42 = vand.u32 2147483648, %v1618_v10  ;;  %vm1624_vm13 = vweird.f32 %v1618_v10  ;;  %v1628_v30 = vand.u32 2147483647, %v1618_v10 }
 0x4bc   :  { %v1643_v38 = vmul.f32 %v7169_v36, %v1642_v18  ;;  %v6796_v18 = vld [vmem:[#allocation13 + $0x14] sm:$0xf0] }
 0x4bd   :  { %v1631_v1 = vor.u32 1.1754944e-38, %v1630_v42  ;;  %vm1629_vm15 = vcmp.eq.f32.partialorder %v1628_v30, 8.507059e+37 }
 0x4be   :  { %v1644_v7 = vadd.f32 %v7169_v36, %v1643_v38  ;;  %v5480_v38 = vor.u32 %v6796_v18, %v5479_v26 }
 0x4c0   :  { %v1648_v51 = vsel %vm1647_vm10, %v7169_v36, %v1644_v7  ;;  %v5492_v36 = vor.u32 %v6797_v14, %v5489_v59  ;;  %v5484_v7 = vor.u32 %v6795_v57, %v5481_v62  ;;  %1857 = vmatpush.bf16.msra.mxu0 %v5480_v38  ;;  %v650_v14 = vadd.f32 %v7781_v33, %v7784_v34  ;;  %v6816_v33 = vld [vmem:[#allocation14 + $0x38] sm:$0xff] }
 0x4c1   :  { %v1653_v22 = vsel %vm1650_vm11, %v1652_v21, %v1648_v51  ;;  %v7173_v56 = vpop.eup %7172  ;;  %v5471_v51 = vld [vmem:[#allocation13] sm:$0xf]  ;;  %1985 = vmatpush.bf16.msrb.mxu2 %v6816_v33  ;;  %v6828_v33 = vld [vmem:[#allocation16 + $0x54] sm:$0xf0] }
 0x4c2   :  { %v1655_v55 = vmul.f32 %v1653_v22, %v7820_v39  ;;  %1869 = vmatpush.bf16.msra.mxu1 %v5492_v36  ;;  %v1620_v21 = vmul.f32 %v7173_v56, %v1618_v10  ;;  %v6794_v22 = vld [vmem:[#allocation13 + $0x4] sm:$0xf0]  ;;  %vm1625_vm12 = vweird.f32 %v7173_v56 }
 0x4c3   :  { %vm1626_vm14 = vmor %vm1624_vm13, %vm1625_vm12 }
 0x4c4   :  { %v1656_v6 = vpack.c.bf16 %v1655_v55, %v1655_v55  ;;  %v6793_v55 = vld [vmem:[#allocation13 + $0x4] sm:$0xf]  ;;  %v1621_v37 = vsub.f32 1.0, %v1620_v21 }
 0x4c5   :  { %v5476_v52 = vor.u32 %v6793_v55, %v5473_v8  ;;  %v6813_v55 = vld [vmem:[#allocation14 + $0x20] sm:$0xff]  ;;  %v6810_v8 = vld [vmem:[#allocation14 + $0x8] sm:$0xff] }
 0x4c6   :  { %1729 = vmatmul.bf16.vlgmr.msra.gmra.mxu3 %v1656_v6  ;;  %1870 = vmatpush.bf16.msra.mxu1 %v5484_v7  ;;  %v5472_v6 = vor.u32 %v6794_v22, %v5471_v51  ;;  %v1622_v27 = vmul.f32 %v7173_v56, %v1621_v37  ;;  %v6815_v51 = vld [vmem:[#allocation14 + $0x30] sm:$0xff]  ;;  %v6814_v22 = vld [vmem:[#allocation14 + $0x28] sm:$0xff]  ;;  %v508_v37 = vadd.f32 %v7716_v28, %v7711_v45 }
 0x4c7   :  { %1986 = vmatpush.bf16.msrb.mxu2 %v6815_v51  ;;  %v5619_v28 = vld [vmem:[#allocation16 + $0x68] sm:$0xf0]  ;;  %v6827_v51 = vld [vmem:[#allocation16 + $0x54] sm:$0xf] }
 0x4c8   :  { %1858 = vmatpush.bf16.msra.mxu0 %v5472_v6  ;;  %v1623_v47 = vadd.f32 %v7173_v56, %v1622_v27  ;;  %v6811_v6 = vld [vmem:[#allocation14 + $0x10] sm:$0xff]  ;;  %v537_v27 = vadd.f32 %v7762_v23, %v7678_v48 }
 0x4ca   :  { %1871 = vmatpush.bf16.msra.mxu1 %v5476_v52  ;;  %v1627_v3 = vsel %vm1626_vm14, %v7173_v56, %v1623_v47  ;;  %v6809_v52 = vld [vmem:[#allocation14] sm:$0xff] }
 0x4cb   :  { %v1632_v5 = vsel %vm1629_vm15, %v1631_v1, %v1627_v3  ;;  %1987 = vmatpush.bf16.msrb.mxu2 %v6814_v22  ;;  %v5611_v22 = vld [vmem:[#allocation16 + $0x58] sm:$0xf0] }
 0x4cc   :  { %v1634_v20 = vmul.f32 0.875, %v1632_v5  ;;  %v5625_v5 = vld [vmem:[#allocation16 + $0x70] sm:$0xf] }
 0x4ce   :  { %v1635_v26 = vadd.f32 0.125, %v1634_v20  ;;  %v6831_v20 = vld [vmem:[#allocation16 + $0x74] sm:$0xf] }
 0x4cf   :  { %1988 = vmatpush.bf16.msrb.mxu2 %v6813_v55 }
 0x4d0   :  { %v1737_v18 = vsub.f32 1.0, %v1635_v26  ;;  %v1736_v62 = vmul.f32 %v1635_v26, %v7806_v46  ;;  %v6812_v46 = vld [vmem:[#allocation14 + $0x18] sm:$0xff]  ;;  %v5617_v26 = vld [vmem:[#allocation16 + $0x60] sm:$0xf] }
 0x4d3   :  { %1989 = vmatpush.bf16.msrb.mxu2 %v6812_v46 }
 0x4d7   :  { %1990 = vmatpush.bf16.msrb.mxu2 %v6811_v6  ;;  %v5614_v6 = vor.u32 %v6827_v51, %v5611_v22  ;;  %v6823_v51 = vld [vmem:[#allocation16 + $0x34] sm:$0xf] }
 0x4db   :  { %1991 = vmatpush.bf16.msrb.mxu2 %v6810_v8  ;;  %v5601_v8 = vld [vmem:[#allocation16 + $0x40] sm:$0xf] }
 0x4df   :  { %1992 = vmatpush.bf16.msrb.mxu2 %v6809_v52  ;;  %v6826_v52 = vld [vmem:[#allocation16 + $0x44] sm:$0xf0] }
 0x549   :  { %v1730_v59 = vpop.f32.mrf.mxu3 }
 0x54a   :  { %v1734_v36 = vadd.f32 %v1730_v59, %v650_v14  ;;  %v6832_v14 = vld [vmem:[#allocation16 + $0x74] sm:$0xf0] }
 0x54b   :  { %v5626_v59 = vor.u32 %v6832_v14, %v5625_v5 }
 0x54c   :  { %7174 = vtanh.f32 %v1734_v36  ;;  %v5627_v36 = vld [vmem:[#allocation16 + $0x78] sm:$0xf0] }
 0x54d   :  { %2101 = vmatpush.bf16.msrb.mxu3 %v5626_v59 }
 0x551   :  { %v1732_v57 = vpop.f32.mrf.mxu3 }
 0x552   :  { %v7175_v38 = vpop.eup %7174  ;;  %v5630_v57 = vor.u32 %v6831_v20, %v5627_v36 }
 0x553   :  { %v1738_v7 = vmul.f32 %v7175_v38, %v1737_v18  ;;  %v6830_v18 = vld [vmem:[#allocation16 + $0x64] sm:$0xf0]  ;;  %v6829_v38 = vld [vmem:[#allocation16 + $0x64] sm:$0xf] }
 0x554   :  { %2114 = vmatpush.bf16.msrb.mxu0 %v5630_v57 }
 0x555   :  { %v7832_v10 = vadd.f32 %v1738_v7, %v1736_v62  ;;  %v5618_v62 = vor.u32 %v6830_v18, %v5617_v26 }
 0x557   :  { %v7089_v56 = vpack.c.bf16 %v7832_v10, %v7820_v39  ;;  %v1744_v21 = vpack.c.bf16 %v7832_v10, %v7832_v10  ;;  %2102 = vmatpush.bf16.msrb.mxu3 %v5618_v62 }
 0x559   :  { %7090 = vst [vmem:[#allocation19 + $0x8] sm:$0xff] %v7089_v56   ;;  %1859 = vmatmul.bf16.vlgmr.msra.gmra.mxu0 %v1744_v21  ;;  %1872 = vmatmul.bf16.vlgmr.msra.gmra.mxu1 %v1744_v21  ;;  %v5622_v56 = vor.u32 %v6829_v38, %v5619_v28  ;;  %v5609_v21 = vld [vmem:[#allocation16 + $0x50] sm:$0xf] }
 0x55a   :  { %v5610_v55 = vor.u32 %v6828_v33, %v5609_v21  ;;  %v5593_v21 = vld [vmem:[#allocation16 + $0x30] sm:$0xf]  ;;  %v6824_v33 = vld [vmem:[#allocation16 + $0x34] sm:$0xf0] }
 0x55b   :  { %2115 = vmatpush.bf16.msrb.mxu0 %v5622_v56  ;;  %v5594_v22 = vor.u32 %v6824_v33, %v5593_v21 }
 0x55c   :  { %2103 = vmatpush.bf16.msrb.mxu3 %v5610_v55  ;;  %v5595_v55 = vld [vmem:[#allocation16 + $0x38] sm:$0xf0] }
 0x55f   :  { %2116 = vmatpush.bf16.msrb.mxu0 %v5614_v6  ;;  %v5585_v6 = vld [vmem:[#allocation16 + $0x20] sm:$0xf] }
 0x5d6   :  { %v1860_v47 = vpop.f32.mrf.mxu0  ;;  %v1873_v42 = vpop.f32.mrf.mxu1 }
 0x5d7   :  { %v1877_v30 = vadd.f32 %v1860_v47, %v508_v37  ;;  %v1878_v3 = vadd.f32 %v1873_v42, %v537_v27  ;;  %v6825_v27 = vld [vmem:[#allocation16 + $0x44] sm:$0xf]  ;;  %v5603_v47 = vld [vmem:[#allocation16 + $0x48] sm:$0xf0]  ;;  %v5602_v42 = vor.u32 %v6826_v52, %v5601_v8  ;;  %v6822_v8 = vld [vmem:[#allocation16 + $0x24] sm:$0xf0] }
 0x5d8   :  { %v6821_v52 = vld [vmem:[#allocation16 + $0x24] sm:$0xf] }
 0x5d9   :  { %v5534_v1 = vmul.f32 -1.442695, %v1878_v3  ;;  %v5606_v3 = vor.u32 %v6825_v27, %v5603_v47  ;;  %2104 = vmatpush.bf16.msrb.mxu3 %v5602_v42  ;;  %v5587_v27 = vld [vmem:[#allocation16 + $0x28] sm:$0xf0]  ;;  %v6820_v42 = vld [vmem:[#allocation16 + $0x14] sm:$0xf0] }
 0x5da   :  { %v5590_v47 = vor.u32 %v6821_v52, %v5587_v27 }
 0x5db   :  { %7176 = vpow2.f32 %v5534_v1  ;;  %2117 = vmatpush.bf16.msrb.mxu0 %v5606_v3  ;;  %v6819_v3 = vld [vmem:[#allocation16 + $0x14] sm:$0xf] }
 0x5dd   :  { %2105 = vmatpush.bf16.msrb.mxu3 %v5594_v22 }
 0x5de   :  { %v1862_v23 = vpop.f32.mrf.mxu0  ;;  %v1875_v7 = vpop.f32.mrf.mxu1 }
 0x5df   :  { %v5533_v23 = vmul.f32 -1.442695, %v1877_v30  ;;  %v5577_v30 = vld [vmem:[#allocation16 + $0x10] sm:$0xf] }
 0x5e1   :  { %v7177_v46 = vpop.eup %7176 }
 0x5e2   :  { %v1903_v37 = vadd.f32 1.0, %v7177_v46  ;;  %v5598_v46 = vor.u32 %v6823_v51, %v5595_v55 }
 0x5e4   :  { %7178 = vrcp.f32 %v1903_v37  ;;  %v1915_v20 = vand.u32 2147483648, %v1903_v37  ;;  %v1913_v36 = vand.u32 2147483647, %v1903_v37  ;;  %vm1909_vm1 = vweird.f32 %v1903_v37  ;;  %2118 = vmatpush.bf16.msrb.mxu0 %v5598_v46 }
 0x5e5   :  { %7180 = vpow2.f32 %v5533_v23 }
 0x5e6   :  { %v1916_v18 = vor.u32 1.1754944e-38, %v1915_v20  ;;  %vm1914_vm3 = vcmp.eq.f32.partialorder %v1913_v36, 8.507059e+37  ;;  %v5569_v36 = vld [vmem:[#allocation16] sm:$0xf] }
 0x5e8   :  { %2119 = vmatpush.bf16.msrb.mxu0 %v5590_v47 }
 0x5ea   :  { %v7179_v1 = vpop.eup %7178 }
 0x5eb   :  { %v1905_v5 = vmul.f32 %v7179_v1, %v1903_v37  ;;  %vm1910_vm0 = vweird.f32 %v7179_v1  ;;  %v7181_v7 = vpop.eup %7180  ;;  %v5586_v37 = vor.u32 %v6822_v8, %v5585_v6 }
 0x5ec   :  { %vm1911_vm2 = vmor %vm1909_vm1, %vm1910_vm0  ;;  %v1882_v56 = vadd.f32 1.0, %v7181_v7 }
 0x5ed   :  { %v1906_v14 = vsub.f32 1.0, %v1905_v5  ;;  %2106 = vmatpush.bf16.msrb.mxu3 %v5586_v37  ;;  %v5578_v5 = vor.u32 %v6820_v42, %v5577_v30 }
 0x5ee   :  { %7182 = vrcp.f32 %v1882_v56  ;;  %v1894_v21 = vand.u32 2147483648, %v1882_v56  ;;  %vm1888_vm5 = vweird.f32 %v1882_v56  ;;  %v1892_v33 = vand.u32 2147483647, %v1882_v56 }
 0x5ef   :  { %v1907_v59 = vmul.f32 %v7179_v1, %v1906_v14  ;;  %v5579_v14 = vld [vmem:[#allocation16 + $0x18] sm:$0xf0] }
 0x5f0   :  { %v5582_v20 = vor.u32 %v6819_v3, %v5579_v14  ;;  %v1895_v22 = vor.u32 1.1754944e-38, %v1894_v21  ;;  %vm1893_vm7 = vcmp.eq.f32.partialorder %v1892_v33, 8.507059e+37  ;;  %v6837_v14 = vld [vmem:[#allocation17 + $0x20] sm:$0xff] }
 0x5f1   :  { %v1908_v26 = vadd.f32 %v7179_v1, %v1907_v59  ;;  %2107 = vmatpush.bf16.msrb.mxu3 %v5578_v5  ;;  %v6839_v5 = vld [vmem:[#allocation17 + $0x30] sm:$0xff]  ;;  %v5715_v21 = vld [vmem:[#allocation13 + $0x60] sm:$0xf] }
 0x5f2   :  { %2120 = vmatpush.bf16.msrb.mxu0 %v5582_v20  ;;  %v6836_v20 = vld [vmem:[#allocation17 + $0x18] sm:$0xff] }
 0x5f3   :  { %v1912_v57 = vsel %vm1911_vm2, %v7179_v1, %v1908_v26  ;;  %v6818_v26 = vld [vmem:[#allocation16 + $0x4] sm:$0xf0] }
 0x5f4   :  { %v1917_v38 = vsel %vm1914_vm3, %v1916_v18, %v1912_v57  ;;  %v7183_v1 = vpop.eup %7182  ;;  %v6817_v18 = vld [vmem:[#allocation16 + $0x4] sm:$0xf]  ;;  %v5570_v57 = vor.u32 %v6818_v26, %v5569_v36 }
 0x5f5   :  { %v1919_v28 = vmul.f32 %v1917_v38, %v7832_v10  ;;  %v1884_v59 = vmul.f32 %v7183_v1, %v1882_v56  ;;  %v5571_v38 = vld [vmem:[#allocation16 + $0x8] sm:$0xf0]  ;;  %vm1889_vm4 = vweird.f32 %v7183_v1  ;;  %v6833_v36 = vld [vmem:[#allocation17] sm:$0xff] }
 0x5f6   :  { %2108 = vmatpush.bf16.msrb.mxu3 %v5570_v57  ;;  %vm1890_vm6 = vmor %vm1888_vm5, %vm1889_vm4 }
 0x5f7   :  { %v1920_v62 = vpack.c.bf16 %v1919_v28, %v1919_v28  ;;  %v5574_v28 = vor.u32 %v6817_v18, %v5571_v38  ;;  %v5723_v38 = vld [vmem:[#allocation13 + $0x70] sm:$0xf] }
 0x5f9   :  { %1993 = vmatmul.bf16.vlgmr.msrb.gmra.mxu2 %v1920_v62  ;;  %v1885_v62 = vsub.f32 1.0, %v1884_v59  ;;  %2121 = vmatpush.bf16.msrb.mxu0 %v5574_v28  ;;  %v6835_v59 = vld [vmem:[#allocation17 + $0x10] sm:$0xff]  ;;  %v6856_v28 = vld [vmem:[#allocation13 + $0x74] sm:$0xf0] }
 0x5fb   :  { %v1886_v23 = vmul.f32 %v7183_v1, %v1885_v62  ;;  %v5724_v62 = vor.u32 %v6856_v28, %v5723_v38 }
 0x5fd   :  { %v1887_v7 = vadd.f32 %v7183_v1, %v1886_v23  ;;  %v6855_v23 = vld [vmem:[#allocation13 + $0x74] sm:$0xf]  ;;  %2365 = vmatpush.bf16.msra.mxu2 %v5724_v62 }
 0x5ff   :  { %v1891_v51 = vsel %vm1890_vm6, %v7183_v1, %v1887_v7  ;;  %v6840_v1 = vld [vmem:[#allocation17 + $0x38] sm:$0xff] }
 0x600   :  { %v1896_v55 = vsel %vm1893_vm7, %v1895_v22, %v1891_v51  ;;  %2235 = vmatpush.bf16.msrb.mxu1 %v6840_v1  ;;  %v5725_v7 = vld [vmem:[#allocation13 + $0x78] sm:$0xf0]  ;;  %v6854_v51 = vld [vmem:[#allocation13 + $0x64] sm:$0xf0]  ;;  %v6853_v22 = vld [vmem:[#allocation13 + $0x64] sm:$0xf] }
 0x601   :  { %v1898_v46 = vmul.f32 0.875, %v1896_v55  ;;  %v5728_v33 = vor.u32 %v6855_v23, %v5725_v7  ;;  %v5717_v55 = vld [vmem:[#allocation13 + $0x68] sm:$0xf0] }
 0x603   :  { %v1899_v52 = vadd.f32 0.125, %v1898_v46  ;;  %2378 = vmatpush.bf16.msra.mxu3 %v5728_v33 }
 0x604   :  { %2236 = vmatpush.bf16.msrb.mxu1 %v6839_v5  ;;  %v5699_v5 = vld [vmem:[#allocation13 + $0x40] sm:$0xf] }
 0x605   :  { %v2001_v37 = vsub.f32 1.0, %v1899_v52  ;;  %v2000_v30 = vmul.f32 %v1899_v52, %v7820_v39  ;;  %v6834_v39 = vld [vmem:[#allocation17 + $0x8] sm:$0xff]  ;;  %v5720_v52 = vor.u32 %v6853_v22, %v5717_v55 }
 0x607   :  { %2379 = vmatpush.bf16.msra.mxu3 %v5720_v52  ;;  %v5691_v52 = vld [vmem:[#allocation13 + $0x30] sm:$0xf] }
 0x67c   :  { %v1994_v6 = vpop.f32.mrf.mxu2 }
 0x67d   :  { %v1998_v8 = vadd.f32 %v1994_v6, %v7691_v24  ;;  %v6838_v24 = vld [vmem:[#allocation17 + $0x28] sm:$0xff]  ;;  %v5716_v6 = vor.u32 %v6854_v51, %v5715_v21 }
 0x67e   :  { %2237 = vmatpush.bf16.msrb.mxu1 %v6838_v24  ;;  %v6850_v24 = vld [vmem:[#allocation13 + $0x44] sm:$0xf0] }
 0x67f   :  { %7184 = vtanh.f32 %v1998_v8  ;;  %2366 = vmatpush.bf16.msra.mxu2 %v5716_v6 }
 0x682   :  { %2238 = vmatpush.bf16.msrb.mxu1 %v6837_v14 }
 0x684   :  { %v1996_v27 = vpop.f32.mrf.mxu2 }
 0x685   :  { %v7185_v47 = vpop.eup %7184 }
 0x686   :  { %v2002_v42 = vmul.f32 %v7185_v47, %v2001_v37  ;;  %2239 = vmatpush.bf16.msrb.mxu1 %v6836_v20  ;;  %v6852_v37 = vld [vmem:[#allocation13 + $0x54] sm:$0xf0]  ;;  %v6851_v47 = vld [vmem:[#allocation13 + $0x54] sm:$0xf]  ;;  %v6849_v20 = vld [vmem:[#allocation13 + $0x44] sm:$0xf] }
 0x688   :  { %v7845_v3 = vadd.f32 %v2002_v42, %v2000_v30  ;;  %v5709_v30 = vld [vmem:[#allocation13 + $0x58] sm:$0xf0] }
 0x689   :  { %v5712_v1 = vor.u32 %v6851_v47, %v5709_v30  ;;  %v5693_v47 = vld [vmem:[#allocation13 + $0x38] sm:$0xf0] }
 0x68a   :  { %v2004_v56 = vpack.c.bf16 %v7845_v3, %v7845_v3  ;;  %2240 = vmatpush.bf16.msrb.mxu1 %v6835_v59  ;;  %v5701_v59 = vld [vmem:[#allocation13 + $0x48] sm:$0xf0] }
 0x68b   :  { %2380 = vmatpush.bf16.msra.mxu3 %v5712_v1  ;;  %v6845_v1 = vld [vmem:[#allocation13 + $0x24] sm:$0xf] }
 0x68c   :  { %2109 = vmatmul.bf16.vlgmr.msrb.gmra.mxu3 %v2004_v56  ;;  %2122 = vmatmul.bf16.vlgmr.msrb.gmra.mxu0 %v2004_v56 }
 0x68e   :  { %2241 = vmatpush.bf16.msrb.mxu1 %v6834_v39 }
 0x692   :  { %2242 = vmatpush.bf16.msrb.mxu1 %v6833_v36  ;;  %v5704_v36 = vor.u32 %v6849_v20, %v5701_v59  ;;  %v6844_v20 = vld [vmem:[#allocation13 + $0x14] sm:$0xf0]  ;;  %v6843_v59 = vld [vmem:[#allocation13 + $0x14] sm:$0xf] }
 0x694   :  { %2381 = vmatpush.bf16.msra.mxu3 %v5704_v36  ;;  %v5677_v36 = vld [vmem:[#allocation13 + $0x18] sm:$0xf0] }
 0x709   :  { %v2123_v26 = vpop.f32.mrf.mxu0 }
 0x70a   :  { %v2128_v18 = vadd.f32 %v2123_v26, %v7741_v2  ;;  %v5707_v2 = vld [vmem:[#allocation13 + $0x50] sm:$0xf] }
 0x70b   :  { %v5708_v42 = vor.u32 %v6852_v37, %v5707_v2  ;;  %v6848_v2 = vld [vmem:[#allocation13 + $0x34] sm:$0xf0]  ;;  %v6847_v37 = vld [vmem:[#allocation13 + $0x34] sm:$0xf] }
 0x70c   :  { %v5632_v57 = vmul.f32 -1.442695, %v2128_v18  ;;  %v5696_v30 = vor.u32 %v6847_v37, %v5693_v47 }
 0x70d   :  { %2367 = vmatpush.bf16.msra.mxu2 %v5708_v42  ;;  %v5683_v42 = vld [vmem:[#allocation13 + $0x20] sm:$0xf] }
 0x70e   :  { %7186 = vpow2.f32 %v5632_v57  ;;  %2382 = vmatpush.bf16.msra.mxu3 %v5696_v30 }
 0x70f   :  { %v2110_v46 = vpop.f32.mrf.mxu3 }
 0x710   :  { %v2127_v8 = vadd.f32 %v2110_v46, %v7660_v15  ;;  %v5700_v15 = vor.u32 %v6850_v24, %v5699_v5  ;;  %v5685_v24 = vld [vmem:[#allocation13 + $0x28] sm:$0xf0] }
 0x711   :  { %v2125_v27 = vpop.f32.mrf.mxu0 }
 0x712   :  { %2368 = vmatpush.bf16.msra.mxu2 %v5700_v15  ;;  %v5631_v55 = vmul.f32 -1.442695, %v2127_v8  ;;  %v5692_v27 = vor.u32 %v6848_v2, %v5691_v52  ;;  %v5675_v8 = vld [vmem:[#allocation13 + $0x10] sm:$0xf] }
 0x713   :  { %v5676_v15 = vor.u32 %v6844_v20, %v5675_v8  ;;  %v6863_v20 = vld [vmem:[#allocation14 + $0x30] sm:$0xff] }
 0x714   :  { %v7187_v56 = vpop.eup %7186 }
 0x715   :  { %v2153_v14 = vadd.f32 1.0, %v7187_v56  ;;  %v6846_v56 = vld [vmem:[#allocation13 + $0x24] sm:$0xf0] }
 0x716   :  { %2369 = vmatpush.bf16.msra.mxu2 %v5692_v27  ;;  %v5684_v5 = vor.u32 %v6846_v56, %v5683_v42 }
 0x717   :  { %7188 = vrcp.f32 %v2153_v14  ;;  %v2112_v39 = vpop.f32.mrf.mxu3  ;;  %v2165_v38 = vand.u32 2147483648, %v2153_v14  ;;  %v2163_v62 = vand.u32 2147483647, %v2153_v14  ;;  %vm2159_vm9 = vweird.f32 %v2153_v14 }
 0x718   :  { %7190 = vpow2.f32 %v5631_v55 }
 0x719   :  { %v2166_v7 = vor.u32 1.1754944e-38, %v2165_v38  ;;  %vm2164_vm11 = vcmp.eq.f32.partialorder %v2163_v62, 8.507059e+37  ;;  %v6842_v38 = vld [vmem:[#allocation13 + $0x4] sm:$0xf0] }
 0x71a   :  { %2370 = vmatpush.bf16.msra.mxu2 %v5684_v5 }
 0x71d   :  { %v7189_v26 = vpop.eup %7188 }
 0x71e   :  { %v2155_v18 = vmul.f32 %v7189_v26, %v2153_v14  ;;  %vm2160_vm8 = vweird.f32 %v7189_v26  ;;  %v7191_v46 = vpop.eup %7190  ;;  %v5688_v14 = vor.u32 %v6845_v1, %v5685_v24  ;;  %2371 = vmatpush.bf16.msra.mxu2 %v5676_v15  ;;  %v6859_v15 = vld [vmem:[#allocation14 + $0x10] sm:$0xff] }
 0x71f   :  { %vm2161_vm10 = vmor %vm2159_vm9, %vm2160_vm8  ;;  %v2132_v6 = vadd.f32 1.0, %v7191_v46 }
 0x720   :  { %v2156_v57 = vsub.f32 1.0, %v2155_v18  ;;  %2383 = vmatpush.bf16.msra.mxu3 %v5688_v14 }
 0x721   :  { %7192 = vrcp.f32 %v2132_v6  ;;  %vm2138_vm13 = vweird.f32 %v2132_v6  ;;  %v2142_v55 = vand.u32 2147483647, %v2132_v6 }
 0x722   :  { %v2157_v28 = vmul.f32 %v7189_v26, %v2156_v57  ;;  %v5667_v57 = vld [vmem:[#allocation13] sm:$0xf] }
 0x723   :  { %v5668_v62 = vor.u32 %v6842_v38, %v5667_v57  ;;  %vm2143_vm15 = vcmp.eq.f32.partialorder %v2142_v55, 8.507059e+37  ;;  %v6878_v55 = vld [vmem:[#allocation16 + $0x64] sm:$0xf0] }
 0x724   :  { %v2158_v23 = vadd.f32 %v7189_v26, %v2157_v28  ;;  %v6841_v28 = vld [vmem:[#allocation13 + $0x4] sm:$0xf] }
 0x725   :  { %2372 = vmatpush.bf16.msra.mxu2 %v5668_v62 }
 0x726   :  { %v2162_v21 = vsel %vm2161_vm10, %v7189_v26, %v2158_v23  ;;  %v5680_v26 = vor.u32 %v6843_v59, %v5677_v36  ;;  %v5669_v23 = vld [vmem:[#allocation13 + $0x8] sm:$0xf0] }
 0x727   :  { %v2167_v33 = vsel %vm2164_vm11, %v2166_v7, %v2162_v21  ;;  %v7193_v39 = vpop.eup %7192  ;;  %v5672_v7 = vor.u32 %v6841_v28, %v5669_v23  ;;  %v6862_v59 = vld [vmem:[#allocation14 + $0x28] sm:$0xff]  ;;  %v5821_v23 = vld [vmem:[#allocation16 + $0x70] sm:$0xf] }
 0x728   :  { %v2169_v51 = vmul.f32 %v2167_v33, %v7845_v3  ;;  %v2134_v18 = vmul.f32 %v7193_v39, %v2132_v6  ;;  %2384 = vmatpush.bf16.msra.mxu3 %v5680_v26  ;;  %vm2139_vm12 = vweird.f32 %v7193_v39  ;;  %v6858_v36 = vld [vmem:[#allocation14 + $0x8] sm:$0xff]  ;;  %v6857_v26 = vld [vmem:[#allocation14] sm:$0xff] }
 0x729   :  { %vm2140_vm14 = vmor %vm2138_vm13, %vm2139_vm12 }
 0x72a   :  { %v2170_v22 = vpack.c.bf16 %v2169_v51, %v2169_v51  ;;  %v2135_v21 = vsub.f32 1.0, %v2134_v18  ;;  %v539_v18 = vadd.f32 %v7768_v50, %v7678_v48 }
 0x72c   :  { %2243 = vmatmul.bf16.vlgmr.msrb.gmra.mxu1 %v2170_v22  ;;  %2385 = vmatpush.bf16.msra.mxu3 %v5672_v7  ;;  %v2136_v33 = vmul.f32 %v7193_v39, %v2135_v21  ;;  %v2144_v22 = vand.u32 2147483648, %v2132_v6  ;;  %v6880_v7 = vld [vmem:[#allocation16 + $0x74] sm:$0xf0]  ;;  %v6879_v21 = vld [vmem:[#allocation16 + $0x74] sm:$0xf] }
 0x72e   :  { %v2137_v51 = vadd.f32 %v7193_v39, %v2136_v33  ;;  %v2145_v52 = vor.u32 1.1754944e-38, %v2144_v22  ;;  %v5822_v33 = vor.u32 %v6880_v7, %v5821_v23  ;;  %v5813_v22 = vld [vmem:[#allocation16 + $0x60] sm:$0xf] }
 0x730   :  { %v2141_v46 = vsel %vm2140_vm14, %v7193_v39, %v2137_v51  ;;  %v6861_v39 = vld [vmem:[#allocation14 + $0x20] sm:$0xff]  ;;  %v5823_v51 = vld [vmem:[#allocation16 + $0x78] sm:$0xf0]  ;;  %2615 = vmatpush.bf16.msra.mxu1 %v5822_v33 }
 0x731   :  { %v2146_v2 = vsel %vm2143_vm15, %v2145_v52, %v2141_v46  ;;  %v5826_v46 = vor.u32 %v6879_v21, %v5823_v51  ;;  %v6877_v52 = vld [vmem:[#allocation16 + $0x64] sm:$0xf] }
 0x732   :  { %v2148_v37 = vmul.f32 0.875, %v2146_v2  ;;  %v5815_v2 = vld [vmem:[#allocation16 + $0x68] sm:$0xf0] }
 0x733   :  { %2628 = vmatpush.bf16.msrb.mxu2 %v5826_v46 }
 0x734   :  { %v2149_v30 = vadd.f32 0.125, %v2148_v37  ;;  %v5814_v37 = vor.u32 %v6878_v55, %v5813_v22  ;;  %v510_v55 = vadd.f32 %v7718_v49, %v7711_v45 }
 0x736   :  { %v2251_v42 = vsub.f32 1.0, %v2149_v30  ;;  %v2250_v5 = vmul.f32 %v2149_v30, %v7832_v10  ;;  %v6860_v10 = vld [vmem:[#allocation14 + $0x18] sm:$0xff]  ;;  %v5805_v30 = vld [vmem:[#allocation16 + $0x50] sm:$0xf]  ;;  %2616 = vmatpush.bf16.msra.mxu1 %v5814_v37 }
 0x7a9   :  { %v2244_v27 = vpop.f32.mrf.mxu1 }
 0x7aa   :  { %v2248_v47 = vadd.f32 %v2244_v27, %v7787_v43  ;;  %v6864_v43 = vld [vmem:[#allocation14 + $0x38] sm:$0xff] }
 0x7ab   :  { %2499 = vmatpush.bf16.msra.mxu0 %v6864_v43  ;;  %v6874_v43 = vld [vmem:[#allocation16 + $0x44] sm:$0xf0] }
 0x7ac   :  { %7194 = vtanh.f32 %v2248_v47  ;;  %v5818_v47 = vor.u32 %v6877_v52, %v5815_v2 }
 0x7ae   :  { %2629 = vmatpush.bf16.msrb.mxu2 %v5818_v47  ;;  %v6871_v47 = vld [vmem:[#allocation16 + $0x34] sm:$0xf] }
 0x7af   :  { %2500 = vmatpush.bf16.msra.mxu0 %v6863_v20 }
 0x7b1   :  { %v2246_v56 = vpop.f32.mrf.mxu1 }
 0x7b2   :  { %v7195_v1 = vpop.eup %7194  ;;  %v6875_v56 = vld [vmem:[#allocation16 + $0x54] sm:$0xf] }
 0x7b3   :  { %v2252_v24 = vmul.f32 %v7195_v1, %v2251_v42  ;;  %2501 = vmatpush.bf16.msra.mxu0 %v6862_v59  ;;  %v6876_v42 = vld [vmem:[#allocation16 + $0x54] sm:$0xf0]  ;;  %v5807_v1 = vld [vmem:[#allocation16 + $0x58] sm:$0xf0]  ;;  %v6873_v59 = vld [vmem:[#allocation16 + $0x44] sm:$0xf] }
 0x7b5   :  { %v7854_v14 = vadd.f32 %v2252_v24, %v2250_v5  ;;  %v5806_v5 = vor.u32 %v6876_v42, %v5805_v30  ;;  %v5791_v42 = vld [vmem:[#allocation16 + $0x38] sm:$0xf0] }
 0x7b7   :  { %v7094_v6 = vpack.c.bf16 %v7854_v14, %v7845_v3  ;;  %v2258_v8 = vpack.c.bf16 %v7854_v14, %v7854_v14  ;;  %2502 = vmatpush.bf16.msra.mxu0 %v6861_v39  ;;  %v5799_v39 = vld [vmem:[#allocation16 + $0x48] sm:$0xf0]  ;;  %2617 = vmatpush.bf16.msra.mxu1 %v5806_v5  ;;  %v6870_v5 = vld [vmem:[#allocation16 + $0x24] sm:$0xf0] }
 0x7b9   :  { %7095 = vst [vmem:[#allocation19 + $0x10] sm:$0xff] %v7094_v6   ;;  %2373 = vmatmul.bf16.vlgmr.msra.gmra.mxu2 %v2258_v8  ;;  %2386 = vmatmul.bf16.vlgmr.msra.gmra.mxu3 %v2258_v8  ;;  %v5810_v6 = vor.u32 %v6875_v56, %v5807_v1  ;;  %v5797_v8 = vld [vmem:[#allocation16 + $0x40] sm:$0xf]  ;;  %v5794_v56 = vor.u32 %v6871_v47, %v5791_v42 }
 0x7ba   :  { %v5781_v1 = vld [vmem:[#allocation16 + $0x20] sm:$0xf] }
 0x7bb   :  { %2503 = vmatpush.bf16.msra.mxu0 %v6860_v10  ;;  %v5798_v10 = vor.u32 %v6874_v43, %v5797_v8  ;;  %2630 = vmatpush.bf16.msrb.mxu2 %v5810_v6  ;;  %v5782_v6 = vor.u32 %v6870_v5, %v5781_v1  ;;  %v5783_v8 = vld [vmem:[#allocation16 + $0x28] sm:$0xf0]  ;;  %v6868_v43 = vld [vmem:[#allocation16 + $0x14] sm:$0xf0] }
 0x7bd   :  { %2618 = vmatpush.bf16.msra.mxu1 %v5798_v10  ;;  %v5775_v10 = vld [vmem:[#allocation16 + $0x18] sm:$0xf0] }
 0x7bf   :  { %2504 = vmatpush.bf16.msra.mxu0 %v6859_v15  ;;  %v5802_v15 = vor.u32 %v6873_v59, %v5799_v39 }
 0x7c1   :  { %2631 = vmatpush.bf16.msrb.mxu2 %v5802_v15 }
 0x7c3   :  { %2505 = vmatpush.bf16.msra.mxu0 %v6858_v36 }
 0x7c5   :  { %2632 = vmatpush.bf16.msrb.mxu2 %v5794_v56 }
 0x7c7   :  { %2506 = vmatpush.bf16.msra.mxu0 %v6857_v26 }
 0x83c   :  { %v2374_v57 = vpop.f32.mrf.mxu2  ;;  %v2387_v38 = vpop.f32.mrf.mxu3 }
 0x83d   :  { %v2392_v28 = vadd.f32 %v2387_v38, %v539_v18  ;;  %v2391_v46 = vadd.f32 %v2374_v57, %v510_v55  ;;  %v5773_v57 = vld [vmem:[#allocation16 + $0x10] sm:$0xf] }
 0x83e   :  { %v5774_v39 = vor.u32 %v6868_v43, %v5773_v57  ;;  %v6885_v57 = vld [vmem:[#allocation17 + $0x20] sm:$0xff]  ;;  %v6884_v43 = vld [vmem:[#allocation17 + $0x18] sm:$0xff] }
 0x83f   :  { %v5730_v62 = vmul.f32 -1.442695, %v2392_v28  ;;  %v5729_v52 = vmul.f32 -1.442695, %v2391_v46 }
 0x841   :  { %7196 = vpow2.f32 %v5730_v62 }
 0x844   :  { %v2376_v27 = vpop.f32.mrf.mxu2  ;;  %v2389_v50 = vpop.f32.mrf.mxu3 }
 0x845   :  { %v5789_v27 = vld [vmem:[#allocation16 + $0x30] sm:$0xf]  ;;  %v6872_v50 = vld [vmem:[#allocation16 + $0x34] sm:$0xf0] }
 0x846   :  { %v5790_v30 = vor.u32 %v6872_v50, %v5789_v27 }
 0x847   :  { %v7197_v24 = vpop.eup %7196 }
 0x848   :  { %v2417_v20 = vadd.f32 1.0, %v7197_v24  ;;  %2619 = vmatpush.bf16.msra.mxu1 %v5790_v30  ;;  %v6869_v24 = vld [vmem:[#allocation16 + $0x24] sm:$0xf] }
 0x849   :  { %v5786_v49 = vor.u32 %v6869_v24, %v5783_v8  ;;  %v6888_v8 = vld [vmem:[#allocation17 + $0x38] sm:$0xff] }
 0x84a   :  { %7198 = vrcp.f32 %v2417_v20  ;;  %v2429_v38 = vand.u32 2147483648, %v2417_v20  ;;  %v2427_v62 = vand.u32 2147483647, %v2417_v20  ;;  %vm2423_vm1 = vweird.f32 %v2417_v20  ;;  %2749 = vmatpush.bf16.msrb.mxu3 %v6888_v8  ;;  %v6897_v8 = vld [vmem:[#allocation13 + $0x44] sm:$0xf] }
 0x84b   :  { %7200 = vpow2.f32 %v5729_v52  ;;  %2633 = vmatpush.bf16.msrb.mxu2 %v5786_v49  ;;  %v6886_v49 = vld [vmem:[#allocation17 + $0x28] sm:$0xff] }
 0x84c   :  { %v2430_v7 = vor.u32 1.1754944e-38, %v2429_v38  ;;  %vm2428_vm3 = vcmp.eq.f32.partialorder %v2427_v62, 8.507059e+37  ;;  %2620 = vmatpush.bf16.msra.mxu1 %v5782_v6  ;;  %v6865_v38 = vld [vmem:[#allocation16 + $0x4] sm:$0xf]  ;;  %v5767_v62 = vld [vmem:[#allocation16 + $0x8] sm:$0xf0] }
 0x850   :  { %v7199_v36 = vpop.eup %7198  ;;  %2621 = vmatpush.bf16.msra.mxu1 %v5774_v39 }
 0x851   :  { %v2419_v26 = vmul.f32 %v7199_v36, %v2417_v20  ;;  %vm2424_vm0 = vweird.f32 %v7199_v36  ;;  %v7201_v2 = vpop.eup %7200  ;;  %v6867_v20 = vld [vmem:[#allocation16 + $0x14] sm:$0xf] }
 0x852   :  { %vm2425_vm2 = vmor %vm2423_vm1, %vm2424_vm0  ;;  %v2396_v37 = vadd.f32 1.0, %v7201_v2  ;;  %v5778_v15 = vor.u32 %v6867_v20, %v5775_v10  ;;  %v568_v2 = vadd.f32 %v7693_v41, %v7688_v17  ;;  %v6887_v41 = vld [vmem:[#allocation17 + $0x30] sm:$0xff] }
 0x853   :  { %v2420_v18 = vsub.f32 1.0, %v2419_v26  ;;  %v5765_v26 = vld [vmem:[#allocation16] sm:$0xf]  ;;  %2750 = vmatpush.bf16.msrb.mxu3 %v6887_v41  ;;  %v6883_v20 = vld [vmem:[#allocation17 + $0x10] sm:$0xff]  ;;  %v5897_v41 = vld [vmem:[#allocation13 + $0x48] sm:$0xf0] }
 0x854   :  { %7202 = vrcp.f32 %v2396_v37  ;;  %2634 = vmatpush.bf16.msrb.mxu2 %v5778_v15  ;;  %vm2402_vm5 = vweird.f32 %v2396_v37  ;;  %v6881_v15 = vld [vmem:[#allocation17] sm:$0xff] }
 0x855   :  { %v2421_v28 = vmul.f32 %v7199_v36, %v2420_v18  ;;  %v6866_v18 = vld [vmem:[#allocation16 + $0x4] sm:$0xf0] }
 0x857   :  { %v2422_v23 = vadd.f32 %v7199_v36, %v2421_v28  ;;  %v5766_v28 = vor.u32 %v6866_v18, %v5765_v26  ;;  %2751 = vmatpush.bf16.msrb.mxu3 %v6886_v49 }
 0x859   :  { %v2426_v21 = vsel %vm2425_vm2, %v7199_v36, %v2422_v23  ;;  %v5770_v23 = vor.u32 %v6865_v38, %v5767_v62  ;;  %2622 = vmatpush.bf16.msra.mxu1 %v5766_v28  ;;  %v5919_v62 = vld [vmem:[#allocation13 + $0x70] sm:$0xf] }
 0x85a   :  { %v2431_v33 = vsel %vm2428_vm3, %v2430_v7, %v2426_v21  ;;  %v7203_v59 = vpop.eup %7202 }
 0x85b   :  { %v2433_v51 = vmul.f32 %v2431_v33, %v7854_v14  ;;  %v2398_v36 = vmul.f32 %v7203_v59, %v2396_v37  ;;  %2635 = vmatpush.bf16.msrb.mxu2 %v5770_v23  ;;  %vm2403_vm4 = vweird.f32 %v7203_v59  ;;  %2752 = vmatpush.bf16.msrb.mxu3 %v6885_v57  ;;  %v6904_v23 = vld [vmem:[#allocation13 + $0x74] sm:$0xf0]  ;;  %v5900_v57 = vor.u32 %v6897_v8, %v5897_v41  ;;  %v5863_v8 = vld [vmem:[#allocation13] sm:$0xf]  ;;  %v6890_v41 = vld [vmem:[#allocation13 + $0x4] sm:$0xf0] }
 0x85c   :  { %vm2404_vm6 = vmor %vm2402_vm5, %vm2403_vm4 }
 0x85d   :  { %v2434_v22 = vpack.c.bf16 %v2433_v51, %v2433_v51  ;;  %v2399_v7 = vsub.f32 1.0, %v2398_v36  ;;  %v2408_v51 = vand.u32 2147483648, %v2396_v37  ;;  %v626_v36 = vadd.f32 %v7744_v54, %v7738_v61 }
 0x85f   :  { %2507 = vmatmul.bf16.vlgmr.msra.gmra.mxu0 %v2434_v22  ;;  %v2400_v21 = vmul.f32 %v7203_v59, %v2399_v7  ;;  %v2406_v22 = vand.u32 2147483647, %v2396_v37  ;;  %v2409_v46 = vor.u32 1.1754944e-38, %v2408_v51  ;;  %2753 = vmatpush.bf16.msrb.mxu3 %v6884_v43  ;;  %v5920_v7 = vor.u32 %v6904_v23, %v5919_v62  ;;  %v5911_v51 = vld [vmem:[#allocation13 + $0x60] sm:$0xf] }
 0x861   :  { %v2401_v33 = vadd.f32 %v7203_v59, %v2400_v21  ;;  %vm2407_vm7 = vcmp.eq.f32.partialorder %v2406_v22, 8.507059e+37  ;;  %v6903_v21 = vld [vmem:[#allocation13 + $0x74] sm:$0xf]  ;;  %v6902_v22 = vld [vmem:[#allocation13 + $0x64] sm:$0xf0]  ;;  %2879 = vmatpush.bf16.msrb.mxu0 %v5920_v7 }
 0x863   :  { %v2405_v55 = vsel %vm2404_vm6, %v7203_v59, %v2401_v33  ;;  %2754 = vmatpush.bf16.msrb.mxu3 %v6883_v20  ;;  %v597_v59 = vadd.f32 %v7662_v29, %v7657_v13  ;;  %v5921_v33 = vld [vmem:[#allocation13 + $0x78] sm:$0xf0] }
 0x864   :  { %v2410_v52 = vsel %vm2407_vm7, %v2409_v46, %v2405_v55  ;;  %v5924_v29 = vor.u32 %v6903_v21, %v5921_v33  ;;  %v6901_v55 = vld [vmem:[#allocation13 + $0x64] sm:$0xf]  ;;  %v5913_v46 = vld [vmem:[#allocation13 + $0x68] sm:$0xf0]  ;;  %v5887_v33 = vld [vmem:[#allocation13 + $0x30] sm:$0xf] }
 0x865   :  { %v2412_v27 = vmul.f32 0.875, %v2410_v52  ;;  %v5912_v52 = vor.u32 %v6902_v22, %v5911_v51  ;;  %v5916_v54 = vor.u32 %v6901_v55, %v5913_v46  ;;  %v6896_v51 = vld [vmem:[#allocation13 + $0x34] sm:$0xf0]  ;;  %v5889_v55 = vld [vmem:[#allocation13 + $0x38] sm:$0xf0] }
 0x866   :  { %2892 = vmatpush.bf16.msrb.mxu1 %v5924_v29  ;;  %v6895_v29 = vld [vmem:[#allocation13 + $0x34] sm:$0xf]  ;;  %v5888_v22 = vor.u32 %v6896_v51, %v5887_v33 }
 0x867   :  { %v2413_v30 = vadd.f32 0.125, %v2412_v27  ;;  %v6900_v27 = vld [vmem:[#allocation13 + $0x54] sm:$0xf0]  ;;  %2880 = vmatpush.bf16.msrb.mxu0 %v5912_v52  ;;  %v5892_v46 = vor.u32 %v6895_v29, %v5889_v55  ;;  %v5879_v52 = vld [vmem:[#allocation13 + $0x20] sm:$0xf] }
 0x869   :  { %v2515_v42 = vsub.f32 1.0, %v2413_v30  ;;  %v2514_v5 = vmul.f32 %v2413_v30, %v7845_v3  ;;  %v6882_v3 = vld [vmem:[#allocation17 + $0x8] sm:$0xff]  ;;  %v5905_v30 = vld [vmem:[#allocation13 + $0x58] sm:$0xf0] }
 0x86a   :  { %2755 = vmatpush.bf16.msrb.mxu3 %v6882_v3  ;;  %2893 = vmatpush.bf16.msrb.mxu1 %v5916_v54  ;;  %v6894_v54 = vld [vmem:[#allocation13 + $0x24] sm:$0xf0] }
 0x86e   :  { %2756 = vmatpush.bf16.msrb.mxu3 %v6881_v15 }
 0x8dc   :  { %v2508_v50 = vpop.f32.mrf.mxu0 }
 0x8dd   :  { %v2512_v47 = vadd.f32 %v2508_v50, %v568_v2  ;;  %v5903_v2 = vld [vmem:[#allocation13 + $0x50] sm:$0xf] }
 0x8df   :  { %7204 = vtanh.f32 %v2512_v47  ;;  %v6899_v47 = vld [vmem:[#allocation13 + $0x54] sm:$0xf] }
 0x8e4   :  { %v2510_v56 = vpop.f32.mrf.mxu0 }
 0x8e5   :  { %v7205_v1 = vpop.eup %7204 }
 0x8e6   :  { %v2516_v24 = vmul.f32 %v7205_v1, %v2515_v42  ;;  %v5904_v42 = vor.u32 %v6900_v27, %v5903_v2  ;;  %v5908_v1 = vor.u32 %v6899_v47, %v5905_v30  ;;  %v6893_v2 = vld [vmem:[#allocation13 + $0x24] sm:$0xf]  ;;  %v5880_v27 = vor.u32 %v6894_v54, %v5879_v52  ;;  %v5871_v30 = vld [vmem:[#allocation13 + $0x10] sm:$0xf] }
 0x8e8   :  { %v7868_v37 = vadd.f32 %v2516_v24, %v2514_v5  ;;  %v5895_v5 = vld [vmem:[#allocation13 + $0x40] sm:$0xf]  ;;  %v6898_v24 = vld [vmem:[#allocation13 + $0x44] sm:$0xf0]  ;;  %2881 = vmatpush.bf16.msrb.mxu0 %v5904_v42  ;;  %2894 = vmatpush.bf16.msrb.mxu1 %v5908_v1  ;;  %v6892_v42 = vld [vmem:[#allocation13 + $0x14] sm:$0xf0] }
 0x8e9   :  { %v5896_v49 = vor.u32 %v6898_v24, %v5895_v5  ;;  %v5872_v1 = vor.u32 %v6892_v42, %v5871_v30  ;;  %v5873_v5 = vld [vmem:[#allocation13 + $0x18] sm:$0xf0]  ;;  %v6905_v30 = vld [vmem:[#allocation14] sm:$0xff]  ;;  %v513_v42 = vadd.f32 %v7722_v4, %v7711_v45  ;;  %v6011_v4 = vld [vmem:[#allocation16 + $0x68] sm:$0xf0] }
 0x8ea   :  { %v2518_v6 = vpack.c.bf16 %v7868_v37, %v7868_v37 }
 0x8ec   :  { %2623 = vmatmul.bf16.vlgmr.msra.gmra.mxu1 %v2518_v6  ;;  %2636 = vmatmul.bf16.vlgmr.msrb.gmra.mxu2 %v2518_v6 }
 0x8ed   :  { %2882 = vmatpush.bf16.msrb.mxu0 %v5896_v49  ;;  %2895 = vmatpush.bf16.msrb.mxu1 %v5900_v57  ;;  %v6889_v49 = vld [vmem:[#allocation13 + $0x4] sm:$0xf]  ;;  %v5864_v57 = vor.u32 %v6890_v41, %v5863_v8  ;;  %v6017_v41 = vld [vmem:[#allocation16 + $0x70] sm:$0xf] }
 0x8f1   :  { %2883 = vmatpush.bf16.msrb.mxu0 %v5888_v22  ;;  %2896 = vmatpush.bf16.msrb.mxu1 %v5892_v46 }
 0x8f5   :  { %2884 = vmatpush.bf16.msrb.mxu0 %v5880_v27  ;;  %v6910_v27 = vld [vmem:[#allocation14 + $0x28] sm:$0xff] }
 0x8f9   :  { %2885 = vmatpush.bf16.msrb.mxu0 %v5872_v1 }
 0x8fd   :  { %2886 = vmatpush.bf16.msrb.mxu0 %v5864_v57  ;;  %v6927_v57 = vld [vmem:[#allocation16 + $0x74] sm:$0xf] }
 0x969   :  { %v2624_v39 = vpop.f32.mrf.mxu1 }
 0x96a   :  { %v2641_v10 = vadd.f32 %v2624_v39, %v597_v59 }
 0x96c   :  { %v5827_v23 = vmul.f32 -1.442695, %v2641_v10 }
 0x96f   :  { %v2637_v26 = vpop.f32.mrf.mxu2 }
 0x970   :  { %v2642_v18 = vadd.f32 %v2637_v26, %v626_v36 }
 0x971   :  { %v2626_v38 = vpop.f32.mrf.mxu1 }
 0x972   :  { %v5828_v28 = vmul.f32 -1.442695, %v2642_v18 }
 0x974   :  { %7206 = vpow2.f32 %v5828_v28 }
 0x977   :  { %v2639_v50 = vpop.f32.mrf.mxu2 }
 0x978   :  { %v5881_v50 = vld [vmem:[#allocation13 + $0x28] sm:$0xf0] }
 0x979   :  { %v5884_v47 = vor.u32 %v6893_v2, %v5881_v50  ;;  %v6911_v2 = vld [vmem:[#allocation14 + $0x30] sm:$0xff]  ;;  %v6909_v50 = vld [vmem:[#allocation14 + $0x20] sm:$0xff] }
 0x97a   :  { %v7207_v56 = vpop.eup %7206 }
 0x97b   :  { %v2667_v6 = vadd.f32 1.0, %v7207_v56  ;;  %2897 = vmatpush.bf16.msrb.mxu1 %v5884_v47  ;;  %v6891_v56 = vld [vmem:[#allocation13 + $0x14] sm:$0xf] }
 0x97c   :  { %v5876_v24 = vor.u32 %v6891_v56, %v5873_v5  ;;  %v6907_v47 = vld [vmem:[#allocation14 + $0x10] sm:$0xff]  ;;  %v542_v56 = vadd.f32 %v7770_v53, %v7678_v48 }
 0x97d   :  { %7208 = vrcp.f32 %v2667_v6  ;;  %v2679_v59 = vand.u32 2147483648, %v2667_v6  ;;  %v2677_v15 = vand.u32 2147483647, %v2667_v6  ;;  %vm2673_vm9 = vweird.f32 %v2667_v6 }
 0x97e   :  { %7210 = vpow2.f32 %v5827_v23 }
 0x97f   :  { %v2680_v26 = vor.u32 1.1754944e-38, %v2679_v59  ;;  %vm2678_vm11 = vcmp.eq.f32.partialorder %v2677_v15, 8.507059e+37  ;;  %2898 = vmatpush.bf16.msrb.mxu1 %v5876_v24 }
 0x983   :  { %v7209_v43 = vpop.eup %7208 }
 0x984   :  { %v2669_v20 = vmul.f32 %v7209_v43, %v2667_v6  ;;  %vm2674_vm8 = vweird.f32 %v7209_v43  ;;  %v7211_v7 = vpop.eup %7210 }
 0x985   :  { %vm2675_vm10 = vmor %vm2673_vm9, %vm2674_vm8  ;;  %v2646_v21 = vadd.f32 1.0, %v7211_v7 }
 0x986   :  { %v2670_v3 = vsub.f32 1.0, %v2669_v20 }
 0x987   :  { %7212 = vrcp.f32 %v2646_v21  ;;  %v2658_v15 = vand.u32 2147483648, %v2646_v21  ;;  %vm2652_vm13 = vweird.f32 %v2646_v21 }
 0x988   :  { %v2671_v39 = vmul.f32 %v7209_v43, %v2670_v3 }
 0x98a   :  { %v2672_v36 = vadd.f32 %v7209_v43, %v2671_v39 }
 0x98c   :  { %v2676_v18 = vsel %vm2675_vm10, %v7209_v43, %v2672_v36  ;;  %v5865_v43 = vld [vmem:[#allocation13 + $0x8] sm:$0xf0]  ;;  %v2656_v36 = vand.u32 2147483647, %v2646_v21 }
 0x98d   :  { %v2681_v38 = vsel %vm2678_vm11, %v2680_v26, %v2676_v18  ;;  %v7213_v10 = vpop.eup %7212  ;;  %v5868_v20 = vor.u32 %v6889_v49, %v5865_v43  ;;  %v2659_v18 = vor.u32 1.1754944e-38, %v2658_v15  ;;  %v6928_v49 = vld [vmem:[#allocation16 + $0x74] sm:$0xf0]  ;;  %v6925_v15 = vld [vmem:[#allocation16 + $0x64] sm:$0xf] }
 0x98e   :  { %v2683_v28 = vmul.f32 %v2681_v38, %v7868_v37  ;;  %v2648_v6 = vmul.f32 %v7213_v10, %v2646_v21  ;;  %vm2653_vm12 = vweird.f32 %v7213_v10  ;;  %vm2657_vm15 = vcmp.eq.f32.partialorder %v2656_v36, 8.507059e+37 }
 0x98f   :  { %2899 = vmatpush.bf16.msrb.mxu1 %v5868_v20  ;;  %vm2654_vm14 = vmor %vm2652_vm13, %vm2653_vm12  ;;  %v6018_v43 = vor.u32 %v6928_v49, %v6017_v41  ;;  %v6019_v20 = vld [vmem:[#allocation16 + $0x78] sm:$0xf0] }
 0x990   :  { %v2684_v62 = vpack.c.bf16 %v2683_v28, %v2683_v28  ;;  %v2649_v3 = vsub.f32 1.0, %v2648_v6  ;;  %v655_v28 = vadd.f32 %v7789_v44, %v7784_v34  ;;  %v6912_v44 = vld [vmem:[#allocation14 + $0x38] sm:$0xff] }
 0x991   :  { %3013 = vmatpush.bf16.msra.mxu2 %v6912_v44  ;;  %3129 = vmatpush.bf16.msra.mxu3 %v6018_v43  ;;  %v6920_v43 = vld [vmem:[#allocation16 + $0x34] sm:$0xf0] }
 0x992   :  { %2757 = vmatmul.bf16.vlgmr.msrb.gmra.mxu3 %v2684_v62  ;;  %v2650_v59 = vmul.f32 %v7213_v10, %v2649_v3  ;;  %v6009_v3 = vld [vmem:[#allocation16 + $0x60] sm:$0xf] }
 0x994   :  { %v2651_v39 = vadd.f32 %v7213_v10, %v2650_v59  ;;  %v6926_v59 = vld [vmem:[#allocation16 + $0x64] sm:$0xf0] }
 0x995   :  { %3014 = vmatpush.bf16.msra.mxu2 %v6911_v2  ;;  %v6010_v36 = vor.u32 %v6926_v59, %v6009_v3  ;;  %v5987_v59 = vld [vmem:[#allocation16 + $0x38] sm:$0xf0] }
 0x996   :  { %v2655_v26 = vsel %vm2654_vm14, %v7213_v10, %v2651_v39  ;;  %v6906_v10 = vld [vmem:[#allocation14 + $0x8] sm:$0xff]  ;;  %v6022_v39 = vor.u32 %v6927_v57, %v6019_v20  ;;  %v5985_v57 = vld [vmem:[#allocation16 + $0x30] sm:$0xf]  ;;  %v6919_v20 = vld [vmem:[#allocation16 + $0x34] sm:$0xf] }
 0x997   :  { %v2660_v38 = vsel %vm2657_vm15, %v2659_v18, %v2655_v26  ;;  %v6014_v18 = vor.u32 %v6925_v15, %v6011_v4  ;;  %3130 = vmatpush.bf16.msra.mxu3 %v6010_v36  ;;  %v5986_v3 = vor.u32 %v6920_v43, %v5985_v57  ;;  %v5977_v15 = vld [vmem:[#allocation16 + $0x20] sm:$0xf]  ;;  %v6918_v4 = vld [vmem:[#allocation16 + $0x24] sm:$0xf0]  ;;  %v6917_v36 = vld [vmem:[#allocation16 + $0x24] sm:$0xf] }
 0x998   :  { %v2662_v62 = vmul.f32 0.875, %v2660_v38  ;;  %3142 = vmatpush.bf16.msra.mxu0 %v6022_v39  ;;  %v6001_v38 = vld [vmem:[#allocation16 + $0x50] sm:$0xf]  ;;  %v5990_v39 = vor.u32 %v6919_v20, %v5987_v59 }
 0x999   :  { %3015 = vmatpush.bf16.msra.mxu2 %v6910_v27  ;;  %v6935_v59 = vld [vmem:[#allocation17 + $0x30] sm:$0xff] }
 0x99a   :  { %v2663_v33 = vadd.f32 0.125, %v2662_v62  ;;  %v6923_v62 = vld [vmem:[#allocation16 + $0x54] sm:$0xf] }
 0x99c   :  { %v2765_v51 = vsub.f32 1.0, %v2663_v33  ;;  %v2764_v55 = vmul.f32 %v2663_v33, %v7854_v14  ;;  %v6908_v14 = vld [vmem:[#allocation14 + $0x18] sm:$0xff]  ;;  %3143 = vmatpush.bf16.msra.mxu0 %v6014_v18 }
 0x99d   :  { %3016 = vmatpush.bf16.msra.mxu2 %v6909_v50 }
 0x9a1   :  { %3017 = vmatpush.bf16.msra.mxu2 %v6908_v14 }
 0x9a5   :  { %3018 = vmatpush.bf16.msra.mxu2 %v6907_v47 }
 0x9a9   :  { %3019 = vmatpush.bf16.msra.mxu2 %v6906_v10 }
 0x9ad   :  { %3020 = vmatpush.bf16.msra.mxu2 %v6905_v30 }
 0xa15   :  { %v2758_v23 = vpop.f32.mrf.mxu3 }
 0xa16   :  { %v2762_v7 = vadd.f32 %v2758_v23, %v655_v28  ;;  %v6924_v28 = vld [vmem:[#allocation16 + $0x54] sm:$0xf0]  ;;  %v6003_v23 = vld [vmem:[#allocation16 + $0x58] sm:$0xf0] }
 0xa18   :  { %7214 = vtanh.f32 %v2762_v7  ;;  %v6002_v7 = vor.u32 %v6924_v28, %v6001_v38  ;;  %v6916_v38 = vld [vmem:[#allocation16 + $0x14] sm:$0xf0]  ;;  %v6915_v28 = vld [vmem:[#allocation16 + $0x14] sm:$0xf] }
 0xa1a   :  { %3131 = vmatpush.bf16.msra.mxu3 %v6002_v7  ;;  %v5971_v7 = vld [vmem:[#allocation16 + $0x18] sm:$0xf0] }
 0xa1d   :  { %v2760_v29 = vpop.f32.mrf.mxu3 }
 0xa1e   :  { %v7215_v22 = vpop.eup %7214  ;;  %v5993_v29 = vld [vmem:[#allocation16 + $0x40] sm:$0xf] }
 0xa1f   :  { %v2766_v46 = vmul.f32 %v7215_v22, %v2765_v51  ;;  %v6006_v51 = vor.u32 %v6923_v62, %v6003_v23  ;;  %v6922_v22 = vld [vmem:[#allocation16 + $0x44] sm:$0xf0] }
 0xa21   :  { %v7880_v21 = vadd.f32 %v2766_v46, %v2764_v55  ;;  %v6921_v46 = vld [vmem:[#allocation16 + $0x44] sm:$0xf]  ;;  %3144 = vmatpush.bf16.msra.mxu0 %v6006_v51 }
 0xa23   :  { %v7099_v52 = vpack.c.bf16 %v7880_v21, %v7868_v37  ;;  %v2772_v54 = vpack.c.bf16 %v7880_v21, %v7880_v21 }
 0xa25   :  { %7100 = vst [vmem:[#allocation19 + $0x18] sm:$0xff] %v7099_v52   ;;  %2887 = vmatmul.bf16.vlgmr.msrb.gmra.mxu0 %v2772_v54  ;;  %2900 = vmatmul.bf16.vlgmr.msrb.gmra.mxu1 %v2772_v54  ;;  %v5995_v52 = vld [vmem:[#allocation16 + $0x48] sm:$0xf0]  ;;  %v5994_v54 = vor.u32 %v6922_v22, %v5993_v29  ;;  %v5961_v29 = vld [vmem:[#allocation16] sm:$0xf] }
 0xa26   :  { %v5998_v44 = vor.u32 %v6921_v46, %v5995_v52  ;;  %v6914_v22 = vld [vmem:[#allocation16 + $0x4] sm:$0xf0]  ;;  %v5963_v52 = vld [vmem:[#allocation16 + $0x8] sm:$0xf0] }
 0xa27   :  { %3132 = vmatpush.bf16.msra.mxu3 %v5994_v54  ;;  %v5962_v46 = vor.u32 %v6914_v22, %v5961_v29  ;;  %v6949_v29 = vld [vmem:[#allocation13 + $0x64] sm:$0xf]  ;;  %v6109_v22 = vld [vmem:[#allocation13 + $0x68] sm:$0xf0] }
 0xa28   :  { %3145 = vmatpush.bf16.msra.mxu0 %v5998_v44 }
 0xa2b   :  { %3133 = vmatpush.bf16.msra.mxu3 %v5986_v3  ;;  %v6936_v3 = vld [vmem:[#allocation17 + $0x38] sm:$0xff] }
 0xa2c   :  { %3146 = vmatpush.bf16.msra.mxu0 %v5990_v39  ;;  %3263 = vmatpush.bf16.msra.mxu1 %v6936_v3  ;;  %v6933_v39 = vld [vmem:[#allocation17 + $0x20] sm:$0xff] }
 0xa30   :  { %3264 = vmatpush.bf16.msra.mxu1 %v6935_v59 }
 0xaa2   :  { %v2888_v1 = vpop.f32.mrf.mxu0  ;;  %v2901_v5 = vpop.f32.mrf.mxu1 }
 0xaa3   :  { %v2905_v24 = vadd.f32 %v2888_v1, %v513_v42  ;;  %v2906_v6 = vadd.f32 %v2901_v5, %v542_v56 }
 0xaa5   :  { %v5926_v8 = vmul.f32 -1.442695, %v2906_v6 }
 0xaa7   :  { %7216 = vpow2.f32 %v5926_v8  ;;  %v5925_v8 = vmul.f32 -1.442695, %v2905_v24  ;;  %v5969_v24 = vld [vmem:[#allocation16 + $0x10] sm:$0xf] }
 0xaa8   :  { %v5970_v23 = vor.u32 %v6916_v38, %v5969_v24  ;;  %v6115_v24 = vld [vmem:[#allocation13 + $0x70] sm:$0xf]  ;;  %v6952_v38 = vld [vmem:[#allocation13 + $0x74] sm:$0xf0] }
 0xaaa   :  { %v2890_v53 = vpop.f32.mrf.mxu0  ;;  %v2903_v26 = vpop.f32.mrf.mxu1 }
 0xaab   :  { %v5978_v53 = vor.u32 %v6918_v4, %v5977_v15  ;;  %v5979_v26 = vld [vmem:[#allocation16 + $0x28] sm:$0xf0]  ;;  %v6932_v15 = vld [vmem:[#allocation17 + $0x18] sm:$0xff]  ;;  %v6931_v4 = vld [vmem:[#allocation17 + $0x10] sm:$0xff] }
 0xaac   :  { %v5982_v18 = vor.u32 %v6917_v36, %v5979_v26  ;;  %v6929_v36 = vld [vmem:[#allocation17] sm:$0xff] }
 0xaad   :  { %v7217_v33 = vpop.eup %7216  ;;  %3134 = vmatpush.bf16.msra.mxu3 %v5978_v53 }
 0xaae   :  { %v2931_v55 = vadd.f32 1.0, %v7217_v33  ;;  %3147 = vmatpush.bf16.msra.mxu0 %v5982_v18  ;;  %v5974_v33 = vor.u32 %v6915_v28, %v5971_v7  ;;  %v6116_v28 = vor.u32 %v6952_v38, %v6115_v24  ;;  %v6107_v7 = vld [vmem:[#allocation13 + $0x60] sm:$0xf]  ;;  %v6083_v24 = vld [vmem:[#allocation13 + $0x30] sm:$0xf] }
 0xaaf   :  { %v6944_v38 = vld [vmem:[#allocation13 + $0x34] sm:$0xf0] }
 0xab0   :  { %7218 = vrcp.f32 %v2931_v55  ;;  %v2943_v14 = vand.u32 2147483648, %v2931_v55  ;;  %v2941_v10 = vand.u32 2147483647, %v2931_v55  ;;  %vm2937_vm1 = vweird.f32 %v2931_v55  ;;  %3393 = vmatpush.bf16.msrb.mxu2 %v6116_v28  ;;  %v6943_v28 = vld [vmem:[#allocation13 + $0x34] sm:$0xf] }
 0xab1   :  { %7220 = vpow2.f32 %v5925_v8  ;;  %3135 = vmatpush.bf16.msra.mxu3 %v5970_v23  ;;  %v6117_v23 = vld [vmem:[#allocation13 + $0x78] sm:$0xf0] }
 0xab2   :  { %v2944_v42 = vor.u32 1.1754944e-38, %v2943_v14  ;;  %vm2942_vm3 = vcmp.eq.f32.partialorder %v2941_v10, 8.507059e+37  ;;  %3148 = vmatpush.bf16.msra.mxu0 %v5974_v33 }
 0xab5   :  { %3136 = vmatpush.bf16.msra.mxu3 %v5962_v46 }
 0xab6   :  { %v7219_v2 = vpop.eup %7218 }
 0xab7   :  { %v2933_v27 = vmul.f32 %v7219_v2, %v2931_v55  ;;  %vm2938_vm0 = vweird.f32 %v7219_v2  ;;  %v7221_v41 = vpop.eup %7220  ;;  %v6913_v55 = vld [vmem:[#allocation16 + $0x4] sm:$0xf] }
 0xab8   :  { %vm2939_vm2 = vmor %vm2937_vm1, %vm2938_vm0  ;;  %v2910_v49 = vadd.f32 1.0, %v7221_v41  ;;  %v5966_v54 = vor.u32 %v6913_v55, %v5963_v52 }
 0xab9   :  { %v2934_v50 = vsub.f32 1.0, %v2933_v27 }
 0xaba   :  { %7222 = vrcp.f32 %v2910_v49  ;;  %3149 = vmatpush.bf16.msra.mxu0 %v5966_v54  ;;  %vm2916_vm5 = vweird.f32 %v2910_v49  ;;  %v2920_v14 = vand.u32 2147483647, %v2910_v49  ;;  %v6112_v54 = vor.u32 %v6949_v29, %v6109_v22  ;;  %v6941_v29 = vld [vmem:[#allocation13 + $0x24] sm:$0xf] }
 0xabb   :  { %v2935_v47 = vmul.f32 %v7219_v2, %v2934_v50  ;;  %v2922_v50 = vand.u32 2147483648, %v2910_v49 }
 0xabc   :  { %vm2921_vm7 = vcmp.eq.f32.partialorder %v2920_v14, 8.507059e+37 }
 0xabd   :  { %v2936_v30 = vadd.f32 %v7219_v2, %v2935_v47  ;;  %v2923_v10 = vor.u32 1.1754944e-38, %v2922_v50  ;;  %v6101_v50 = vld [vmem:[#allocation13 + $0x58] sm:$0xf0] }
 0xabf   :  { %v2940_v56 = vsel %vm2939_vm2, %v7219_v2, %v2936_v30 }
 0xac0   :  { %v2945_v1 = vsel %vm2942_vm3, %v2944_v42, %v2940_v56  ;;  %v7223_v62 = vpop.eup %7222 }
 0xac1   :  { %v2947_v5 = vmul.f32 %v2945_v1, %v7880_v21  ;;  %v2912_v51 = vmul.f32 %v7223_v62, %v2910_v49  ;;  %vm2917_vm4 = vweird.f32 %v7223_v62 }
 0xac2   :  { %vm2918_vm6 = vmor %vm2916_vm5, %vm2917_vm4 }
 0xac3   :  { %v2948_v6 = vpack.c.bf16 %v2947_v5, %v2947_v5  ;;  %v2913_v44 = vsub.f32 1.0, %v2912_v51  ;;  %v6950_v51 = vld [vmem:[#allocation13 + $0x64] sm:$0xf0] }
 0xac4   :  { %v6108_v46 = vor.u32 %v6950_v51, %v6107_v7  ;;  %v6942_v51 = vld [vmem:[#allocation13 + $0x24] sm:$0xf0] }
 0xac5   :  { %3021 = vmatmul.bf16.vlgmr.msra.gmra.mxu2 %v2948_v6  ;;  %v2914_v2 = vmul.f32 %v7223_v62, %v2913_v44  ;;  %v6948_v44 = vld [vmem:[#allocation13 + $0x54] sm:$0xf0] }
 0xac6   :  { %3394 = vmatpush.bf16.msrb.mxu2 %v6108_v46 }
 0xac7   :  { %v2915_v27 = vadd.f32 %v7223_v62, %v2914_v2 }
 0xac9   :  { %v2919_v47 = vsel %vm2918_vm6, %v7223_v62, %v2915_v27  ;;  %v6951_v62 = vld [vmem:[#allocation13 + $0x74] sm:$0xf] }
 0xaca   :  { %v2924_v30 = vsel %vm2921_vm7, %v2923_v10, %v2919_v47  ;;  %v6120_v33 = vor.u32 %v6951_v62, %v6117_v23  ;;  %v6947_v27 = vld [vmem:[#allocation13 + $0x54] sm:$0xf]  ;;  %v6084_v62 = vor.u32 %v6944_v38, %v6083_v24  ;;  %v6085_v23 = vld [vmem:[#allocation13 + $0x38] sm:$0xf0] }
 0xacb   :  { %v2926_v42 = vmul.f32 0.875, %v2924_v30  ;;  %v6104_v10 = vor.u32 %v6947_v27, %v6101_v50  ;;  %v6091_v30 = vld [vmem:[#allocation13 + $0x40] sm:$0xf]  ;;  %v6088_v7 = vor.u32 %v6943_v28, %v6085_v23  ;;  %v6069_v27 = vld [vmem:[#allocation13 + $0x18] sm:$0xf0]  ;;  %v6959_v38 = vld [vmem:[#allocation14 + $0x30] sm:$0xff] }
 0xacc   :  { %3406 = vmatpush.bf16.msrb.mxu3 %v6120_v33  ;;  %v6075_v33 = vld [vmem:[#allocation13 + $0x20] sm:$0xf]  ;;  %v6958_v28 = vld [vmem:[#allocation14 + $0x28] sm:$0xff]  ;;  %v6955_v23 = vld [vmem:[#allocation14 + $0x10] sm:$0xff] }
 0xacd   :  { %v2927_v5 = vadd.f32 0.125, %v2926_v42  ;;  %v6946_v42 = vld [vmem:[#allocation13 + $0x44] sm:$0xf0]  ;;  %v6076_v22 = vor.u32 %v6942_v51, %v6075_v33  ;;  %v6953_v33 = vld [vmem:[#allocation14] sm:$0xff]  ;;  %v544_v51 = vadd.f32 %v7772_v16, %v7678_v48 }
 0xacf   :  { %v3029_v6 = vsub.f32 1.0, %v2927_v5  ;;  %v3028_v57 = vmul.f32 %v2927_v5, %v7868_v37  ;;  %v6930_v37 = vld [vmem:[#allocation17 + $0x8] sm:$0xff] }
 0xad0   :  { %3407 = vmatpush.bf16.msrb.mxu3 %v6112_v54  ;;  %v6093_v5 = vld [vmem:[#allocation13 + $0x48] sm:$0xf0]  ;;  %v6940_v54 = vld [vmem:[#allocation13 + $0x14] sm:$0xf0] }
 0xad4   :  { %3408 = vmatpush.bf16.msrb.mxu3 %v6104_v10  ;;  %v6938_v10 = vld [vmem:[#allocation13 + $0x4] sm:$0xf0] }
 0xb48   :  { %v3022_v56 = vpop.f32.mrf.mxu2 }
 0xb49   :  { %v3026_v1 = vadd.f32 %v3022_v56, %v7697_v58  ;;  %v6934_v58 = vld [vmem:[#allocation17 + $0x28] sm:$0xff] }
 0xb4a   :  { %3265 = vmatpush.bf16.msra.mxu1 %v6934_v58 }
 0xb4b   :  { %7224 = vtanh.f32 %v3026_v1  ;;  %v6945_v1 = vld [vmem:[#allocation13 + $0x44] sm:$0xf] }
 0xb4e   :  { %3266 = vmatpush.bf16.msra.mxu1 %v6933_v39 }
 0xb50   :  { %v3024_v8 = vpop.f32.mrf.mxu2 }
 0xb51   :  { %v7225_v41 = vpop.eup %7224  ;;  %v6096_v8 = vor.u32 %v6945_v1, %v6093_v5 }
 0xb52   :  { %v3030_v43 = vmul.f32 %v7225_v41, %v3029_v6  ;;  %3267 = vmatpush.bf16.msra.mxu1 %v6932_v15 }
 0xb53   :  { %3409 = vmatpush.bf16.msrb.mxu3 %v6096_v8 }
 0xb54   :  { %v7893_v20 = vadd.f32 %v3030_v43, %v3028_v57 }
 0xb56   :  { %v3032_v49 = vpack.c.bf16 %v7893_v20, %v7893_v20  ;;  %3268 = vmatpush.bf16.msra.mxu1 %v6931_v4 }
 0xb57   :  { %3410 = vmatpush.bf16.msrb.mxu3 %v6088_v7  ;;  %v6954_v7 = vld [vmem:[#allocation14 + $0x8] sm:$0xff] }
 0xb58   :  { %3137 = vmatmul.bf16.vlgmr.msra.gmra.mxu3 %v3032_v49  ;;  %3150 = vmatmul.bf16.vlgmr.msra.gmra.mxu0 %v3032_v49 }
 0xb5a   :  { %3269 = vmatpush.bf16.msra.mxu1 %v6930_v37 }
 0xb5e   :  { %3270 = vmatpush.bf16.msra.mxu1 %v6929_v36 }
 0xbd5   :  { %v3151_v53 = vpop.f32.mrf.mxu0 }
 0xbd6   :  { %v3156_v26 = vadd.f32 %v3151_v53, %v7747_v11  ;;  %v6099_v11 = vld [vmem:[#allocation13 + $0x50] sm:$0xf] }
 0xbd7   :  { %v6100_v14 = vor.u32 %v6948_v44, %v6099_v11  ;;  %v6939_v11 = vld [vmem:[#allocation13 + $0x14] sm:$0xf] }
 0xbd8   :  { %v6024_v18 = vmul.f32 -1.442695, %v3156_v26  ;;  %v6072_v50 = vor.u32 %v6939_v11, %v6069_v27  ;;  %v6975_v11 = vld [vmem:[#allocation16 + $0x74] sm:$0xf]  ;;  %v6205_v27 = vld [vmem:[#allocation16 + $0x60] sm:$0xf] }
 0xbd9   :  { %3395 = vmatpush.bf16.msrb.mxu2 %v6100_v14 }
 0xbda   :  { %7226 = vpow2.f32 %v6024_v18 }
 0xbdb   :  { %v3138_v55 = vpop.f32.mrf.mxu3 }
 0xbdc   :  { %v3155_v52 = vadd.f32 %v3138_v55, %v7667_v35  ;;  %v6092_v35 = vor.u32 %v6946_v42, %v6091_v30  ;;  %v6077_v55 = vld [vmem:[#allocation13 + $0x28] sm:$0xf0]  ;;  %v6937_v30 = vld [vmem:[#allocation13 + $0x4] sm:$0xf] }
 0xbdd   :  { %v3153_v2 = vpop.f32.mrf.mxu0  ;;  %v6080_v46 = vor.u32 %v6941_v29, %v6077_v55 }
 0xbde   :  { %3396 = vmatpush.bf16.msrb.mxu2 %v6092_v35  ;;  %v6023_v53 = vmul.f32 -1.442695, %v3155_v52  ;;  %v6067_v52 = vld [vmem:[#allocation13 + $0x10] sm:$0xf] }
 0xbdf   :  { %3411 = vmatpush.bf16.msrb.mxu3 %v6080_v46  ;;  %v6068_v2 = vor.u32 %v6940_v54, %v6067_v52  ;;  %v6213_v52 = vld [vmem:[#allocation16 + $0x70] sm:$0xf]  ;;  %v6976_v54 = vld [vmem:[#allocation16 + $0x74] sm:$0xf0] }
 0xbe0   :  { %v7227_v47 = vpop.eup %7226 }
 0xbe1   :  { %v3181_v56 = vadd.f32 1.0, %v7227_v47  ;;  %v6059_v47 = vld [vmem:[#allocation13] sm:$0xf] }
 0xbe2   :  { %3397 = vmatpush.bf16.msrb.mxu2 %v6084_v62  ;;  %v6060_v42 = vor.u32 %v6938_v10, %v6059_v47  ;;  %v6957_v62 = vld [vmem:[#allocation14 + $0x20] sm:$0xff]  ;;  %v6207_v10 = vld [vmem:[#allocation16 + $0x68] sm:$0xf0] }
 0xbe3   :  { %7228 = vrcp.f32 %v3181_v56  ;;  %v3140_v6 = vpop.f32.mrf.mxu3  ;;  %v3193_v49 = vand.u32 2147483648, %v3181_v56  ;;  %v3191_v59 = vand.u32 2147483647, %v3181_v56  ;;  %vm3187_vm9 = vweird.f32 %v3181_v56  ;;  %3412 = vmatpush.bf16.msrb.mxu3 %v6072_v50  ;;  %v6974_v50 = vld [vmem:[#allocation16 + $0x64] sm:$0xf0] }
 0xbe4   :  { %7230 = vpow2.f32 %v6023_v53  ;;  %v6973_v47 = vld [vmem:[#allocation16 + $0x64] sm:$0xf] }
 0xbe5   :  { %v3194_v39 = vor.u32 1.1754944e-38, %v3193_v49  ;;  %vm3192_vm11 = vcmp.eq.f32.partialorder %v3191_v59, 8.507059e+37 }
 0xbe6   :  { %3398 = vmatpush.bf16.msrb.mxu2 %v6076_v22 }
 0xbe9   :  { %v7229_v41 = vpop.eup %7228 }
 0xbea   :  { %v3183_v57 = vmul.f32 %v7229_v41, %v3181_v56  ;;  %vm3188_vm8 = vweird.f32 %v7229_v41  ;;  %v7231_v26 = vpop.eup %7230  ;;  %3399 = vmatpush.bf16.msrb.mxu2 %v6068_v2  ;;  %v6061_v56 = vld [vmem:[#allocation13 + $0x8] sm:$0xf0]  ;;  %v6215_v2 = vld [vmem:[#allocation16 + $0x78] sm:$0xf0] }
 0xbeb   :  { %vm3189_vm10 = vmor %vm3187_vm9, %vm3188_vm8  ;;  %v3160_v18 = vadd.f32 1.0, %v7231_v26  ;;  %v6064_v1 = vor.u32 %v6937_v30, %v6061_v56  ;;  %v6206_v30 = vor.u32 %v6974_v50, %v6205_v27  ;;  %v6210_v56 = vor.u32 %v6973_v47, %v6207_v10  ;;  %v6173_v27 = vld [vmem:[#allocation16 + $0x20] sm:$0xf]  ;;  %v6966_v50 = vld [vmem:[#allocation16 + $0x24] sm:$0xf0] }
 0xbec   :  { %v3184_v43 = vsub.f32 1.0, %v3183_v57  ;;  %v6174_v47 = vor.u32 %v6966_v50, %v6173_v27  ;;  %v6175_v10 = vld [vmem:[#allocation16 + $0x28] sm:$0xf0]  ;;  %v6977_v27 = vld [vmem:[#allocation17] sm:$0xff]  ;;  %v631_v50 = vadd.f32 %v7750_v12, %v7738_v61  ;;  %v6295_v12 = vld [vmem:[#allocation13 + $0x50] sm:$0xf] }
 0xbed   :  { %7232 = vrcp.f32 %v3160_v18  ;;  %3413 = vmatpush.bf16.msrb.mxu3 %v6064_v1  ;;  %v3172_v8 = vand.u32 2147483648, %v3160_v18  ;;  %vm3166_vm13 = vweird.f32 %v3160_v18  ;;  %v6197_v1 = vld [vmem:[#allocation16 + $0x50] sm:$0xf] }
 0xbee   :  { %v3185_v3 = vmul.f32 %v7229_v41, %v3184_v43  ;;  %3400 = vmatpush.bf16.msrb.mxu2 %v6060_v42 }
 0xbef   :  { %v3173_v43 = vor.u32 1.1754944e-38, %v3172_v8 }
 0xbf0   :  { %v3186_v58 = vadd.f32 %v7229_v41, %v3185_v3 }
 0xbf2   :  { %v3190_v15 = vsel %vm3189_vm10, %v7229_v41, %v3186_v58  ;;  %v3170_v41 = vand.u32 2147483647, %v3160_v18 }
 0xbf3   :  { %v3195_v4 = vsel %vm3192_vm11, %v3194_v39, %v3190_v15  ;;  %v7233_v44 = vpop.eup %7232 }
 0xbf4   :  { %v3197_v37 = vmul.f32 %v3195_v4, %v7893_v20  ;;  %v3162_v14 = vmul.f32 %v7233_v44, %v3160_v18  ;;  %vm3167_vm12 = vweird.f32 %v7233_v44  ;;  %vm3171_vm15 = vcmp.eq.f32.partialorder %v3170_v41, 8.507059e+37 }
 0xbf5   :  { %vm3168_vm14 = vmor %vm3166_vm13, %vm3167_vm12 }
 0xbf6   :  { %v3198_v36 = vpack.c.bf16 %v3197_v37, %v3197_v37  ;;  %v3163_v5 = vsub.f32 1.0, %v3162_v14  ;;  %v6218_v14 = vor.u32 %v6975_v11, %v6215_v2 }
 0xbf8   :  { %3271 = vmatmul.bf16.vlgmr.msra.gmra.mxu1 %v3198_v36  ;;  %v3164_v6 = vmul.f32 %v7233_v44, %v3163_v5  ;;  %3656 = vmatpush.bf16.msra.mxu2 %v6218_v14  ;;  %v6972_v5 = vld [vmem:[#allocation16 + $0x54] sm:$0xf0]  ;;  %v6965_v14 = vld [vmem:[#allocation16 + $0x24] sm:$0xf] }
 0xbf9   :  { %v6198_v8 = vor.u32 %v6972_v5, %v6197_v1  ;;  %v6167_v1 = vld [vmem:[#allocation16 + $0x18] sm:$0xf0] }
 0xbfa   :  { %v3165_v35 = vadd.f32 %v7233_v44, %v3164_v6  ;;  %v6971_v6 = vld [vmem:[#allocation16 + $0x54] sm:$0xf] }
 0xbfc   :  { %v3169_v57 = vsel %vm3168_vm14, %v7233_v44, %v3165_v35  ;;  %v6214_v44 = vor.u32 %v6976_v54, %v6213_v52  ;;  %v6199_v35 = vld [vmem:[#allocation16 + $0x58] sm:$0xf0]  ;;  %3657 = vmatpush.bf16.msra.mxu2 %v6210_v56  ;;  %v6968_v52 = vld [vmem:[#allocation16 + $0x34] sm:$0xf0]  ;;  %v6967_v54 = vld [vmem:[#allocation16 + $0x34] sm:$0xf] }
 0xbfd   :  { %v3174_v49 = vsel %vm3171_vm15, %v3173_v43, %v3169_v57  ;;  %v6202_v57 = vor.u32 %v6971_v6, %v6199_v35  ;;  %v6189_v43 = vld [vmem:[#allocation16 + $0x40] sm:$0xf] }
 0xbfe   :  { %v3176_v3 = vmul.f32 0.875, %v3174_v49  ;;  %3643 = vmatpush.bf16.msrb.mxu1 %v6214_v44  ;;  %v6970_v49 = vld [vmem:[#allocation16 + $0x44] sm:$0xf0]  ;;  %v6183_v44 = vld [vmem:[#allocation16 + $0x38] sm:$0xf0] }
 0xbff   :  { %v6186_v2 = vor.u32 %v6967_v54, %v6183_v44  ;;  %v6157_v35 = vld [vmem:[#allocation16] sm:$0xf]  ;;  %v6979_v54 = vld [vmem:[#allocation17 + $0x10] sm:$0xff] }
 0xc00   :  { %v3177_v39 = vadd.f32 0.125, %v3176_v3  ;;  %3658 = vmatpush.bf16.msra.mxu2 %v6202_v57 }
 0xc02   :  { %v3279_v15 = vsub.f32 1.0, %v3177_v39  ;;  %v3278_v36 = vmul.f32 %v3177_v39, %v7880_v21  ;;  %v6956_v21 = vld [vmem:[#allocation14 + $0x18] sm:$0xff]  ;;  %3644 = vmatpush.bf16.msrb.mxu1 %v6206_v30  ;;  %v6190_v39 = vor.u32 %v6970_v49, %v6189_v43  ;;  %v6159_v43 = vld [vmem:[#allocation16 + $0x8] sm:$0xf0] }
 0xc03   :  { %v6964_v30 = vld [vmem:[#allocation16 + $0x14] sm:$0xf0] }
 0xc06   :  { %3645 = vmatpush.bf16.msrb.mxu1 %v6198_v8  ;;  %v6962_v8 = vld [vmem:[#allocation16 + $0x4] sm:$0xf0] }
 0xc07   :  { %v6158_v57 = vor.u32 %v6962_v8, %v6157_v35  ;;  %v6305_v35 = vld [vmem:[#allocation13 + $0x68] sm:$0xf0] }
 0xc0a   :  { %3646 = vmatpush.bf16.msrb.mxu1 %v6190_v39 }
 0xc75   :  { %v3272_v59 = vpop.f32.mrf.mxu1 }
 0xc76   :  { %v3276_v58 = vadd.f32 %v3272_v59, %v7792_v0  ;;  %v6960_v0 = vld [vmem:[#allocation14 + $0x38] sm:$0xff]  ;;  %v6969_v59 = vld [vmem:[#allocation16 + $0x44] sm:$0xf] }
 0xc77   :  { %3527 = vmatpush.bf16.msrb.mxu0 %v6960_v0 }
 0xc78   :  { %7234 = vtanh.f32 %v3276_v58  ;;  %v6191_v58 = vld [vmem:[#allocation16 + $0x48] sm:$0xf0] }
 0xc7b   :  { %3528 = vmatpush.bf16.msrb.mxu0 %v6959_v38 }
 0xc7d   :  { %v3274_v4 = vpop.f32.mrf.mxu1 }
 0xc7e   :  { %v7235_v37 = vpop.eup %7234 }
 0xc7f   :  { %v3280_v53 = vmul.f32 %v7235_v37, %v3279_v15  ;;  %3529 = vmatpush.bf16.msrb.mxu0 %v6958_v28  ;;  %v6194_v15 = vor.u32 %v6969_v59, %v6191_v58 }
 0xc81   :  { %v7902_v26 = vadd.f32 %v3280_v53, %v3278_v36  ;;  %3659 = vmatpush.bf16.msra.mxu2 %v6194_v15 }
 0xc83   :  { %v7104_v18 = vpack.c.bf16 %v7902_v26, %v7893_v20  ;;  %v3286_v24 = vpack.c.bf16 %v7902_v26, %v7902_v26  ;;  %3530 = vmatpush.bf16.msrb.mxu0 %v6957_v62 }
 0xc85   :  { %7105 = vst [vmem:[#allocation19 + $0x20] sm:$0xff] %v7104_v18   ;;  %3401 = vmatmul.bf16.vlgmr.msrb.gmra.mxu2 %v3286_v24  ;;  %3414 = vmatmul.bf16.vlgmr.msrb.gmra.mxu3 %v3286_v24 }
 0xc86   :  { %3660 = vmatpush.bf16.msra.mxu2 %v6186_v2 }
 0xc87   :  { %3531 = vmatpush.bf16.msrb.mxu0 %v6956_v21 }
 0xc8b   :  { %3532 = vmatpush.bf16.msrb.mxu0 %v6955_v23 }
 0xc8f   :  { %3533 = vmatpush.bf16.msrb.mxu0 %v6954_v7  ;;  %v515_v7 = vadd.f32 %v7724_v19, %v7711_v45  ;;  %v6178_v19 = vor.u32 %v6965_v14, %v6175_v10 }
 0xc91   :  { %3661 = vmatpush.bf16.msra.mxu2 %v6178_v19 }
 0xc93   :  { %3534 = vmatpush.bf16.msrb.mxu0 %v6953_v33 }
 0xd08   :  { %v3402_v29 = vpop.f32.mrf.mxu2  ;;  %v3415_v22 = vpop.f32.mrf.mxu3 }
 0xd09   :  { %v3420_v55 = vadd.f32 %v3415_v22, %v544_v51  ;;  %v3419_v33 = vadd.f32 %v3402_v29, %v515_v7  ;;  %v6165_v29 = vld [vmem:[#allocation16 + $0x10] sm:$0xf] }
 0xd0a   :  { %v6166_v56 = vor.u32 %v6964_v30, %v6165_v29  ;;  %v6311_v29 = vld [vmem:[#allocation13 + $0x70] sm:$0xf]  ;;  %v7000_v30 = vld [vmem:[#allocation13 + $0x74] sm:$0xf0] }
 0xd0b   :  { %v6122_v46 = vmul.f32 -1.442695, %v3420_v55  ;;  %v6121_v51 = vmul.f32 -1.442695, %v3419_v33 }
 0xd0d   :  { %7236 = vpow2.f32 %v6122_v46  ;;  %v6181_v46 = vld [vmem:[#allocation16 + $0x30] sm:$0xf] }
 0xd0e   :  { %v6182_v11 = vor.u32 %v6968_v52, %v6181_v46  ;;  %v6981_v46 = vld [vmem:[#allocation17 + $0x20] sm:$0xff]  ;;  %v6980_v52 = vld [vmem:[#allocation17 + $0x18] sm:$0xff] }
 0xd10   :  { %v3404_v42 = vpop.f32.mrf.mxu2  ;;  %v3417_v16 = vpop.f32.mrf.mxu3  ;;  %3647 = vmatpush.bf16.msrb.mxu1 %v6182_v11  ;;  %v6978_v11 = vld [vmem:[#allocation17 + $0x8] sm:$0xff] }
 0xd11   :  { %v6963_v42 = vld [vmem:[#allocation16 + $0x14] sm:$0xf] }
 0xd12   :  { %v6170_v5 = vor.u32 %v6963_v42, %v6167_v1  ;;  %v6312_v42 = vor.u32 %v7000_v30, %v6311_v29  ;;  %v6303_v1 = vld [vmem:[#allocation13 + $0x60] sm:$0xf]  ;;  %v6273_v30 = vld [vmem:[#allocation13 + $0x28] sm:$0xf0] }
 0xd13   :  { %v7237_v41 = vpop.eup %7236 }
 0xd14   :  { %v3445_v3 = vadd.f32 1.0, %v7237_v41  ;;  %3648 = vmatpush.bf16.msrb.mxu1 %v6174_v47  ;;  %3662 = vmatpush.bf16.msra.mxu2 %v6170_v5  ;;  %v6961_v41 = vld [vmem:[#allocation16 + $0x4] sm:$0xf]  ;;  %v6998_v5 = vld [vmem:[#allocation13 + $0x64] sm:$0xf0] }
 0xd15   :  { %v6162_v49 = vor.u32 %v6961_v41, %v6159_v43  ;;  %3907 = vmatpush.bf16.msra.mxu0 %v6312_v42  ;;  %v6304_v8 = vor.u32 %v6998_v5, %v6303_v1  ;;  %v6996_v41 = vld [vmem:[#allocation13 + $0x54] sm:$0xf0]  ;;  %v6995_v43 = vld [vmem:[#allocation13 + $0x54] sm:$0xf]  ;;  %v6265_v5 = vld [vmem:[#allocation13 + $0x18] sm:$0xf0] }
 0xd16   :  { %7238 = vrcp.f32 %v3445_v3  ;;  %v3457_v53 = vand.u32 2147483648, %v3445_v3  ;;  %v3455_v24 = vand.u32 2147483647, %v3445_v3  ;;  %vm3451_vm1 = vweird.f32 %v3445_v3  ;;  %v6987_v1 = vld [vmem:[#allocation13 + $0x14] sm:$0xf] }
 0xd17   :  { %7240 = vpow2.f32 %v6121_v51 }
 0xd18   :  { %v3458_v38 = vor.u32 1.1754944e-38, %v3457_v53  ;;  %vm3456_vm3 = vcmp.eq.f32.partialorder %v3455_v24, 8.507059e+37  ;;  %3649 = vmatpush.bf16.msrb.mxu1 %v6166_v56  ;;  %3663 = vmatpush.bf16.msra.mxu2 %v6162_v49  ;;  %v573_v53 = vadd.f32 %v7700_v60, %v7688_v17  ;;  %v6983_v60 = vld [vmem:[#allocation17 + $0x30] sm:$0xff]  ;;  %v6313_v56 = vld [vmem:[#allocation13 + $0x78] sm:$0xf0] }
 0xd19   :  { %v6297_v49 = vld [vmem:[#allocation13 + $0x58] sm:$0xf0]  ;;  %3908 = vmatpush.bf16.msra.mxu0 %v6304_v8  ;;  %v6255_v8 = vld [vmem:[#allocation13] sm:$0xf] }
 0xd1c   :  { %v7239_v4 = vpop.eup %7238  ;;  %3650 = vmatpush.bf16.msrb.mxu1 %v6158_v57 }
 0xd1d   :  { %v3447_v37 = vmul.f32 %v7239_v4, %v3445_v3  ;;  %vm3452_vm0 = vweird.f32 %v7239_v4  ;;  %v7241_v22 = vpop.eup %7240 }
 0xd1e   :  { %vm3453_vm2 = vmor %vm3451_vm1, %vm3452_vm0  ;;  %v3424_v55 = vadd.f32 1.0, %v7241_v22  ;;  %v6984_v22 = vld [vmem:[#allocation17 + $0x38] sm:$0xff] }
 0xd1f   :  { %v3448_v36 = vsub.f32 1.0, %v3447_v37  ;;  %3777 = vmatpush.bf16.msra.mxu3 %v6984_v22 }
 0xd20   :  { %7242 = vrcp.f32 %v3424_v55  ;;  %v3436_v39 = vand.u32 2147483648, %v3424_v55  ;;  %vm3430_vm5 = vweird.f32 %v3424_v55  ;;  %v3434_v15 = vand.u32 2147483647, %v3424_v55 }
 0xd21   :  { %v3449_v18 = vmul.f32 %v7239_v4, %v3448_v36 }
 0xd22   :  { %v3437_v37 = vor.u32 1.1754944e-38, %v3436_v39  ;;  %vm3435_vm7 = vcmp.eq.f32.partialorder %v3434_v15, 8.507059e+37  ;;  %v6287_v39 = vld [vmem:[#allocation13 + $0x40] sm:$0xf]  ;;  %v6994_v15 = vld [vmem:[#allocation13 + $0x44] sm:$0xf0] }
 0xd23   :  { %v3450_v0 = vadd.f32 %v7239_v4, %v3449_v18  ;;  %3778 = vmatpush.bf16.msra.mxu3 %v6983_v60 }
 0xd25   :  { %v3454_v28 = vsel %vm3453_vm2, %v7239_v4, %v3450_v0 }
 0xd26   :  { %v3459_v62 = vsel %vm3456_vm3, %v3458_v38, %v3454_v28  ;;  %v7243_v16 = vpop.eup %7242 }
 0xd27   :  { %v3461_v21 = vmul.f32 %v3459_v62, %v7902_v26  ;;  %v3426_v6 = vmul.f32 %v7243_v16, %v3424_v55  ;;  %vm3431_vm4 = vweird.f32 %v7243_v16  ;;  %v6982_v55 = vld [vmem:[#allocation17 + $0x28] sm:$0xff] }
 0xd28   :  { %vm3432_vm6 = vmor %vm3430_vm5, %vm3431_vm4  ;;  %3779 = vmatpush.bf16.msra.mxu3 %v6982_v55 }
 0xd29   :  { %v3462_v23 = vpack.c.bf16 %v3461_v21, %v3461_v21  ;;  %v3427_v3 = vsub.f32 1.0, %v3426_v6  ;;  %v6997_v6 = vld [vmem:[#allocation13 + $0x64] sm:$0xf] }
 0xd2a   :  { %v6308_v61 = vor.u32 %v6997_v6, %v6305_v35  ;;  %v6268_v6 = vor.u32 %v6987_v1, %v6265_v5  ;;  %v7021_v1 = vld [vmem:[#allocation16 + $0x64] sm:$0xf] }
 0xd2b   :  { %3535 = vmatmul.bf16.vlgmr.msrb.gmra.mxu0 %v3462_v23  ;;  %v3428_v59 = vmul.f32 %v7243_v16, %v3427_v3  ;;  %v6296_v3 = vor.u32 %v6996_v41, %v6295_v12  ;;  %v6985_v12 = vld [vmem:[#allocation13 + $0x4] sm:$0xf] }
 0xd2c   :  { %3780 = vmatpush.bf16.msra.mxu3 %v6981_v46 }
 0xd2d   :  { %v3429_v58 = vadd.f32 %v7243_v16, %v3428_v59  ;;  %3909 = vmatpush.bf16.msra.mxu0 %v6296_v3 }
 0xd2f   :  { %v3433_v4 = vsel %vm3432_vm6, %v7243_v16, %v3429_v58  ;;  %v6999_v16 = vld [vmem:[#allocation13 + $0x74] sm:$0xf]  ;;  %v6300_v58 = vor.u32 %v6995_v43, %v6297_v49 }
 0xd30   :  { %v3438_v36 = vsel %vm3435_vm7, %v3437_v37, %v3433_v4  ;;  %3781 = vmatpush.bf16.msra.mxu3 %v6980_v52  ;;  %v6993_v37 = vld [vmem:[#allocation13 + $0x44] sm:$0xf] }
 0xd31   :  { %v3440_v18 = vmul.f32 0.875, %v3438_v36  ;;  %v6289_v36 = vld [vmem:[#allocation13 + $0x48] sm:$0xf0] }
 0xd33   :  { %v3441_v38 = vadd.f32 0.125, %v3440_v18  ;;  %v6292_v18 = vor.u32 %v6993_v37, %v6289_v36  ;;  %v660_v36 = vadd.f32 %v7794_v32, %v7784_v34  ;;  %v7008_v34 = vld [vmem:[#allocation14 + $0x38] sm:$0xff]  ;;  %v7007_v32 = vld [vmem:[#allocation14 + $0x30] sm:$0xff] }
 0xd34   :  { %3782 = vmatpush.bf16.msra.mxu3 %v6979_v54  ;;  %4041 = vmatpush.bf16.msrb.mxu2 %v7008_v34 }
 0xd35   :  { %v3543_v28 = vsub.f32 1.0, %v3441_v38  ;;  %v3542_v23 = vmul.f32 %v3441_v38, %v7893_v20  ;;  %v602_v20 = vadd.f32 %v7669_v40, %v7657_v13  ;;  %v6316_v40 = vor.u32 %v6999_v16, %v6313_v56  ;;  %v6263_v16 = vld [vmem:[#allocation13 + $0x10] sm:$0xf]  ;;  %v6988_v56 = vld [vmem:[#allocation13 + $0x14] sm:$0xf0] }
 0xd37   :  { %3920 = vmatpush.bf16.msra.mxu1 %v6316_v40  ;;  %v6264_v40 = vor.u32 %v6988_v56, %v6263_v16  ;;  %v7022_v16 = vld [vmem:[#allocation16 + $0x64] sm:$0xf0] }
 0xd38   :  { %3783 = vmatpush.bf16.msra.mxu3 %v6978_v11  ;;  %v6992_v11 = vld [vmem:[#allocation13 + $0x34] sm:$0xf0]  ;;  %4042 = vmatpush.bf16.msrb.mxu2 %v7007_v32 }
 0xd3b   :  { %3921 = vmatpush.bf16.msra.mxu1 %v6308_v61  ;;  %v6986_v61 = vld [vmem:[#allocation13 + $0x4] sm:$0xf0] }
 0xd3c   :  { %3784 = vmatpush.bf16.msra.mxu3 %v6977_v27  ;;  %v6256_v41 = vor.u32 %v6986_v61, %v6255_v8  ;;  %v7020_v8 = vld [vmem:[#allocation16 + $0x54] sm:$0xf0]  ;;  %v7019_v61 = vld [vmem:[#allocation16 + $0x54] sm:$0xf] }
 0xd3f   :  { %3922 = vmatpush.bf16.msra.mxu1 %v6300_v58 }
 0xd43   :  { %3923 = vmatpush.bf16.msra.mxu1 %v6292_v18 }
 0xda8   :  { %v3536_v24 = vpop.f32.mrf.mxu0 }
 0xda9   :  { %v3540_v0 = vadd.f32 %v3536_v24, %v573_v53  ;;  %v6288_v53 = vor.u32 %v6994_v15, %v6287_v39 }
 0xdab   :  { %7244 = vtanh.f32 %v3540_v0  ;;  %3910 = vmatpush.bf16.msra.mxu0 %v6288_v53 }
 0xdb0   :  { %v3538_v62 = vpop.f32.mrf.mxu0 }
 0xdb1   :  { %v7245_v21 = vpop.eup %7244 }
 0xdb2   :  { %v3544_v7 = vmul.f32 %v7245_v21, %v3543_v28 }
 0xdb4   :  { %v7916_v33 = vadd.f32 %v3544_v7, %v3542_v23 }
 0xdb6   :  { %v3546_v51 = vpack.c.bf16 %v7916_v33, %v7916_v33 }
 0xdb8   :  { %3651 = vmatmul.bf16.vlgmr.msrb.gmra.mxu1 %v3546_v51  ;;  %3664 = vmatmul.bf16.vlgmr.msra.gmra.mxu2 %v3546_v51 }
 0xe35   :  { %v3652_v44 = vpop.f32.mrf.mxu1 }
 0xe36   :  { %v3669_v2 = vadd.f32 %v3652_v44, %v602_v20  ;;  %v6279_v20 = vld [vmem:[#allocation13 + $0x30] sm:$0xf]  ;;  %v6991_v44 = vld [vmem:[#allocation13 + $0x34] sm:$0xf] }
 0xe37   :  { %v6280_v27 = vor.u32 %v6992_v11, %v6279_v20  ;;  %v518_v20 = vadd.f32 %v7730_v31, %v7711_v45  ;;  %v547_v11 = vadd.f32 %v7775_v25, %v7678_v48  ;;  %v6403_v31 = vld [vmem:[#allocation16 + $0x68] sm:$0xf0] }
 0xe38   :  { %v6219_v46 = vmul.f32 -1.442695, %v3669_v2 }
 0xe39   :  { %3911 = vmatpush.bf16.msra.mxu0 %v6280_v27 }
 0xe3b   :  { %v3665_v14 = vpop.f32.mrf.mxu2 }
 0xe3c   :  { %v3670_v47 = vadd.f32 %v3665_v14, %v631_v50  ;;  %v6281_v50 = vld [vmem:[#allocation13 + $0x38] sm:$0xf0] }
 0xe3d   :  { %v3654_v10 = vpop.f32.mrf.mxu1  ;;  %v6284_v14 = vor.u32 %v6991_v44, %v6281_v50 }
 0xe3e   :  { %v6220_v19 = vmul.f32 -1.442695, %v3670_v47  ;;  %v6271_v47 = vld [vmem:[#allocation13 + $0x20] sm:$0xf]  ;;  %v6990_v10 = vld [vmem:[#allocation13 + $0x24] sm:$0xf0] }
 0xe3f   :  { %3924 = vmatpush.bf16.msra.mxu1 %v6284_v14  ;;  %v6272_v29 = vor.u32 %v6990_v10, %v6271_v47  ;;  %v6409_v10 = vld [vmem:[#allocation16 + $0x70] sm:$0xf] }
 0xe40   :  { %7246 = vpow2.f32 %v6220_v19  ;;  %v6989_v19 = vld [vmem:[#allocation13 + $0x24] sm:$0xf] }
 0xe41   :  { %v6276_v42 = vor.u32 %v6989_v19, %v6273_v30  ;;  %3912 = vmatpush.bf16.msra.mxu0 %v6272_v29  ;;  %v7024_v19 = vld [vmem:[#allocation16 + $0x74] sm:$0xf0]  ;;  %v7023_v29 = vld [vmem:[#allocation16 + $0x74] sm:$0xf] }
 0xe42   :  { %v6410_v30 = vor.u32 %v7024_v19, %v6409_v10  ;;  %v7012_v10 = vld [vmem:[#allocation16 + $0x14] sm:$0xf0]  ;;  %v7011_v19 = vld [vmem:[#allocation16 + $0x14] sm:$0xf] }
 0xe43   :  { %v3667_v57 = vpop.f32.mrf.mxu2  ;;  %3925 = vmatpush.bf16.msra.mxu1 %v6276_v42  ;;  %v6411_v42 = vld [vmem:[#allocation16 + $0x78] sm:$0xf0] }
 0xe44   :  { %v6257_v57 = vld [vmem:[#allocation13 + $0x8] sm:$0xf0]  ;;  %v6414_v56 = vor.u32 %v7023_v29, %v6411_v42  ;;  %4157 = vmatpush.bf16.msrb.mxu3 %v6410_v30  ;;  %v6363_v42 = vld [vmem:[#allocation16 + $0x18] sm:$0xf0] }
 0xe45   :  { %3913 = vmatpush.bf16.msra.mxu0 %v6264_v40  ;;  %v6260_v43 = vor.u32 %v6985_v12, %v6257_v57  ;;  %v6395_v12 = vld [vmem:[#allocation16 + $0x58] sm:$0xf0] }
 0xe46   :  { %v7247_v59 = vpop.eup %7246 }
 0xe47   :  { %v3695_v4 = vadd.f32 1.0, %v7247_v59  ;;  %3926 = vmatpush.bf16.msra.mxu1 %v6268_v6  ;;  %v6406_v6 = vor.u32 %v7021_v1, %v6403_v31  ;;  %v7010_v1 = vld [vmem:[#allocation16 + $0x4] sm:$0xf0]  ;;  %v7009_v31 = vld [vmem:[#allocation16 + $0x4] sm:$0xf] }
 0xe49   :  { %7248 = vrcp.f32 %v3695_v4  ;;  %v3707_v28 = vand.u32 2147483648, %v3695_v4  ;;  %v3705_v21 = vand.u32 2147483647, %v3695_v4  ;;  %vm3701_vm9 = vweird.f32 %v3695_v4  ;;  %3914 = vmatpush.bf16.msra.mxu0 %v6256_v41 }
 0xe4a   :  { %7250 = vpow2.f32 %v6219_v46  ;;  %v7003_v46 = vld [vmem:[#allocation14 + $0x10] sm:$0xff] }
 0xe4b   :  { %v3708_v7 = vor.u32 1.1754944e-38, %v3707_v28  ;;  %vm3706_vm11 = vcmp.eq.f32.partialorder %v3705_v21, 8.507059e+37  ;;  %3927 = vmatpush.bf16.msra.mxu1 %v6260_v43  ;;  %v6398_v43 = vor.u32 %v7019_v61, %v6395_v12 }
 0xe4d   :  { %4170 = vmatpush.bf16.msrb.mxu0 %v6414_v56  ;;  %v6353_v56 = vld [vmem:[#allocation16] sm:$0xf] }
 0xe4f   :  { %v7249_v24 = vpop.eup %7248 }
 0xe50   :  { %v3697_v0 = vmul.f32 %v7249_v24, %v3695_v4  ;;  %vm3702_vm8 = vweird.f32 %v7249_v24  ;;  %v7251_v52 = vpop.eup %7250 }
 0xe51   :  { %vm3703_vm10 = vmor %vm3701_vm9, %vm3702_vm8  ;;  %v3674_v54 = vadd.f32 1.0, %v7251_v52  ;;  %v7002_v52 = vld [vmem:[#allocation14 + $0x8] sm:$0xff]  ;;  %4171 = vmatpush.bf16.msrb.mxu0 %v6406_v6 }
 0xe52   :  { %v3698_v38 = vsub.f32 1.0, %v3697_v0 }
 0xe53   :  { %7252 = vrcp.f32 %v3674_v54  ;;  %v3686_v58 = vand.u32 2147483648, %v3674_v54  ;;  %vm3680_vm13 = vweird.f32 %v3674_v54  ;;  %v3684_v39 = vand.u32 2147483647, %v3674_v54 }
 0xe54   :  { %v3699_v62 = vmul.f32 %v7249_v24, %v3698_v38 }
 0xe55   :  { %v3687_v4 = vor.u32 1.1754944e-38, %v3686_v58  ;;  %vm3685_vm15 = vcmp.eq.f32.partialorder %v3684_v39, 8.507059e+37  ;;  %v7017_v58 = vld [vmem:[#allocation16 + $0x44] sm:$0xf]  ;;  %v6387_v39 = vld [vmem:[#allocation16 + $0x48] sm:$0xf0]  ;;  %4172 = vmatpush.bf16.msrb.mxu0 %v6398_v43 }
 0xe56   :  { %v3700_v23 = vadd.f32 %v7249_v24, %v3699_v62 }
 0xe58   :  { %v3704_v51 = vsel %vm3703_vm10, %v7249_v24, %v3700_v23 }
 0xe59   :  { %v3709_v22 = vsel %vm3706_vm11, %v3708_v7, %v3704_v51  ;;  %v7253_v2 = vpop.eup %7252 }
 0xe5a   :  { %v3711_v60 = vmul.f32 %v3709_v22, %v7916_v33  ;;  %v3676_v35 = vmul.f32 %v7253_v2, %v3674_v54  ;;  %vm3681_vm12 = vweird.f32 %v7253_v2  ;;  %v7001_v54 = vld [vmem:[#allocation14] sm:$0xff] }
 0xe5b   :  { %vm3682_vm14 = vmor %vm3680_vm13, %vm3681_vm12 }
 0xe5c   :  { %v3712_v55 = vpack.c.bf16 %v3711_v60, %v3711_v60  ;;  %v3677_v49 = vsub.f32 1.0, %v3676_v35  ;;  %v7006_v60 = vld [vmem:[#allocation14 + $0x28] sm:$0xff]  ;;  %v6393_v35 = vld [vmem:[#allocation16 + $0x50] sm:$0xf] }
 0xe5d   :  { %4043 = vmatpush.bf16.msrb.mxu2 %v7006_v60  ;;  %v6394_v41 = vor.u32 %v7020_v8, %v6393_v35  ;;  %v6377_v60 = vld [vmem:[#allocation16 + $0x30] sm:$0xf] }
 0xe5e   :  { %3785 = vmatmul.bf16.vlgmr.msra.gmra.mxu3 %v3712_v55  ;;  %v3678_v3 = vmul.f32 %v7253_v2, %v3677_v49  ;;  %v7005_v55 = vld [vmem:[#allocation14 + $0x20] sm:$0xff] }
 0xe5f   :  { %v6385_v49 = vld [vmem:[#allocation16 + $0x40] sm:$0xf] }
 0xe60   :  { %v3679_v59 = vadd.f32 %v7253_v2, %v3678_v3  ;;  %v7018_v3 = vld [vmem:[#allocation16 + $0x44] sm:$0xf0] }
 0xe61   :  { %4044 = vmatpush.bf16.msrb.mxu2 %v7005_v55  ;;  %v7016_v55 = vld [vmem:[#allocation16 + $0x34] sm:$0xf0] }
 0xe62   :  { %v3683_v15 = vsel %vm3682_vm14, %v7253_v2, %v3679_v59  ;;  %v6401_v2 = vld [vmem:[#allocation16 + $0x60] sm:$0xf] }
 0xe63   :  { %v3688_v37 = vsel %vm3685_vm15, %v3687_v4, %v3683_v15  ;;  %v6402_v40 = vor.u32 %v7022_v16, %v6401_v2  ;;  %v6386_v15 = vor.u32 %v7018_v3, %v6385_v49  ;;  %v6390_v4 = vor.u32 %v7017_v58, %v6387_v39 }
 0xe64   :  { %v3690_v53 = vmul.f32 0.875, %v3688_v37  ;;  %v6366_v2 = vor.u32 %v7011_v19, %v6363_v42 }
 0xe65   :  { %4158 = vmatpush.bf16.msrb.mxu3 %v6402_v40  ;;  %4173 = vmatpush.bf16.msrb.mxu0 %v6390_v4  ;;  %v6354_v40 = vor.u32 %v7010_v1, %v6353_v56  ;;  %v6483_v56 = vld [vmem:[#allocation13 + $0x40] sm:$0xf]  ;;  %v7042_v1 = vld [vmem:[#allocation13 + $0x44] sm:$0xf0] }
 0xe66   :  { %v3691_v0 = vadd.f32 0.125, %v3690_v53 }
 0xe68   :  { %v3793_v38 = vsub.f32 1.0, %v3691_v0  ;;  %v3792_v21 = vmul.f32 %v3691_v0, %v7902_v26  ;;  %v7004_v26 = vld [vmem:[#allocation14 + $0x18] sm:$0xff] }
 0xe69   :  { %4045 = vmatpush.bf16.msrb.mxu2 %v7004_v26  ;;  %4159 = vmatpush.bf16.msrb.mxu3 %v6394_v41  ;;  %v7015_v26 = vld [vmem:[#allocation16 + $0x34] sm:$0xf] }
 0xe6d   :  { %4046 = vmatpush.bf16.msrb.mxu2 %v7003_v46  ;;  %4160 = vmatpush.bf16.msrb.mxu3 %v6386_v15  ;;  %v6378_v46 = vor.u32 %v7016_v55, %v6377_v60  ;;  %v7047_v55 = vld [vmem:[#allocation13 + $0x74] sm:$0xf] }
 0xe71   :  { %4047 = vmatpush.bf16.msrb.mxu2 %v7002_v52  ;;  %v6379_v52 = vld [vmem:[#allocation16 + $0x38] sm:$0xf0]  ;;  %4161 = vmatpush.bf16.msrb.mxu3 %v6378_v46  ;;  %v6499_v46 = vld [vmem:[#allocation13 + $0x60] sm:$0xf] }
 0xe75   :  { %4048 = vmatpush.bf16.msrb.mxu2 %v7001_v54  ;;  %v6382_v54 = vor.u32 %v7015_v26, %v6379_v52  ;;  %v6509_v26 = vld [vmem:[#allocation13 + $0x78] sm:$0xf0] }
 0xe76   :  { %v6512_v52 = vor.u32 %v7047_v55, %v6509_v26 }
 0xe77   :  { %4174 = vmatpush.bf16.msrb.mxu0 %v6382_v54  ;;  %v7046_v54 = vld [vmem:[#allocation13 + $0x64] sm:$0xf0] }
 0xee1   :  { %v3786_v18 = vpop.f32.mrf.mxu3 }
 0xee2   :  { %v3790_v24 = vadd.f32 %v3786_v18, %v660_v36 }
 0xee4   :  { %7254 = vtanh.f32 %v3790_v24 }
 0xee9   :  { %v3788_v28 = vpop.f32.mrf.mxu3 }
 0xeea   :  { %v7255_v62 = vpop.eup %7254 }
 0xeeb   :  { %v3794_v23 = vmul.f32 %v7255_v62, %v3793_v38 }
 0xeed   :  { %v7928_v7 = vadd.f32 %v3794_v23, %v3792_v21 }
 0xeef   :  { %v7109_v51 = vpack.c.bf16 %v7928_v7, %v7916_v33  ;;  %v3800_v22 = vpack.c.bf16 %v7928_v7, %v7928_v7 }
 0xef1   :  { %7110 = vst [vmem:[#allocation19 + $0x28] sm:$0xff] %v7109_v51   ;;  %3915 = vmatmul.bf16.vlgmr.msra.gmra.mxu0 %v3800_v22  ;;  %3928 = vmatmul.bf16.vlgmr.msra.gmra.mxu1 %v3800_v22 }
 0xf6e   :  { %v3916_v44 = vpop.f32.mrf.mxu0  ;;  %v3929_v27 = vpop.f32.mrf.mxu1 }
 0xf6f   :  { %v3933_v50 = vadd.f32 %v3916_v44, %v518_v20  ;;  %v3934_v14 = vadd.f32 %v3929_v27, %v547_v11  ;;  %v6369_v20 = vld [vmem:[#allocation16 + $0x20] sm:$0xf]  ;;  %v7014_v11 = vld [vmem:[#allocation16 + $0x24] sm:$0xf0]  ;;  %v7013_v44 = vld [vmem:[#allocation16 + $0x24] sm:$0xf] }
 0xf70   :  { %v6370_v27 = vor.u32 %v7014_v11, %v6369_v20  ;;  %v7045_v20 = vld [vmem:[#allocation13 + $0x64] sm:$0xf]  ;;  %v6501_v11 = vld [vmem:[#allocation13 + $0x68] sm:$0xf0] }
 0xf71   :  { %v6318_v47 = vmul.f32 -1.442695, %v3934_v14  ;;  %v6317_v22 = vmul.f32 -1.442695, %v3933_v50  ;;  %v6371_v14 = vld [vmem:[#allocation16 + $0x28] sm:$0xf0] }
 0xf72   :  { %4162 = vmatpush.bf16.msrb.mxu3 %v6370_v27  ;;  %v6361_v50 = vld [vmem:[#allocation16 + $0x10] sm:$0xf]  ;;  %v6500_v27 = vor.u32 %v7046_v54, %v6499_v46  ;;  %v6461_v46 = vld [vmem:[#allocation13 + $0x18] sm:$0xf0] }
 0xf73   :  { %7256 = vpow2.f32 %v6318_v47  ;;  %v6374_v47 = vor.u32 %v7013_v44, %v6371_v14  ;;  %v6362_v30 = vor.u32 %v7012_v10, %v6361_v50  ;;  %v7998_v14 = vld [vmem:[#allocation26_spill] sm:$0xff]  ;;  %v6504_v50 = vor.u32 %v7045_v20, %v6501_v11  ;;  %v7044_v10 = vld [vmem:[#allocation13 + $0x54] sm:$0xf0]  ;;  %v7034_v11 = vld [vmem:[#allocation13 + $0x4] sm:$0xf0] }
 0xf74   :  { %v6451_v20 = vld [vmem:[#allocation13] sm:$0xf] }
 0xf75   :  { %4175 = vmatpush.bf16.msrb.mxu0 %v6374_v47 }
 0xf76   :  { %v3918_v25 = vpop.f32.mrf.mxu0  ;;  %v3931_v5 = vpop.f32.mrf.mxu1  ;;  %4163 = vmatpush.bf16.msrb.mxu3 %v6362_v30  ;;  %v6493_v30 = vld [vmem:[#allocation13 + $0x58] sm:$0xf0] }
 0xf77   :  { %v6355_v25 = vld [vmem:[#allocation16 + $0x8] sm:$0xf0] }
 0xf78   :  { %v6358_v5 = vor.u32 %v7009_v31, %v6355_v25  ;;  %v6485_v25 = vld [vmem:[#allocation13 + $0x48] sm:$0xf0] }
 0xf79   :  { %v7257_v57 = vpop.eup %7256  ;;  %4176 = vmatpush.bf16.msrb.mxu0 %v6366_v2 }
 0xf7a   :  { %v3959_v59 = vadd.f32 1.0, %v7257_v57  ;;  %4164 = vmatpush.bf16.msrb.mxu3 %v6354_v40  ;;  %v7041_v40 = vld [vmem:[#allocation13 + $0x44] sm:$0xf] }
 0xf7c   :  { %7258 = vrcp.f32 %v3959_v59  ;;  %v3971_v18 = vand.u32 2147483648, %v3959_v59  ;;  %v3969_v0 = vand.u32 2147483647, %v3959_v59  ;;  %vm3965_vm1 = vweird.f32 %v3959_v59 }
 0xf7d   :  { %7260 = vpow2.f32 %v6317_v22  ;;  %4177 = vmatpush.bf16.msrb.mxu0 %v6358_v5 }
 0xf7e   :  { %v3972_v28 = vor.u32 1.1754944e-38, %v3971_v18  ;;  %vm3970_vm3 = vcmp.eq.f32.partialorder %v3969_v0, 8.507059e+37  ;;  %v7031_v0 = vld [vmem:[#allocation17 + $0x30] sm:$0xff]  ;;  %4434 = vmatpush.bf16.msra.mxu3 %v6512_v52 }
 0xf82   :  { %v7259_v37 = vpop.eup %7258  ;;  %4435 = vmatpush.bf16.msra.mxu3 %v6504_v50 }
 0xf83   :  { %v3961_v36 = vmul.f32 %v7259_v37, %v3959_v59  ;;  %vm3966_vm0 = vweird.f32 %v7259_v37  ;;  %v7261_v34 = vpop.eup %7260 }
 0xf84   :  { %vm3967_vm2 = vmor %vm3965_vm1, %vm3966_vm0  ;;  %v3938_v32 = vadd.f32 1.0, %v7261_v34  ;;  %v6507_v34 = vld [vmem:[#allocation13 + $0x70] sm:$0xf] }
 0xf85   :  { %v3962_v53 = vsub.f32 1.0, %v3961_v36 }
 0xf86   :  { %7262 = vrcp.f32 %v3938_v32  ;;  %v3950_v61 = vand.u32 2147483648, %v3938_v32  ;;  %vm3944_vm5 = vweird.f32 %v3938_v32  ;;  %v3948_v12 = vand.u32 2147483647, %v3938_v32 }
 0xf87   :  { %v3963_v24 = vmul.f32 %v7259_v37, %v3962_v53 }
 0xf88   :  { %v3951_v57 = vor.u32 1.1754944e-38, %v3950_v61  ;;  %vm3949_vm7 = vcmp.eq.f32.partialorder %v3948_v12, 8.507059e+37 }
 0xf89   :  { %v3964_v38 = vadd.f32 %v7259_v37, %v3963_v24  ;;  %v7032_v24 = vld [vmem:[#allocation17 + $0x38] sm:$0xff] }
 0xf8a   :  { %4291 = vmatpush.bf16.msrb.mxu1 %v7032_v24  ;;  %v7040_v24 = vld [vmem:[#allocation13 + $0x34] sm:$0xf0] }
 0xf8b   :  { %v3968_v62 = vsel %vm3967_vm2, %v7259_v37, %v3964_v38  ;;  %v7029_v38 = vld [vmem:[#allocation17 + $0x20] sm:$0xff] }
 0xf8c   :  { %v3973_v21 = vsel %vm3970_vm3, %v3972_v28, %v3968_v62  ;;  %v7263_v29 = vpop.eup %7262  ;;  %v7028_v28 = vld [vmem:[#allocation17 + $0x18] sm:$0xff]  ;;  %v7027_v62 = vld [vmem:[#allocation17 + $0x10] sm:$0xff] }
 0xf8d   :  { %v3975_v23 = vmul.f32 %v3973_v21, %v7928_v7  ;;  %v3940_v16 = vmul.f32 %v7263_v29, %v3938_v32  ;;  %vm3945_vm4 = vweird.f32 %v7263_v29  ;;  %v7025_v21 = vld [vmem:[#allocation17] sm:$0xff]  ;;  %v7048_v32 = vld [vmem:[#allocation13 + $0x74] sm:$0xf0] }
 0xf8e   :  { %vm3946_vm6 = vmor %vm3944_vm5, %vm3945_vm4  ;;  %4292 = vmatpush.bf16.msrb.mxu1 %v7031_v0  ;;  %v6508_v60 = vor.u32 %v7048_v32, %v6507_v34  ;;  %v7039_v0 = vld [vmem:[#allocation13 + $0x34] sm:$0xf]  ;;  %v6459_v34 = vld [vmem:[#allocation13 + $0x10] sm:$0xf] }
 0xf8f   :  { %v3976_v51 = vpack.c.bf16 %v3975_v23, %v3975_v23  ;;  %v3941_v6 = vsub.f32 1.0, %v3940_v16  ;;  %v7036_v32 = vld [vmem:[#allocation13 + $0x14] sm:$0xf0] }
 0xf90   :  { %4421 = vmatpush.bf16.msra.mxu2 %v6508_v60  ;;  %v7035_v60 = vld [vmem:[#allocation13 + $0x14] sm:$0xf]  ;;  %v6460_v26 = vor.u32 %v7036_v32, %v6459_v34 }
 0xf91   :  { %4049 = vmatmul.bf16.vlgmr.msrb.gmra.mxu2 %v3976_v51  ;;  %v3942_v35 = vmul.f32 %v7263_v29, %v3941_v6  ;;  %v6484_v6 = vor.u32 %v7042_v1, %v6483_v56  ;;  %v6464_v52 = vor.u32 %v7035_v60, %v6461_v46  ;;  %v7999_v1 = vld [vmem:[#allocation32_spill] sm:$0xff] }
 0xf92   :  { %v7067_v46 = vld [vmem:[#allocation16 + $0x54] sm:$0xf] }
 0xf93   :  { %v3943_v8 = vadd.f32 %v7263_v29, %v3942_v35  ;;  %v6488_v35 = vor.u32 %v7041_v40, %v6485_v25 }
 0xf94   :  { %4422 = vmatpush.bf16.msra.mxu2 %v6500_v27  ;;  %v6452_v27 = vor.u32 %v7034_v11, %v6451_v20 }
 0xf95   :  { %v3947_v41 = vsel %vm3946_vm6, %v7263_v29, %v3943_v8  ;;  %v7043_v29 = vld [vmem:[#allocation13 + $0x54] sm:$0xf] }
 0xf96   :  { %v3952_v43 = vsel %vm3949_vm7, %v3951_v57, %v3947_v41  ;;  %v6496_v16 = vor.u32 %v7043_v29, %v6493_v30 }
 0xf97   :  { %v3954_v49 = vmul.f32 0.875, %v3952_v43 }
 0xf98   :  { %4436 = vmatpush.bf16.msra.mxu3 %v6496_v16 }
 0xf99   :  { %v3955_v58 = vadd.f32 0.125, %v3954_v49 }
 0xf9b   :  { %v4057_v39 = vsub.f32 1.0, %v3955_v58  ;;  %v4056_v37 = vmul.f32 %v3955_v58, %v7916_v33  ;;  %v7026_v33 = vld [vmem:[#allocation17 + $0x8] sm:$0xff] }
 0xf9c   :  { %4437 = vmatpush.bf16.msra.mxu3 %v6488_v35 }
0x1014   :  { %v4050_v3 = vpop.f32.mrf.mxu2 }
0x1015   :  { %v4054_v59 = vadd.f32 %v4050_v3, %v7703_v63  ;;  %v7030_v63 = vld [vmem:[#allocation17 + $0x28] sm:$0xff] }
0x1016   :  { %4293 = vmatpush.bf16.msrb.mxu1 %v7030_v63 }
0x1017   :  { %7264 = vtanh.f32 %v4054_v59 }
0x101a   :  { %4294 = vmatpush.bf16.msrb.mxu1 %v7029_v38  ;;  %v6477_v38 = vld [vmem:[#allocation13 + $0x38] sm:$0xf0] }
0x101c   :  { %v4052_v15 = vpop.f32.mrf.mxu2 }
0x101d   :  { %v7265_v4 = vpop.eup %7264 }
0x101e   :  { %v4058_v36 = vmul.f32 %v7265_v4, %v4057_v39  ;;  %4295 = vmatpush.bf16.msrb.mxu1 %v7028_v28  ;;  %v6480_v28 = vor.u32 %v7039_v0, %v6477_v38  ;;  %v6605_v0 = vld [vmem:[#allocation16 + $0x70] sm:$0xf]  ;;  %v7071_v38 = vld [vmem:[#allocation16 + $0x74] sm:$0xf] }
0x1020   :  { %v7941_v53 = vadd.f32 %v4058_v36, %v4056_v37  ;;  %4438 = vmatpush.bf16.msra.mxu3 %v6480_v28 }
0x1022   :  { %v4060_v18 = vpack.c.bf16 %v7941_v53, %v7941_v53  ;;  %4296 = vmatpush.bf16.msrb.mxu1 %v7027_v62  ;;  %v6467_v62 = vld [vmem:[#allocation13 + $0x20] sm:$0xf] }
0x1024   :  { %4165 = vmatmul.bf16.vlgmr.msrb.gmra.mxu3 %v4060_v18  ;;  %4178 = vmatmul.bf16.vlgmr.msrb.gmra.mxu0 %v4060_v18  ;;  %v6475_v18 = vld [vmem:[#allocation13 + $0x30] sm:$0xf] }
0x1025   :  { %v6476_v63 = vor.u32 %v7040_v24, %v6475_v18 }
0x1026   :  { %4297 = vmatpush.bf16.msrb.mxu1 %v7026_v33  ;;  %v7038_v33 = vld [vmem:[#allocation13 + $0x24] sm:$0xf0] }
0x102a   :  { %4298 = vmatpush.bf16.msrb.mxu1 %v7025_v21  ;;  %v7037_v21 = vld [vmem:[#allocation13 + $0x24] sm:$0xf] }
0x10a1   :  { %v4179_v23 = vpop.f32.mrf.mxu0 }
0x10a2   :  { %v4184_v51 = vadd.f32 %v4179_v23, %v7753_v9  ;;  %v6491_v9 = vld [vmem:[#allocation13 + $0x50] sm:$0xf]  ;;  %v6468_v23 = vor.u32 %v7038_v33, %v6467_v62  ;;  %v6607_v62 = vld [vmem:[#allocation16 + $0x78] sm:$0xf0]  ;;  %v6597_v33 = vld [vmem:[#allocation16 + $0x60] sm:$0xf] }
0x10a3   :  { %v6492_v42 = vor.u32 %v7044_v10, %v6491_v9 }
0x10a4   :  { %v6416_v22 = vmul.f32 -1.442695, %v4184_v51  ;;  %v6469_v51 = vld [vmem:[#allocation13 + $0x28] sm:$0xf0] }
0x10a5   :  { %4423 = vmatpush.bf16.msra.mxu2 %v6492_v42 }
0x10a6   :  { %7266 = vpow2.f32 %v6416_v22  ;;  %v6472_v22 = vor.u32 %v7037_v21, %v6469_v51  ;;  %v7070_v21 = vld [vmem:[#allocation16 + $0x64] sm:$0xf0]  ;;  %v7069_v51 = vld [vmem:[#allocation16 + $0x64] sm:$0xf] }
0x10a7   :  { %v4166_v44 = vpop.f32.mrf.mxu3  ;;  %v6598_v34 = vor.u32 %v7070_v21, %v6597_v33  ;;  %v6549_v21 = vld [vmem:[#allocation16] sm:$0xf] }
0x10a8   :  { %v4183_v47 = vadd.f32 %v4166_v44, %v7998_v14  ;;  %4439 = vmatpush.bf16.msra.mxu3 %v6472_v22  ;;  %v7033_v44 = vld [vmem:[#allocation13 + $0x4] sm:$0xf]  ;;  %v6453_v14 = vld [vmem:[#allocation13 + $0x8] sm:$0xf0] }
0x10a9   :  { %v4181_v19 = vpop.f32.mrf.mxu0  ;;  %4424 = vmatpush.bf16.msra.mxu2 %v6484_v6  ;;  %v6599_v22 = vld [vmem:[#allocation16 + $0x68] sm:$0xf0] }
0x10aa   :  { %v6415_v4 = vmul.f32 -1.442695, %v4183_v47  ;;  %v6456_v47 = vor.u32 %v7033_v44, %v6453_v14  ;;  %v6602_v60 = vor.u32 %v7069_v51, %v6599_v22  ;;  %v6581_v44 = vld [vmem:[#allocation16 + $0x40] sm:$0xf]  ;;  %v7057_v51 = vld [vmem:[#allocation16 + $0x4] sm:$0xf] }
0x10ac   :  { %v7267_v2 = vpop.eup %7266  ;;  %4440 = vmatpush.bf16.msra.mxu3 %v6464_v52  ;;  %v6591_v52 = vld [vmem:[#allocation16 + $0x58] sm:$0xf0] }
0x10ad   :  { %v4209_v31 = vadd.f32 1.0, %v7267_v2  ;;  %4425 = vmatpush.bf16.msra.mxu2 %v6476_v63  ;;  %v7072_v63 = vld [vmem:[#allocation16 + $0x74] sm:$0xf0]  ;;  %v6594_v11 = vor.u32 %v7067_v46, %v6591_v52 }
0x10ae   :  { %v6606_v28 = vor.u32 %v7072_v63, %v6605_v0  ;;  %v7059_v0 = vld [vmem:[#allocation16 + $0x14] sm:$0xf] }
0x10af   :  { %7268 = vrcp.f32 %v4209_v31  ;;  %v4168_v5 = vpop.f32.mrf.mxu3  ;;  %v4221_v41 = vand.u32 2147483648, %v4209_v31  ;;  %v4219_v43 = vand.u32 2147483647, %v4209_v31  ;;  %vm4215_vm9 = vweird.f32 %v4209_v31 }
0x10b0   :  { %7270 = vpow2.f32 %v6415_v4  ;;  %4441 = vmatpush.bf16.msra.mxu3 %v6456_v47  ;;  %4671 = vmatpush.bf16.msra.mxu1 %v6606_v28  ;;  %v7065_v47 = vld [vmem:[#allocation16 + $0x44] sm:$0xf]  ;;  %v6559_v28 = vld [vmem:[#allocation16 + $0x18] sm:$0xf0] }
0x10b1   :  { %v4222_v3 = vor.u32 1.1754944e-38, %v4221_v41  ;;  %vm4220_vm11 = vcmp.eq.f32.partialorder %v4219_v43, 8.507059e+37  ;;  %4426 = vmatpush.bf16.msra.mxu2 %v6468_v23  ;;  %v7055_v43 = vld [vmem:[#allocation14 + $0x30] sm:$0xff]  ;;  %v6610_v23 = vor.u32 %v7071_v38, %v6607_v62  ;;  %v6562_v62 = vor.u32 %v7059_v0, %v6559_v28 }
0x10b4   :  { %4672 = vmatpush.bf16.msra.mxu1 %v6598_v34  ;;  %v6551_v34 = vld [vmem:[#allocation16 + $0x8] sm:$0xf0] }
0x10b5   :  { %v7269_v8 = vpop.eup %7268  ;;  %4427 = vmatpush.bf16.msra.mxu2 %v6460_v26  ;;  %v7068_v26 = vld [vmem:[#allocation16 + $0x54] sm:$0xf0] }
0x10b6   :  { %v4211_v61 = vmul.f32 %v7269_v8, %v4209_v31  ;;  %vm4216_vm8 = vweird.f32 %v7269_v8  ;;  %v7271_v37 = vpop.eup %7270 }
0x10b7   :  { %vm4217_vm10 = vmor %vm4215_vm9, %vm4216_vm8  ;;  %v4188_v36 = vadd.f32 1.0, %v7271_v37 }
0x10b8   :  { %v4212_v12 = vsub.f32 1.0, %v4211_v61 }
0x10b9   :  { %7272 = vrcp.f32 %v4188_v36  ;;  %4428 = vmatpush.bf16.msra.mxu2 %v6452_v27  ;;  %v4200_v19 = vand.u32 2147483648, %v4188_v36  ;;  %vm4194_vm13 = vweird.f32 %v4188_v36  ;;  %v4198_v29 = vand.u32 2147483647, %v4188_v36  ;;  %v7066_v27 = vld [vmem:[#allocation16 + $0x44] sm:$0xf0] }
0x10ba   :  { %v4213_v57 = vmul.f32 %v7269_v8, %v4212_v12 }
0x10bb   :  { %v4201_v42 = vor.u32 1.1754944e-38, %v4200_v19  ;;  %vm4199_vm15 = vcmp.eq.f32.partialorder %v4198_v29, 8.507059e+37 }
0x10bc   :  { %v4214_v49 = vadd.f32 %v7269_v8, %v4213_v57  ;;  %v7056_v57 = vld [vmem:[#allocation14 + $0x38] sm:$0xff] }
0x10bd   :  { %4555 = vmatpush.bf16.msra.mxu0 %v7056_v57  ;;  %4684 = vmatpush.bf16.msrb.mxu2 %v6610_v23  ;;  %v7058_v23 = vld [vmem:[#allocation16 + $0x4] sm:$0xf0] }
0x10be   :  { %v4218_v59 = vsel %vm4217_vm10, %v7269_v8, %v4214_v49  ;;  %v7054_v49 = vld [vmem:[#allocation14 + $0x28] sm:$0xff]  ;;  %v6550_v22 = vor.u32 %v7058_v23, %v6549_v21 }
0x10bf   :  { %v4223_v58 = vsel %vm4220_vm11, %v4222_v3, %v4218_v59  ;;  %v7273_v55 = vpop.eup %7272  ;;  %v7053_v3 = vld [vmem:[#allocation14 + $0x20] sm:$0xff]  ;;  %v7051_v59 = vld [vmem:[#allocation14 + $0x10] sm:$0xff] }
0x10c0   :  { %v4225_v39 = vmul.f32 %v4223_v58, %v7941_v53  ;;  %v4190_v54 = vmul.f32 %v7273_v55, %v4188_v36  ;;  %vm4195_vm12 = vweird.f32 %v7273_v55  ;;  %v7050_v58 = vld [vmem:[#allocation14 + $0x8] sm:$0xff] }
0x10c1   :  { %vm4196_vm14 = vmor %vm4194_vm13, %vm4195_vm12  ;;  %4556 = vmatpush.bf16.msra.mxu0 %v7055_v43  ;;  %4685 = vmatpush.bf16.msrb.mxu2 %v6602_v60  ;;  %v6573_v43 = vld [vmem:[#allocation16 + $0x30] sm:$0xf] }
0x10c2   :  { %v4226_v15 = vpack.c.bf16 %v4225_v39, %v4225_v39  ;;  %v4191_v50 = vsub.f32 1.0, %v4190_v54  ;;  %v7049_v39 = vld [vmem:[#allocation14] sm:$0xff] }
0x10c4   :  { %4299 = vmatmul.bf16.vlgmr.msrb.gmra.mxu1 %v4226_v15  ;;  %v4192_v9 = vmul.f32 %v7273_v55, %v4191_v50  ;;  %v8000_v15 = vld [vmem:[#allocation31_spill] sm:$0xff] }
0x10c5   :  { %4557 = vmatpush.bf16.msra.mxu0 %v7054_v49  ;;  %v549_v4 = vadd.f32 %v8000_v15, %v7678_v48  ;;  %v6583_v50 = vld [vmem:[#allocation16 + $0x48] sm:$0xf0]  ;;  %4686 = vmatpush.bf16.msrb.mxu2 %v6594_v11  ;;  %v7064_v49 = vld [vmem:[#allocation16 + $0x34] sm:$0xf0]  ;;  %v7062_v15 = vld [vmem:[#allocation16 + $0x24] sm:$0xf0] }
0x10c6   :  { %v4193_v10 = vadd.f32 %v7273_v55, %v4192_v9  ;;  %v6582_v9 = vor.u32 %v7066_v27, %v6581_v44  ;;  %v8002_v11 = vld [vmem:[#allocation28_spill] sm:$0xff] }
0x10c7   :  { %v578_v44 = vadd.f32 %v8002_v11, %v7688_v17  ;;  %v7079_v17 = vld [vmem:[#allocation17 + $0x30] sm:$0xff] }
0x10c8   :  { %v4197_v30 = vsel %vm4196_vm14, %v7273_v55, %v4193_v10  ;;  %v6589_v55 = vld [vmem:[#allocation16 + $0x50] sm:$0xf]  ;;  %v6586_v10 = vor.u32 %v7065_v47, %v6583_v50 }
0x10c9   :  { %v4202_v2 = vsel %vm4199_vm15, %v4201_v42, %v4197_v30  ;;  %4558 = vmatpush.bf16.msra.mxu0 %v7053_v3  ;;  %v6590_v54 = vor.u32 %v7068_v26, %v6589_v55  ;;  %v7063_v3 = vld [vmem:[#allocation16 + $0x34] sm:$0xf] }
0x10ca   :  { %v4204_v16 = vmul.f32 0.875, %v4202_v2  ;;  %4687 = vmatpush.bf16.msrb.mxu2 %v6586_v10 }
0x10cb   :  { %4673 = vmatpush.bf16.msra.mxu1 %v6590_v54 }
0x10cc   :  { %v4205_v40 = vadd.f32 0.125, %v4204_v16 }
0x10ce   :  { %v4307_v25 = vsub.f32 1.0, %v4205_v40  ;;  %v4306_v35 = vmul.f32 %v4205_v40, %v7928_v7  ;;  %v7052_v7 = vld [vmem:[#allocation14 + $0x18] sm:$0xff] }
0x10cf   :  { %4559 = vmatpush.bf16.msra.mxu0 %v7052_v7  ;;  %4674 = vmatpush.bf16.msra.mxu1 %v6582_v9  ;;  %v6574_v7 = vor.u32 %v7064_v49, %v6573_v43 }
0x10d3   :  { %4560 = vmatpush.bf16.msra.mxu0 %v7051_v59  ;;  %v6575_v59 = vld [vmem:[#allocation16 + $0x38] sm:$0xf0]  ;;  %4675 = vmatpush.bf16.msra.mxu1 %v6574_v7 }
0x10d7   :  { %4561 = vmatpush.bf16.msra.mxu0 %v7050_v58  ;;  %v6578_v58 = vor.u32 %v7063_v3, %v6575_v59 }
0x10d9   :  { %4688 = vmatpush.bf16.msrb.mxu2 %v6578_v58 }
0x10db   :  { %4562 = vmatpush.bf16.msra.mxu0 %v7049_v39  ;;  %v6565_v39 = vld [vmem:[#allocation16 + $0x20] sm:$0xf] }
0x1141   :  { %v4300_v56 = vpop.f32.mrf.mxu1 }
0x1142   :  { %v4304_v31 = vadd.f32 %v4300_v56, %v7999_v1 }
0x1144   :  { %7274 = vtanh.f32 %v4304_v31 }
0x1149   :  { %v4302_v5 = vpop.f32.mrf.mxu1 }
0x114a   :  { %v7275_v6 = vpop.eup %7274 }
0x114b   :  { %v4308_v8 = vmul.f32 %v7275_v6, %v4307_v25  ;;  %v8001_v6 = vld [vmem:[#allocation29_spill] sm:$0xff] }
0x114d   :  { %v7950_v61 = vadd.f32 %v4308_v8, %v4306_v35  ;;  %v520_v35 = vadd.f32 %v8001_v6, %v7711_v45 }
0x114f   :  { %v7114_v12 = vpack.c.bf16 %v7950_v61, %v7941_v53  ;;  %v4314_v41 = vpack.c.bf16 %v7950_v61, %v7950_v61 }
0x1151   :  { %7115 = vst [vmem:[#allocation19 + $0x30] sm:$0xff] %v7114_v12   ;;  %4429 = vmatmul.bf16.vlgmr.msra.gmra.mxu2 %v4314_v41  ;;  %4442 = vmatmul.bf16.vlgmr.msra.gmra.mxu3 %v4314_v41 }
0x11d4   :  { %v4430_v37 = vpop.f32.mrf.mxu2  ;;  %v4443_v36 = vpop.f32.mrf.mxu3 }
0x11d5   :  { %v4448_v18 = vadd.f32 %v4443_v36, %v549_v4  ;;  %v4447_v8 = vadd.f32 %v4430_v37, %v520_v35  ;;  %v7061_v4 = vld [vmem:[#allocation16 + $0x24] sm:$0xf]  ;;  %v6566_v36 = vor.u32 %v7062_v15, %v6565_v39  ;;  %v6557_v37 = vld [vmem:[#allocation16 + $0x10] sm:$0xf] }
0x11d7   :  { %v6514_v24 = vmul.f32 -1.442695, %v4448_v18  ;;  %v6513_v12 = vmul.f32 -1.442695, %v4447_v8  ;;  %v6567_v18 = vld [vmem:[#allocation16 + $0x28] sm:$0xf0]  ;;  %4676 = vmatpush.bf16.msra.mxu1 %v6566_v36 }
0x11d8   :  { %v6570_v45 = vor.u32 %v7061_v4, %v6567_v18  ;;  %v7073_v8 = vld [vmem:[#allocation17] sm:$0xff] }
0x11d9   :  { %7276 = vpow2.f32 %v6514_v24  ;;  %v7060_v24 = vld [vmem:[#allocation16 + $0x14] sm:$0xf0] }
0x11da   :  { %4689 = vmatpush.bf16.msrb.mxu2 %v6570_v45  ;;  %v6558_v38 = vor.u32 %v7060_v24, %v6557_v37 }
0x11dc   :  { %v4432_v32 = vpop.f32.mrf.mxu2  ;;  %v4445_v48 = vpop.f32.mrf.mxu3  ;;  %4677 = vmatpush.bf16.msra.mxu1 %v6558_v38 }
0x11dd   :  { %v6554_v32 = vor.u32 %v7057_v51, %v6551_v34 }
0x11de   :  { %4690 = vmatpush.bf16.msrb.mxu2 %v6562_v62 }
0x11df   :  { %v7277_v20 = vpop.eup %7276 }
0x11e0   :  { %v4473_v14 = vadd.f32 1.0, %v7277_v20  ;;  %4678 = vmatpush.bf16.msra.mxu1 %v6550_v22 }
0x11e2   :  { %7278 = vrcp.f32 %v4473_v14  ;;  %v4485_v42 = vand.u32 2147483648, %v4473_v14  ;;  %v4483_v16 = vand.u32 2147483647, %v4473_v14  ;;  %vm4479_vm1 = vweird.f32 %v4473_v14  ;;  %4691 = vmatpush.bf16.msrb.mxu2 %v6554_v32 }
0x11e3   :  { %7280 = vpow2.f32 %v6513_v12 }
0x11e4   :  { %v4486_v1 = vor.u32 1.1754944e-38, %v4485_v42  ;;  %vm4484_vm3 = vcmp.eq.f32.partialorder %v4483_v16, 8.507059e+37  ;;  %v7080_v16 = vld [vmem:[#allocation17 + $0x38] sm:$0xff] }
0x11e5   :  { %4805 = vmatpush.bf16.msrb.mxu3 %v7080_v16 }
0x11e8   :  { %v7279_v19 = vpop.eup %7278 }
0x11e9   :  { %v4475_v29 = vmul.f32 %v7279_v19, %v4473_v14  ;;  %vm4480_vm0 = vweird.f32 %v7279_v19  ;;  %v7281_v41 = vpop.eup %7280  ;;  %4806 = vmatpush.bf16.msrb.mxu3 %v7079_v17 }
0x11ea   :  { %vm4481_vm2 = vmor %vm4479_vm1, %vm4480_vm0  ;;  %v4452_v57 = vadd.f32 1.0, %v7281_v41  ;;  %v8004_v41 = vld [vmem:[#allocation30_spill] sm:$0xff] }
0x11eb   :  { %v4476_v30 = vsub.f32 1.0, %v4475_v29 }
0x11ec   :  { %7282 = vrcp.f32 %v4452_v57  ;;  %v4464_v26 = vand.u32 2147483648, %v4452_v57  ;;  %vm4458_vm5 = vweird.f32 %v4452_v57  ;;  %v4462_v46 = vand.u32 2147483647, %v4452_v57 }
0x11ed   :  { %v4477_v2 = vmul.f32 %v7279_v19, %v4476_v30 }
0x11ee   :  { %v4465_v54 = vor.u32 1.1754944e-38, %v4464_v26  ;;  %vm4463_vm7 = vcmp.eq.f32.partialorder %v4462_v46, 8.507059e+37 }
0x11ef   :  { %v4478_v56 = vadd.f32 %v7279_v19, %v4477_v2 }
0x11f1   :  { %v4482_v31 = vsel %vm4481_vm2, %v7279_v19, %v4478_v56  ;;  %v7078_v56 = vld [vmem:[#allocation17 + $0x28] sm:$0xff] }
0x11f2   :  { %v4487_v40 = vsel %vm4484_vm3, %v4486_v1, %v4482_v31  ;;  %v7283_v63 = vpop.eup %7282  ;;  %4807 = vmatpush.bf16.msrb.mxu3 %v7078_v56  ;;  %v7077_v1 = vld [vmem:[#allocation17 + $0x20] sm:$0xff]  ;;  %v7076_v31 = vld [vmem:[#allocation17 + $0x18] sm:$0xff] }
0x11f3   :  { %v4489_v25 = vmul.f32 %v4487_v40, %v7950_v61  ;;  %v4454_v33 = vmul.f32 %v7283_v63, %v4452_v57  ;;  %vm4459_vm4 = vweird.f32 %v7283_v63  ;;  %v7075_v40 = vld [vmem:[#allocation17 + $0x10] sm:$0xff] }
0x11f4   :  { %vm4460_vm6 = vmor %vm4458_vm5, %vm4459_vm4 }
0x11f5   :  { %v4490_v5 = vpack.c.bf16 %v4489_v25, %v4489_v25  ;;  %v4455_v48 = vsub.f32 1.0, %v4454_v33 }
0x11f6   :  { %4808 = vmatpush.bf16.msrb.mxu3 %v7077_v1 }
0x11f7   :  { %4563 = vmatmul.bf16.vlgmr.msra.gmra.mxu0 %v4490_v5  ;;  %v4456_v60 = vmul.f32 %v7283_v63, %v4455_v48  ;;  %v7074_v5 = vld [vmem:[#allocation17 + $0x8] sm:$0xff] }
0x11f9   :  { %v4457_v55 = vadd.f32 %v7283_v63, %v4456_v60 }
0x11fa   :  { %4809 = vmatpush.bf16.msrb.mxu3 %v7076_v31 }
0x11fb   :  { %v4461_v52 = vsel %vm4460_vm6, %v7283_v63, %v4457_v55 }
0x11fc   :  { %v4466_v20 = vsel %vm4463_vm7, %v4465_v54, %v4461_v52  ;;  %v8005_v52 = vld [vmem:[#allocation33_spill] sm:$0xff] }
0x11fd   :  { %v4468_v27 = vmul.f32 0.875, %v4466_v20 }
0x11fe   :  { %4810 = vmatpush.bf16.msrb.mxu3 %v7075_v40 }
0x11ff   :  { %v4469_v50 = vadd.f32 0.125, %v4468_v27 }
0x1201   :  { %v4571_v9 = vsub.f32 1.0, %v4469_v50  ;;  %v4570_v29 = vmul.f32 %v4469_v50, %v7941_v53  ;;  %v8003_v53 = vld [vmem:[#allocation27_spill] sm:$0xff] }
0x1202   :  { %v607_v25 = vadd.f32 %v8003_v53, %v7657_v13  ;;  %4811 = vmatpush.bf16.msrb.mxu3 %v7074_v5 }
0x1206   :  { %4812 = vmatpush.bf16.msrb.mxu3 %v7073_v8 }
0x1274   :  { %v4564_v14 = vpop.f32.mrf.mxu0 }
0x1275   :  { %v4568_v47 = vadd.f32 %v4564_v14, %v578_v44 }
0x1277   :  { %7284 = vtanh.f32 %v4568_v47 }
0x127c   :  { %v4566_v10 = vpop.f32.mrf.mxu0 }
0x127d   :  { %v7285_v19 = vpop.eup %7284 }
0x127e   :  { %v4572_v30 = vmul.f32 %v7285_v19, %v4571_v9 }
0x1280   :  { %v7964_v42 = vadd.f32 %v4572_v30, %v4570_v29 }
0x1282   :  { %v4574_v2 = vpack.c.bf16 %v7964_v42, %v7964_v42 }
0x1284   :  { %4679 = vmatmul.bf16.vlgmr.msra.gmra.mxu1 %v4574_v2  ;;  %4692 = vmatmul.bf16.vlgmr.msrb.gmra.mxu2 %v4574_v2 }
0x1301   :  { %v4680_v6 = vpop.f32.mrf.mxu1 }
0x1302   :  { %v4697_v35 = vadd.f32 %v4680_v6, %v607_v25 }
0x1304   :  { %v6611_v38 = vmul.f32 -1.442695, %v4697_v35 }
0x1307   :  { %v4693_v12 = vpop.f32.mrf.mxu2 }
0x1308   :  { %v4698_v57 = vadd.f32 %v4693_v12, %v8004_v41 }
0x1309   :  { %v4682_v43 = vpop.f32.mrf.mxu1 }
0x130a   :  { %v6612_v49 = vmul.f32 -1.442695, %v4698_v57 }
0x130c   :  { %7286 = vpow2.f32 %v6612_v49 }
0x130f   :  { %v4695_v3 = vpop.f32.mrf.mxu2 }
0x1312   :  { %v7287_v7 = vpop.eup %7286 }
0x1313   :  { %v4723_v59 = vadd.f32 1.0, %v7287_v7 }
0x1315   :  { %7288 = vrcp.f32 %v4723_v59  ;;  %v4735_v13 = vand.u32 2147483648, %v4723_v59  ;;  %v4733_v36 = vand.u32 2147483647, %v4723_v59  ;;  %vm4729_vm9 = vweird.f32 %v4723_v59 }
0x1316   :  { %7290 = vpow2.f32 %v6611_v38 }
0x1317   :  { %v4736_v45 = vor.u32 1.1754944e-38, %v4735_v13  ;;  %vm4734_vm11 = vcmp.eq.f32.partialorder %v4733_v36, 8.507059e+37 }
0x131b   :  { %v7289_v58 = vpop.eup %7288 }
0x131c   :  { %v4725_v39 = vmul.f32 %v7289_v58, %v4723_v59  ;;  %vm4730_vm8 = vweird.f32 %v7289_v58  ;;  %v7291_v28 = vpop.eup %7290 }
0x131d   :  { %vm4731_vm10 = vmor %vm4729_vm9, %vm4730_vm8  ;;  %v4702_v62 = vadd.f32 1.0, %v7291_v28 }
0x131e   :  { %v4726_v15 = vsub.f32 1.0, %v4725_v39 }
0x131f   :  { %7292 = vrcp.f32 %v4702_v62  ;;  %v4714_v34 = vand.u32 2147483648, %v4702_v62  ;;  %vm4708_vm13 = vweird.f32 %v4702_v62  ;;  %v4712_v32 = vand.u32 2147483647, %v4702_v62 }
0x1320   :  { %v4727_v4 = vmul.f32 %v7289_v58, %v4726_v15 }
0x1321   :  { %v4715_v60 = vor.u32 1.1754944e-38, %v4714_v34  ;;  %vm4713_vm15 = vcmp.eq.f32.partialorder %v4712_v32, 8.507059e+37 }
0x1322   :  { %v4728_v18 = vadd.f32 %v7289_v58, %v4727_v4 }
0x1324   :  { %v4732_v37 = vsel %vm4731_vm10, %v7289_v58, %v4728_v18 }
0x1325   :  { %v4737_v24 = vsel %vm4734_vm11, %v4736_v45, %v4732_v37  ;;  %v7293_v33 = vpop.eup %7292 }
0x1326   :  { %v4739_v0 = vmul.f32 %v4737_v24, %v7964_v42  ;;  %v4704_v21 = vmul.f32 %v7293_v33, %v4702_v62  ;;  %vm4709_vm12 = vweird.f32 %v7293_v33 }
0x1327   :  { %vm4710_vm14 = vmor %vm4708_vm13, %vm4709_vm12 }
0x1328   :  { %v4740_v63 = vpack.c.bf16 %v4739_v0, %v4739_v0  ;;  %v4705_v23 = vsub.f32 1.0, %v4704_v21 }
0x132a   :  { %4813 = vmatmul.bf16.vlgmr.msrb.gmra.mxu3 %v4740_v63  ;;  %v4706_v51 = vmul.f32 %v7293_v33, %v4705_v23 }
0x132c   :  { %v4707_v22 = vadd.f32 %v7293_v33, %v4706_v51 }
0x132e   :  { %v4711_v48 = vsel %vm4710_vm14, %v7293_v33, %v4707_v22 }
0x132f   :  { %v4716_v55 = vsel %vm4713_vm15, %v4715_v60, %v4711_v48 }
0x1330   :  { %v4718_v26 = vmul.f32 0.875, %v4716_v55 }
0x1332   :  { %v4719_v20 = vadd.f32 0.125, %v4718_v26 }
0x1334   :  { %v4821_v11 = vsub.f32 1.0, %v4719_v20  ;;  %v4820_v14 = vmul.f32 %v4719_v20, %v7950_v61 }
0x13ad   :  { %v4814_v46 = vpop.f32.mrf.mxu3 }
0x13ae   :  { %v4818_v54 = vadd.f32 %v4814_v46, %v8005_v52 }
0x13b0   :  { %7294 = vtanh.f32 %v4818_v54 }
0x13b5   :  { %v4816_v44 = vpop.f32.mrf.mxu3 }
0x13b6   :  { %v7295_v27 = vpop.eup %7294 }
0x13b7   :  { %v4822_v47 = vmul.f32 %v7295_v27, %v4821_v11 }
0x13b9   :  { %v4823_v50 = vadd.f32 %v4822_v47, %v4820_v14 }
0x13bb   :  { %v7119_v9 = vpack.c.bf16 %v4823_v50, %v7964_v42 }
0x13bd   :  { %7120 = vst [vmem:[#allocation19 + $0x38] sm:$0xff] %v7119_v9  }
0x13be   :  { %4844 = dma.vmem_to_hbm [thread:$0]  %s4837_s7, 1024, %s4839_s23, [#allocation7], %s7534_s15, %s7534_s15, %s7535_s16  }
0x13bf   :  { %7522 = dma.done.wait [#allocation7], 1024  }
0x13c0   :  { %7523 = vsyncadd [#allocation7], 4294966272 }
0x13c1   :  { %4849 = vsyncpa [#allocation6], 1 }
0x13c2   :  { %4850 = vsyncpa [#allocation9], 1 }
0x13c3   :  { %4851 = vsyncpa [#allocation12], 1 }
0x13c4   :  { %4852 = vsyncpa [#allocation15], 1 }
0x13c5   :  { %4853 = vsyncpa [#allocation18], 1 }
0x13c6   :  { %4854 = vsyncpa [#allocation7], 1 }

</bundles_post_ra>
